<compile_context>
chip_gen: v7x
topology: tpu7x:2x2x1
jax: 0.10.0
libtpu: 0.0.40
codegen_flags: <defaults>
</compile_context>

<pallas_src>
import jax
import jax.numpy as jnp
from jax.experimental import pallas as pl
from jax.experimental.pallas import tpu as pltpu


def _round_up(x, m):
    return ((x + m - 1) // m) * m


def _head_kernel(x_ref, w1_ref, b1_ref, w2_ref, b2_ref, o_ref):
    # x_ref:  (TM, H)      w1_ref: (H, H)      b1_ref: (1, H)
    # w2_ref: (H, Npad)    b2_ref: (1, Npad)   o_ref:  (TM, Npad)
    h = jnp.dot(x_ref[...], w1_ref[...], preferred_element_type=jnp.float32)
    h = jnp.tanh(h + b1_ref[...].astype(jnp.float32))
    out = jnp.dot(h.astype(w2_ref.dtype), w2_ref[...],
                  preferred_element_type=jnp.float32)
    out = out + b2_ref[...].astype(jnp.float32)
    o_ref[...] = out.astype(o_ref.dtype)


def roberta_classification_head(features, w_dense, b_dense, w_out, b_out, *, tm=256):
    """Fused classification head.

    features: [B, H]; w_dense: [H, H] ([in, out] layout, i.e. PyTorch weight.T);
    b_dense: [H]; w_out: [H, N]; b_out: [N].  Returns [B, N].
    """
    B, H = features.shape
    N = w_out.shape[1]

    # ---- lane-dense output: pad label dim to a multiple of 128 --------------
    n_pad = _round_up(max(N, 128), 128)
    if n_pad != N:
        w_out_p = jnp.pad(w_out, ((0, 0), (0, n_pad - N)))
        b_out_p = jnp.pad(b_out, (0, n_pad - N))
    else:
        w_out_p, b_out_p = w_out, b_out

    # ---- batch tiling: whole (sublane-aligned) batch if small, else tm rows -
    b_aligned = _round_up(B, 8)
    tile_m = b_aligned if b_aligned <= tm else tm
    b_pad = _round_up(B, tile_m)
    x = features if b_pad == B else jnp.pad(features, ((0, b_pad - B), (0, 0)))

    b_dense2 = b_dense.reshape(1, H)
    b_out2 = b_out_p.reshape(1, n_pad)

    grid = (b_pad // tile_m,)
    out = pl.pallas_call(
        _head_kernel,
        out_shape=jax.ShapeDtypeStruct((b_pad, n_pad), features.dtype),
        grid_spec=pltpu.PrefetchScalarGridSpec(
            num_scalar_prefetch=0,
            grid=grid,
            in_specs=[
                pl.BlockSpec((tile_m, H), lambda i: (i, 0)),   # x tile
                pl.BlockSpec((H, H), lambda i: (0, 0)),        # dense weight (resident)
                pl.BlockSpec((1, H), lambda i: (0, 0)),        # dense bias
                pl.BlockSpec((H, n_pad), lambda i: (0, 0)),    # out_proj weight (padded)
                pl.BlockSpec((1, n_pad), lambda i: (0, 0)),    # out_proj bias (padded)
            ],
            out_specs=pl.BlockSpec((tile_m, n_pad), lambda i: (i, 0)),
        ),
        compiler_params=pltpu.CompilerParams(
            dimension_semantics=("parallel",),
        ),
    )(x, w_dense, b_dense2, w_out_p, b_out2)

    # Slice padding (batch rows and label lanes) off outside the kernel.
    return out[:B, :N]


def _reference(features, w_dense, b_dense, w_out, b_out):
    h = jnp.tanh(
        jnp.dot(features, w_dense, precision=jax.lax.Precision.HIGHEST) + b_dense
    )
    return jnp.dot(h, w_out, precision=jax.lax.Precision.HIGHEST) + b_out


if __name__ == "__main__":
    # Shapes consistent with the module: hidden = bert_hidden_dim = 1024.
    # B and N deliberately not multiples of 8 / 128 to exercise the padding paths.
    B, H, N = 20, 1024, 9

    key = jax.random.PRNGKey(0)
    k_x, k_w1, k_b1, k_w2, k_b2 = jax.random.split(key, 5)

    features = jax.random.normal(k_x, (B, H), dtype=jnp.float32)
    # Deterministic synthetic parameters (nn.Linear-like scale), [in, out] layout.
    w_dense = jax.random.normal(k_w1, (H, H), dtype=jnp.float32) * (1.0 / jnp.sqrt(H))
    b_dense = jax.random.normal(k_b1, (H,), dtype=jnp.float32) * 0.01
    w_out = jax.random.normal(k_w2, (H, N), dtype=jnp.float32) * (1.0 / jnp.sqrt(H))
    b_out = jax.random.normal(k_b2, (N,), dtype=jnp.float32) * 0.01

    out = roberta_classification_head(features, w_dense, b_dense, w_out, b_out)
    out = jax.block_until_ready(out)

    ref = _reference(features, w_dense, b_dense, w_out, b_out)
    assert out.shape == (B, N)
    assert jnp.allclose(out, ref, atol=2e-2, rtol=2e-2), (
        float(jnp.max(jnp.abs(out - ref)))
    )

    print("KERNEL_OK")
</pallas_src>

<mosaic_0001>
module attributes {stable_mosaic.version = 11 : i64} {
  func.func @_head_kernel(%arg0: i32, %arg1: memref<24x1024xf32, #tpu.memory_space<vmem>>, %arg2: memref<1024x1024xf32, #tpu.memory_space<vmem>>, %arg3: memref<1x1024xf32, #tpu.memory_space<vmem>>, %arg4: memref<1024x128xf32, #tpu.memory_space<vmem>>, %arg5: memref<1x128xf32, #tpu.memory_space<vmem>>, %arg6: memref<24x128xf32, #tpu.memory_space<vmem>>) attributes {dimension_semantics = [#tpu.dimension_semantics<parallel>], iteration_bounds = array<i64: 1>, scalar_prefetch = 0 : i64, scratch_operands = 0 : i64, tpu.core_type = #tpu.core_type<tc>, window_params = [{transform_indices = @transform_0, window_bounds = array<i64: 24, 1024>}, {pipeline_mode = #tpu.pipeline_mode<synchronous>, transform_indices = @transform_1, window_bounds = array<i64: 1024, 1024>}, {pipeline_mode = #tpu.pipeline_mode<synchronous>, transform_indices = @transform_2, window_bounds = array<i64: 1, 1024>}, {pipeline_mode = #tpu.pipeline_mode<synchronous>, transform_indices = @transform_3, window_bounds = array<i64: 1024, 128>}, {pipeline_mode = #tpu.pipeline_mode<synchronous>, transform_indices = @transform_4, window_bounds = array<i64: 1, 128>}, {transform_indices = @transform_5, window_bounds = array<i64: 24, 128>}]} {
    %c0 = arith.constant 0 : index
    %c0_0 = arith.constant 0 : index
    %0 = vector.load %arg1[%c0, %c0_0] : memref<24x1024xf32, #tpu.memory_space<vmem>>, vector<24x1024xf32>
    %c0_1 = arith.constant 0 : index
    %c0_2 = arith.constant 0 : index
    %1 = vector.load %arg2[%c0_1, %c0_2] : memref<1024x1024xf32, #tpu.memory_space<vmem>>, vector<1024x1024xf32>
    %cst = arith.constant dense<0.000000e+00> : vector<24x1024xf32>
    %2 = tpu.matmul %0, %1, %cst {dimension_numbers = #tpu.dot_dimension_numbers<[1], [0], [0], [1], [0, 0, 1, 1], [], []>} : vector<24x1024xf32>, vector<1024x1024xf32>, vector<24x1024xf32> -> vector<24x1024xf32>
    %c0_3 = arith.constant 0 : index
    %c0_4 = arith.constant 0 : index
    %3 = vector.load %arg3[%c0_3, %c0_4] : memref<1x1024xf32, #tpu.memory_space<vmem>>, vector<1x1024xf32>
    %4 = vector.broadcast %3 : vector<1x1024xf32> to vector<24x1024xf32>
    %5 = arith.addf %2, %4 : vector<24x1024xf32>
    %6 = math.tanh %5 : vector<24x1024xf32>
    %c0_5 = arith.constant 0 : index
    %c0_6 = arith.constant 0 : index
    %7 = vector.load %arg4[%c0_5, %c0_6] : memref<1024x128xf32, #tpu.memory_space<vmem>>, vector<1024x128xf32>
    %cst_7 = arith.constant dense<0.000000e+00> : vector<24x128xf32>
    %8 = tpu.matmul %6, %7, %cst_7 {dimension_numbers = #tpu.dot_dimension_numbers<[1], [0], [0], [1], [0, 0, 1, 1], [], []>} : vector<24x1024xf32>, vector<1024x128xf32>, vector<24x128xf32> -> vector<24x128xf32>
    %c0_8 = arith.constant 0 : index
    %c0_9 = arith.constant 0 : index
    %9 = vector.load %arg5[%c0_8, %c0_9] : memref<1x128xf32, #tpu.memory_space<vmem>>, vector<1x128xf32>
    %10 = vector.broadcast %9 : vector<1x128xf32> to vector<24x128xf32>
    %11 = arith.addf %8, %10 : vector<24x128xf32>
    %c0_10 = arith.constant 0 : index
    %c0_11 = arith.constant 0 : index
    %12 = vector.load %arg6[%c0_10, %c0_11] : memref<24x128xf32, #tpu.memory_space<vmem>>, vector<24x128xf32>
    tpu.vector_store %arg6[%c0_10, %c0_11], %11 {strides = array<i32>} : memref<24x128xf32, #tpu.memory_space<vmem>>, vector<24x128xf32>,
    return
  }
  func.func @transform_0(%arg0: i32) -> (i32, i32) {
    %c0_i32 = arith.constant 0 : i32
    %c0_i32_0 = arith.constant 0 : i32
    return %arg0, %c0_i32 : i32, i32
  }
  func.func @transform_1(%arg0: i32) -> (i32, i32) {
    %c0_i32 = arith.constant 0 : i32
    %c0_i32_0 = arith.constant 0 : i32
    %c0_i32_1 = arith.constant 0 : i32
    return %c0_i32, %c0_i32_0 : i32, i32
  }
  func.func @transform_2(%arg0: i32) -> (i32, i32) {
    %c0_i32 = arith.constant 0 : i32
    %c0_i32_0 = arith.constant 0 : i32
    %c0_i32_1 = arith.constant 0 : i32
    return %c0_i32, %c0_i32_0 : i32, i32
  }
  func.func @transform_3(%arg0: i32) -> (i32, i32) {
    %c0_i32 = arith.constant 0 : i32
    %c0_i32_0 = arith.constant 0 : i32
    %c0_i32_1 = arith.constant 0 : i32
    return %c0_i32, %c0_i32_0 : i32, i32
  }
  func.func @transform_4(%arg0: i32) -> (i32, i32) {
    %c0_i32 = arith.constant 0 : i32
    %c0_i32_0 = arith.constant 0 : i32
    %c0_i32_1 = arith.constant 0 : i32
    return %c0_i32, %c0_i32_0 : i32, i32
  }
  func.func @transform_5(%arg0: i32) -> (i32, i32) {
    %c0_i32 = arith.constant 0 : i32
    %c0_i32_0 = arith.constant 0 : i32
    return %arg0, %c0_i32 : i32, i32
  }
}

</mosaic_0001>

<bundles_post_ra>
// kernel: tpu_custom_call.1
= control target key start
LH: loop header
LB: loop body
LE: loop exit
PB: predicated region body
PF: predicated region fallthrough
CT: control target
= control target key end

     0   :  { %10 = vsyncpa [#allocation3], 0  ;;  %s4846_s0 = inlined_call_operand.hbm [shape: f32[24,1024], index: 0, kind: input, shape index: {}]   ;;  %s4847_s1 = inlined_call_operand.hbm [shape: f32[1024,1024], index: 1, kind: input, shape index: {}]   ;;  %s4848_s2 = inlined_call_operand.hbm [shape: f32[1,1024], index: 2, kind: input, shape index: {}]   ;;  %s4849_s3 = inlined_call_operand.hbm [shape: f32[1024,128], index: 3, kind: input, shape index: {}]   ;;  %s4850_s4 = inlined_call_operand.hbm [shape: f32[1,128], index: 4, kind: input, shape index: {}]   ;;  %s4851_s5 = inlined_call_operand.hbm [shape: f32[24,128], index: 5, kind: output, shape index: {}]  }
   0x1   :  { %11 = vsyncpa [#allocation6], 0 }
   0x2   :  { %12 = vsyncpa [#allocation9], 0 }
   0x3   :  { %13 = vsyncpa [#allocation4], 0  ;;  %s4639_s18 = smov [#allocation5]   ;;  %s4640_s20 = smov [#allocation8]  }
   0x4   :  { %s31_s19 = sshll.u32 %s4639_s18, 4  ;;  %s53_s21 = sshll.u32 %s4640_s20, 4  ;;  %s32_s19 = int_to_ptr.vmem [resolvable:$true] %s31_s19  ;;  %s4679_s21 = int_to_ptr.vmem [resolvable:$true] %s53_s21 }
   0x5   :  { %s4499_s24 = scalar_lea.hbm %s4847_s1, 131072 }
   0x6   :  { %p4500_p0 = scmp.ne.s32.totalorder %s4847_s1, %s4499_s24  ;;  %p4503_p1 = scmp.lt.u32.totalorder %s4499_s24, %s4847_s1 }
   0x8   :  { %p4505_p2 = pnand %p4503_p1, %p4500_p0 }
   0xa   :  { %4508 = shalt.err (!%p4505_p2)
}
   0xb   :  { %s4509_s29 = scalar_lea.vmem %s32_s19, 131072  ;;  %p4514_p4 = scmp.lt.s32.totalorder %s32_s19, %s32_s19 }
   0xc   :  { %p4510_p3 = scmp.ne.s32.totalorder %s32_s19, %s4509_s29  ;;  %p4515_p5 = scmp.lt.s32.totalorder %s4509_s29, %s4509_s29 }
   0xe   :  { %p4516_p6 = por %p4515_p5, %p4514_p4 }
  0x10   :  { %p4517_p7 = pnand %p4516_p6, %p4510_p3 }
  0x12   :  { %4520 = shalt.err (!%p4517_p7)
}
  0x13   :  { %s4641_s30 = smov 1024   ;;  %s4642_s6 = smov 64  }
  0x14   :  { %37 = dma.hbm_to_vmem [thread:$0]  %s4847_s1, 131072, %s32_s19, [#allocation6], %s4641_s30, %s4641_s30, %s4642_s6  }
  0x15   :  { %s4521_s11 = scalar_lea.hbm %s4849_s3, 16384 }
  0x16   :  { %p4522_p8 = scmp.ne.s32.totalorder %s4849_s3, %s4521_s11  ;;  %p4525_p9 = scmp.lt.u32.totalorder %s4521_s11, %s4849_s3 }
  0x18   :  { %p4527_p10 = pnand %p4525_p9, %p4522_p8 }
  0x1a   :  { %4530 = shalt.err (!%p4527_p10)
}
  0x1b   :  { %s4531_s16 = scalar_lea.vmem %s4679_s21, 16384  ;;  %p4536_p12 = scmp.lt.s32.totalorder %s4679_s21, %s4679_s21 }
  0x1c   :  { %p4532_p11 = scmp.ne.s32.totalorder %s4679_s21, %s4531_s16  ;;  %p4537_p13 = scmp.lt.s32.totalorder %s4531_s16, %s4531_s16 }
  0x1e   :  { %p4538_p0 = por %p4537_p13, %p4536_p12 }
  0x20   :  { %p4539_p1 = pnand %p4538_p0, %p4532_p11 }
  0x22   :  { %4542 = shalt.err (!%p4539_p1)
}
  0x23   :  { %s4643_s1 = smov 128   ;;  %s4644_s17 = smov 8  }
  0x24   :  { %59 = dma.hbm_to_vmem [thread:$0]  %s4849_s3, 16384, %s4679_s21, [#allocation9], %s4643_s1, %s4643_s1, %s4644_s17  }
  0x25   :  { %s4645_s20 = smov [#allocation2]   ;;  %s4646_s23 = smov [#allocation7]  }
  0x26   :  { %s19_s22 = sshll.u32 %s4645_s20, 4  ;;  %s44_s24 = sshll.u32 %s4646_s23, 4  ;;  %s20_s22 = int_to_ptr.vmem [resolvable:$true] %s19_s22  ;;  %s45_s24 = int_to_ptr.vmem [resolvable:$true] %s44_s24 }
  0x27   :  { %s4543_s27 = scalar_lea.hbm %s4846_s0, 3072 }
  0x28   :  { %p4544_p2 = scmp.ne.s32.totalorder %s4846_s0, %s4543_s27  ;;  %p4547_p3 = scmp.lt.u32.totalorder %s4543_s27, %s4846_s0 }
  0x2a   :  { %p4549_p4 = pnand %p4547_p3, %p4544_p2 }
  0x2c   :  { %4552 = shalt.err (!%p4549_p4)
}
  0x2d   :  { %s4553_s3 = scalar_lea.vmem %s20_s22, 3072  ;;  %p4558_p6 = scmp.lt.s32.totalorder %s20_s22, %s20_s22 }
  0x2e   :  { %p4554_p5 = scmp.ne.s32.totalorder %s20_s22, %s4553_s3  ;;  %p4559_p7 = scmp.lt.s32.totalorder %s4553_s3, %s4553_s3 }
  0x30   :  { %p4560_p8 = por %p4559_p7, %p4558_p6 }
  0x32   :  { %p4561_p9 = pnand %p4560_p8, %p4554_p5 }
  0x34   :  { %4564 = shalt.err (!%p4561_p9)
}
  0x35   :  { %25 = dma.hbm_to_vmem [thread:$0]  %s4846_s0, 3072, %s20_s22, [#allocation3], %s4641_s30, %s4641_s30, %s4642_s6  }
  0x36   :  { %s4565_s12 = scalar_lea.hbm %s4848_s2, 128 }
  0x37   :  { %p4566_p10 = scmp.ne.s32.totalorder %s4848_s2, %s4565_s12  ;;  %p4569_p11 = scmp.lt.u32.totalorder %s4565_s12, %s4848_s2 }
  0x39   :  { %p4571_p12 = pnand %p4569_p11, %p4566_p10 }
  0x3b   :  { %4574 = shalt.err (!%p4571_p12)
}
  0x3c   :  { %s4575_s18 = scalar_lea.vmem %s45_s24, 128  ;;  %p4580_p0 = scmp.lt.s32.totalorder %s45_s24, %s45_s24 }
  0x3d   :  { %p4576_p13 = scmp.ne.s32.totalorder %s45_s24, %s4575_s18  ;;  %p4581_p1 = scmp.lt.s32.totalorder %s4575_s18, %s4575_s18 }
  0x3f   :  { %p4582_p2 = por %p4581_p1, %p4580_p0 }
  0x41   :  { %p4583_p3 = pnand %p4582_p2, %p4576_p13 }
  0x43   :  { %4586 = shalt.err (!%p4583_p3)
}
  0x44   :  { %47 = dma.hbm_to_vmem [thread:$0]  %s4848_s2, 128, %s45_s24, [#allocation6]  }
  0x45   :  { %s4647_s6 = smov [#allocation10]   ;;  %s4587_s23 = scalar_lea.hbm %s4850_s4, 16 }
  0x46   :  { %s66_s19 = sshll.u32 %s4647_s6, 4  ;;  %p4588_p4 = scmp.ne.s32.totalorder %s4850_s4, %s4587_s23  ;;  %s67_s19 = int_to_ptr.vmem [resolvable:$true] %s66_s19 }
  0x47   :  { %p4591_p5 = scmp.lt.u32.totalorder %s4587_s23, %s4850_s4 }
  0x49   :  { %p4593_p6 = pnand %p4591_p5, %p4588_p4 }
  0x4b   :  { %4596 = shalt.err (!%p4593_p6)
}
  0x4c   :  { %s4597_s29 = scalar_lea.vmem %s67_s19, 16  ;;  %s4601_s2 = scalar_lea.vmem %s67_s19, 32 }
  0x4d   :  { %p4598_p7 = scmp.ne.s32.totalorder %s67_s19, %s4597_s29  ;;  %p4602_p8 = scmp.lt.s32.totalorder %s67_s19, %s67_s19 }
  0x4e   :  { %p4603_p9 = scmp.lt.s32.totalorder %s4601_s2, %s4597_s29 }
  0x50   :  { %p4604_p10 = por %p4603_p9, %p4602_p8 }
  0x52   :  { %p4605_p11 = pnand %p4604_p10, %p4598_p7 }
  0x54   :  { %4608 = shalt.err (!%p4605_p11)
}
  0x55   :  { %69 = dma.hbm_to_vmem [thread:$0]  %s4850_s4, 16, %s67_s19, [#allocation9]  }
  0x56   :  { %4631 = dma.done.wait [#allocation3], 3072  }
  0x57   :  { %4632 = vsyncadd [#allocation3], 4294964224 }
  0x58   :  { %4633 = dma.done.wait [#allocation6], 131200  }
  0x59   :  { %4634 = vsyncadd [#allocation6], 4294836096 }
  0x5a   :  { %4635 = dma.done.wait [#allocation9], 16400  }
  0x5b   :  { %4636 = vsyncadd [#allocation9], 4294950896  ;;  %v110_v0 = vld [vmem:[#allocation5 + $0x8] sm:$0xff]  ;;  %v112_v2 = vld [vmem:[#allocation5 + $0x18] sm:$0xff]  ;;  %s4648_s4 = smov [#allocation11]  }
  0x5c   :  { %v118_v1 = vld [vmem:[#allocation5 + $0x48] sm:$0xff]  ;;  %v120_v4 = vld [vmem:[#allocation5 + $0x58] sm:$0xff]  ;;  %v109_v5 = vld [vmem:[#allocation5] sm:$0xff]  ;;  %s2990_s8 = sshll.u32 %s4648_s4, 4  ;;  %s2991_s8 = int_to_ptr.vmem [resolvable:$true] %s2990_s8 }
  0x5d   :  { %v3169_v3 = vpack.c.bf16 %v118_v1, %v110_v0  ;;  %v117_v6 = vld [vmem:[#allocation5 + $0x40] sm:$0xff]  ;;  %v3425_v7 = vpack.c.bf16 %v120_v4, %v112_v2  ;;  %v111_v9 = vld [vmem:[#allocation5 + $0x10] sm:$0xff]  ;;  %v126_v11 = vld [vmem:[#allocation5 + $0x88] sm:$0xff]  ;;  %s4609_s3 = scalar_lea.vmem %s2991_s8, 384  ;;  %p4614_p13 = scmp.lt.s32.totalorder %s2991_s8, %s2991_s8 }
  0x5e   :  { %v3171_v8 = vpack.c.bf16 %v117_v6, %v109_v5  ;;  %v119_v10 = vld [vmem:[#allocation5 + $0x50] sm:$0xff]  ;;  %v134_v13 = vld [vmem:[#allocation5 + $0xc8] sm:$0xff]  ;;  %v128_v14 = vld [vmem:[#allocation5 + $0x98] sm:$0xff]  ;;  %p4610_p12 = scmp.ne.s32.totalorder %s2991_s8, %s4609_s3  ;;  %p4615_p0 = scmp.lt.s32.totalorder %s4609_s3, %s4609_s3 }
  0x5f   :  { %3170 = vmatprep.subr.bf16.mxu0 %v3169_v3  ;;  %v3427_v12 = vpack.c.bf16 %v119_v10, %v111_v9  ;;  %v136_v15 = vld [vmem:[#allocation5 + $0xd8] sm:$0xff]  ;;  %3426 = vmatprep.subr.bf16.mxu1 %v3425_v7  ;;  %v3173_v16 = vpack.c.bf16 %v134_v13, %v126_v11  ;;  %v125_v18 = vld [vmem:[#allocation5 + $0x80] sm:$0xff]  ;;  %v127_v20 = vld [vmem:[#allocation5 + $0x90] sm:$0xff] }
  0x60   :  { %3172 = vmatpush1.bf16.msra.mxu0 %v3171_v8  ;;  %v3429_v17 = vpack.c.bf16 %v136_v15, %v128_v14  ;;  %v133_v19 = vld [vmem:[#allocation5 + $0xc0] sm:$0xff]  ;;  %v135_v22 = vld [vmem:[#allocation5 + $0xd0] sm:$0xff]  ;;  %v142_v23 = vld [vmem:[#allocation5 + $0x108] sm:$0xff]  ;;  %p4616_p1 = por %p4615_p0, %p4614_p13 }
  0x61   :  { %3428 = vmatpush1.bf16.msra.mxu1 %v3427_v12  ;;  %v3175_v21 = vpack.c.bf16 %v133_v19, %v125_v18  ;;  %v150_v24 = vld [vmem:[#allocation5 + $0x148] sm:$0xff]  ;;  %3174 = vmatprep.subr.bf16.mxu0 %v3173_v16  ;;  %v3431_v25 = vpack.c.bf16 %v135_v22, %v127_v20  ;;  %v144_v27 = vld [vmem:[#allocation5 + $0x118] sm:$0xff]  ;;  %v141_v29 = vld [vmem:[#allocation5 + $0x100] sm:$0xff] }
  0x62   :  { %3430 = vmatprep.subr.bf16.mxu1 %v3429_v17  ;;  %v3177_v26 = vpack.c.bf16 %v150_v24, %v142_v23  ;;  %v152_v28 = vld [vmem:[#allocation5 + $0x158] sm:$0xff]  ;;  %v149_v31 = vld [vmem:[#allocation5 + $0x140] sm:$0xff]  ;;  %v143_v32 = vld [vmem:[#allocation5 + $0x110] sm:$0xff]  ;;  %p4617_p2 = pnand %p4616_p1, %p4610_p12 }
  0x63   :  { %v3433_v30 = vpack.c.bf16 %v152_v28, %v144_v27  ;;  %v151_v33 = vld [vmem:[#allocation5 + $0x150] sm:$0xff]  ;;  %v3179_v34 = vpack.c.bf16 %v149_v31, %v141_v29  ;;  %v158_v35 = vld [vmem:[#allocation5 + $0x188] sm:$0xff]  ;;  %v160_v37 = vld [vmem:[#allocation5 + $0x198] sm:$0xff] }
  0x64   :  { %3176 = vmatpush1.bf16.msra.mxu0 %v3175_v21  ;;  %v166_v36 = vld [vmem:[#allocation5 + $0x1c8] sm:$0xff]  ;;  %v3435_v38 = vpack.c.bf16 %v151_v33, %v143_v32  ;;  %v168_v40 = vld [vmem:[#allocation5 + $0x1d8] sm:$0xff]  ;;  %v157_v41 = vld [vmem:[#allocation5 + $0x180] sm:$0xff] }
  0x65   :  { %3432 = vmatpush1.bf16.msra.mxu1 %v3431_v25  ;;  %3178 = vmatprep.subr.bf16.mxu0 %v3177_v26  ;;  %v3181_v39 = vpack.c.bf16 %v166_v36, %v158_v35  ;;  %v165_v42 = vld [vmem:[#allocation5 + $0x1c0] sm:$0xff]  ;;  %v3437_v43 = vpack.c.bf16 %v168_v40, %v160_v37  ;;  %v159_v44 = vld [vmem:[#allocation5 + $0x190] sm:$0xff]  ;;  %v174_v46 = vld [vmem:[#allocation5 + $0x208] sm:$0xff] }
  0x66   :  { %3434 = vmatprep.subr.bf16.mxu1 %v3433_v30  ;;  %v167_v45 = vld [vmem:[#allocation5 + $0x1d0] sm:$0xff]  ;;  %v182_v47 = vld [vmem:[#allocation5 + $0x248] sm:$0xff]  ;;  %v176_v48 = vld [vmem:[#allocation5 + $0x218] sm:$0xff]  ;;  %v3183_v50 = vpack.c.bf16 %v165_v42, %v157_v41 }
  0x67   :  { %v184_v49 = vld [vmem:[#allocation5 + $0x258] sm:$0xff]  ;;  %v3439_v51 = vpack.c.bf16 %v167_v45, %v159_v44  ;;  %v3185_v52 = vpack.c.bf16 %v182_v47, %v174_v46  ;;  %v173_v53 = vld [vmem:[#allocation5 + $0x200] sm:$0xff]  ;;  %v175_v55 = vld [vmem:[#allocation5 + $0x210] sm:$0xff] }
  0x68   :  { %3180 = vmatpush1.bf16.msra.mxu0 %v3179_v34  ;;  %v181_v54 = vld [vmem:[#allocation5 + $0x240] sm:$0xff]  ;;  %v3441_v56 = vpack.c.bf16 %v184_v49, %v176_v48  ;;  %v183_v57 = vld [vmem:[#allocation5 + $0x250] sm:$0xff]  ;;  %v190_v58 = vld [vmem:[#allocation5 + $0x288] sm:$0xff] }
  0x69   :  { %3436 = vmatpush1.bf16.msra.mxu1 %v3435_v38  ;;  %3182 = vmatprep.subr.bf16.mxu0 %v3181_v39  ;;  %v198_v59 = vld [vmem:[#allocation5 + $0x2c8] sm:$0xff]  ;;  %v192_v60 = vld [vmem:[#allocation5 + $0x298] sm:$0xff]  ;;  %v3187_v62 = vpack.c.bf16 %v181_v54, %v173_v53  ;;  %v3443_v63 = vpack.c.bf16 %v183_v57, %v175_v55  ;;  %v189_v1 = vld [vmem:[#allocation5 + $0x280] sm:$0xff] }
  0x6a   :  { %3438 = vmatprep.subr.bf16.mxu1 %v3437_v43  ;;  %v200_v61 = vld [vmem:[#allocation5 + $0x2d8] sm:$0xff]  ;;  %v3189_v0 = vpack.c.bf16 %v198_v59, %v190_v58  ;;  %v197_v2 = vld [vmem:[#allocation5 + $0x2c0] sm:$0xff]  ;;  %v191_v3 = vld [vmem:[#allocation5 + $0x290] sm:$0xff] }
  0x6b   :  { %v3445_v4 = vpack.c.bf16 %v200_v61, %v192_v60  ;;  %v199_v5 = vld [vmem:[#allocation5 + $0x2d0] sm:$0xff]  ;;  %v206_v6 = vld [vmem:[#allocation5 + $0x308] sm:$0xff]  ;;  %v208_v8 = vld [vmem:[#allocation5 + $0x318] sm:$0xff]  ;;  %v3191_v10 = vpack.c.bf16 %v197_v2, %v189_v1 }
  0x6c   :  { %3184 = vmatpush1.bf16.msra.mxu0 %v3183_v50  ;;  %v214_v7 = vld [vmem:[#allocation5 + $0x348] sm:$0xff]  ;;  %v216_v9 = vld [vmem:[#allocation5 + $0x358] sm:$0xff]  ;;  %v3447_v11 = vpack.c.bf16 %v199_v5, %v191_v3  ;;  %v205_v13 = vld [vmem:[#allocation5 + $0x300] sm:$0xff] }
  0x6d   :  { %3440 = vmatpush1.bf16.msra.mxu1 %v3439_v51  ;;  %3186 = vmatprep.subr.bf16.mxu0 %v3185_v52  ;;  %v3193_v12 = vpack.c.bf16 %v214_v7, %v206_v6  ;;  %v213_v14 = vld [vmem:[#allocation5 + $0x340] sm:$0xff]  ;;  %v207_v15 = vld [vmem:[#allocation5 + $0x310] sm:$0xff]  ;;  %v3449_v16 = vpack.c.bf16 %v216_v9, %v208_v8  ;;  %v222_v18 = vld [vmem:[#allocation5 + $0x388] sm:$0xff] }
  0x6e   :  { %3442 = vmatprep.subr.bf16.mxu1 %v3441_v56  ;;  %v215_v17 = vld [vmem:[#allocation5 + $0x350] sm:$0xff]  ;;  %v230_v19 = vld [vmem:[#allocation5 + $0x3c8] sm:$0xff]  ;;  %v224_v20 = vld [vmem:[#allocation5 + $0x398] sm:$0xff]  ;;  %v3195_v22 = vpack.c.bf16 %v213_v14, %v205_v13 }
  0x6f   :  { %v232_v21 = vld [vmem:[#allocation5 + $0x3d8] sm:$0xff]  ;;  %v3451_v23 = vpack.c.bf16 %v215_v17, %v207_v15  ;;  %v3197_v24 = vpack.c.bf16 %v230_v19, %v222_v18  ;;  %v221_v25 = vld [vmem:[#allocation5 + $0x380] sm:$0xff]  ;;  %v223_v27 = vld [vmem:[#allocation5 + $0x390] sm:$0xff] }
  0x70   :  { %3188 = vmatpush1.bf16.msra.mxu0 %v3187_v62  ;;  %v229_v26 = vld [vmem:[#allocation5 + $0x3c0] sm:$0xff]  ;;  %v3453_v28 = vpack.c.bf16 %v232_v21, %v224_v20  ;;  %v231_v29 = vld [vmem:[#allocation5 + $0x3d0] sm:$0xff]  ;;  %v238_v30 = vld [vmem:[#allocation5 + $0x408] sm:$0xff] }
  0x71   :  { %3444 = vmatpush1.bf16.msra.mxu1 %v3443_v63  ;;  %3190 = vmatprep.subr.bf16.mxu0 %v3189_v0  ;;  %v246_v31 = vld [vmem:[#allocation5 + $0x448] sm:$0xff]  ;;  %v240_v32 = vld [vmem:[#allocation5 + $0x418] sm:$0xff]  ;;  %v3199_v34 = vpack.c.bf16 %v229_v26, %v221_v25  ;;  %v3455_v35 = vpack.c.bf16 %v231_v29, %v223_v27  ;;  %v237_v37 = vld [vmem:[#allocation5 + $0x400] sm:$0xff] }
  0x72   :  { %3446 = vmatprep.subr.bf16.mxu1 %v3445_v4  ;;  %v248_v33 = vld [vmem:[#allocation5 + $0x458] sm:$0xff]  ;;  %v3201_v36 = vpack.c.bf16 %v246_v31, %v238_v30  ;;  %v245_v38 = vld [vmem:[#allocation5 + $0x440] sm:$0xff]  ;;  %v239_v39 = vld [vmem:[#allocation5 + $0x410] sm:$0xff] }
  0x73   :  { %v3457_v40 = vpack.c.bf16 %v248_v33, %v240_v32  ;;  %v247_v41 = vld [vmem:[#allocation5 + $0x450] sm:$0xff]  ;;  %v254_v42 = vld [vmem:[#allocation5 + $0x488] sm:$0xff]  ;;  %v256_v44 = vld [vmem:[#allocation5 + $0x498] sm:$0xff]  ;;  %v3203_v46 = vpack.c.bf16 %v245_v38, %v237_v37 }
  0x74   :  { %3192 = vmatpush1.bf16.msra.mxu0 %v3191_v10  ;;  %v262_v43 = vld [vmem:[#allocation5 + $0x4c8] sm:$0xff]  ;;  %v264_v45 = vld [vmem:[#allocation5 + $0x4d8] sm:$0xff]  ;;  %v3459_v47 = vpack.c.bf16 %v247_v41, %v239_v39  ;;  %v253_v49 = vld [vmem:[#allocation5 + $0x480] sm:$0xff] }
  0x75   :  { %3448 = vmatpush1.bf16.msra.mxu1 %v3447_v11  ;;  %3194 = vmatprep.subr.bf16.mxu0 %v3193_v12  ;;  %v3205_v48 = vpack.c.bf16 %v262_v43, %v254_v42  ;;  %v261_v50 = vld [vmem:[#allocation5 + $0x4c0] sm:$0xff]  ;;  %v255_v51 = vld [vmem:[#allocation5 + $0x490] sm:$0xff]  ;;  %v3461_v52 = vpack.c.bf16 %v264_v45, %v256_v44  ;;  %v270_v54 = vld [vmem:[#allocation5 + $0x508] sm:$0xff] }
  0x76   :  { %3450 = vmatprep.subr.bf16.mxu1 %v3449_v16  ;;  %v263_v53 = vld [vmem:[#allocation5 + $0x4d0] sm:$0xff]  ;;  %v278_v55 = vld [vmem:[#allocation5 + $0x548] sm:$0xff]  ;;  %v272_v56 = vld [vmem:[#allocation5 + $0x518] sm:$0xff]  ;;  %v3207_v58 = vpack.c.bf16 %v261_v50, %v253_v49 }
  0x77   :  { %v280_v57 = vld [vmem:[#allocation5 + $0x558] sm:$0xff]  ;;  %v3463_v59 = vpack.c.bf16 %v263_v53, %v255_v51  ;;  %v3209_v60 = vpack.c.bf16 %v278_v55, %v270_v54  ;;  %v269_v61 = vld [vmem:[#allocation5 + $0x500] sm:$0xff]  ;;  %v271_v63 = vld [vmem:[#allocation5 + $0x510] sm:$0xff] }
  0x78   :  { %3196 = vmatpush1.bf16.msra.mxu0 %v3195_v22  ;;  %v277_v62 = vld [vmem:[#allocation5 + $0x540] sm:$0xff]  ;;  %v3465_v0 = vpack.c.bf16 %v280_v57, %v272_v56  ;;  %v279_v1 = vld [vmem:[#allocation5 + $0x550] sm:$0xff]  ;;  %v286_v2 = vld [vmem:[#allocation5 + $0x588] sm:$0xff] }
  0x79   :  { %3452 = vmatpush1.bf16.msra.mxu1 %v3451_v23  ;;  %3198 = vmatprep.subr.bf16.mxu0 %v3197_v24  ;;  %v294_v3 = vld [vmem:[#allocation5 + $0x5c8] sm:$0xff]  ;;  %v288_v4 = vld [vmem:[#allocation5 + $0x598] sm:$0xff]  ;;  %v3211_v6 = vpack.c.bf16 %v277_v62, %v269_v61  ;;  %v285_v7 = vld [vmem:[#allocation5 + $0x580] sm:$0xff]  ;;  %v3467_v8 = vpack.c.bf16 %v279_v1, %v271_v63 }
  0x7a   :  { %3454 = vmatprep.subr.bf16.mxu1 %v3453_v28  ;;  %v296_v5 = vld [vmem:[#allocation5 + $0x5d8] sm:$0xff]  ;;  %v3213_v9 = vpack.c.bf16 %v294_v3, %v286_v2  ;;  %v293_v10 = vld [vmem:[#allocation5 + $0x5c0] sm:$0xff]  ;;  %v287_v11 = vld [vmem:[#allocation5 + $0x590] sm:$0xff] }
  0x7b   :  { %v295_v12 = vld [vmem:[#allocation5 + $0x5d0] sm:$0xff]  ;;  %v3469_v13 = vpack.c.bf16 %v296_v5, %v288_v4  ;;  %v302_v14 = vld [vmem:[#allocation5 + $0x608] sm:$0xff]  ;;  %v304_v17 = vld [vmem:[#allocation5 + $0x618] sm:$0xff]  ;;  %v3215_v19 = vpack.c.bf16 %v293_v10, %v285_v7 }
  0x7c   :  { %3200 = vmatpush1.bf16.msra.mxu0 %v3199_v34  ;;  %v310_v15 = vld [vmem:[#allocation5 + $0x648] sm:$0xff]  ;;  %v312_v18 = vld [vmem:[#allocation5 + $0x658] sm:$0xff]  ;;  %v3471_v20 = vpack.c.bf16 %v295_v12, %v287_v11  ;;  %v301_v22 = vld [vmem:[#allocation5 + $0x600] sm:$0xff] }
  0x7d   :  { %3456 = vmatpush1.bf16.msra.mxu1 %v3455_v35  ;;  %3202 = vmatprep.subr.bf16.mxu0 %v3201_v36  ;;  %v86_v16 = vld [vmem:[#allocation2 + $0x8] sm:$0xff]  ;;  %v3217_v21 = vpack.c.bf16 %v310_v15, %v302_v14  ;;  %v309_v23 = vld [vmem:[#allocation5 + $0x640] sm:$0xff]  ;;  %v303_v24 = vld [vmem:[#allocation5 + $0x610] sm:$0xff]  ;;  %v3473_v25 = vpack.c.bf16 %v312_v18, %v304_v17 }
  0x7e   :  { %3458 = vmatprep.subr.bf16.mxu1 %v3457_v40  ;;  %1239 = vmatprep.mubr.f32.mxu0 %v86_v16  ;;  %v311_v26 = vld [vmem:[#allocation5 + $0x650] sm:$0xff]  ;;  %v318_v27 = vld [vmem:[#allocation5 + $0x688] sm:$0xff]  ;;  %v320_v29 = vld [vmem:[#allocation5 + $0x698] sm:$0xff]  ;;  %v3219_v31 = vpack.c.bf16 %v309_v23, %v301_v22 }
  0x7f   :  { %1571 = vmatprep.mubr.f32.mxu1 %v86_v16  ;;  %v326_v28 = vld [vmem:[#allocation5 + $0x6c8] sm:$0xff]  ;;  %v328_v30 = vld [vmem:[#allocation5 + $0x6d8] sm:$0xff]  ;;  %v3475_v32 = vpack.c.bf16 %v311_v26, %v303_v24  ;;  %v317_v34 = vld [vmem:[#allocation5 + $0x680] sm:$0xff] }
  0x80   :  { %3204 = vmatpush1.bf16.msra.mxu0 %v3203_v46  ;;  %v3221_v33 = vpack.c.bf16 %v326_v28, %v318_v27  ;;  %v325_v35 = vld [vmem:[#allocation5 + $0x6c0] sm:$0xff]  ;;  %v319_v36 = vld [vmem:[#allocation5 + $0x690] sm:$0xff]  ;;  %v3477_v37 = vpack.c.bf16 %v328_v30, %v320_v29  ;;  %v334_v39 = vld [vmem:[#allocation5 + $0x708] sm:$0xff] }
  0x81   :  { %3460 = vmatpush1.bf16.msra.mxu1 %v3459_v47  ;;  %3206 = vmatprep.subr.bf16.mxu0 %v3205_v48  ;;  %v327_v38 = vld [vmem:[#allocation5 + $0x6d0] sm:$0xff]  ;;  %v342_v40 = vld [vmem:[#allocation5 + $0x748] sm:$0xff]  ;;  %v336_v41 = vld [vmem:[#allocation5 + $0x718] sm:$0xff]  ;;  %v3223_v43 = vpack.c.bf16 %v325_v35, %v317_v34 }
  0x82   :  { %3462 = vmatprep.subr.bf16.mxu1 %v3461_v52  ;;  %v344_v42 = vld [vmem:[#allocation5 + $0x758] sm:$0xff]  ;;  %v3479_v44 = vpack.c.bf16 %v327_v38, %v319_v36  ;;  %v3225_v45 = vpack.c.bf16 %v342_v40, %v334_v39  ;;  %v333_v46 = vld [vmem:[#allocation5 + $0x700] sm:$0xff]  ;;  %v335_v48 = vld [vmem:[#allocation5 + $0x710] sm:$0xff] }
  0x83   :  { %v341_v47 = vld [vmem:[#allocation5 + $0x740] sm:$0xff]  ;;  %v3481_v49 = vpack.c.bf16 %v344_v42, %v336_v41  ;;  %v343_v50 = vld [vmem:[#allocation5 + $0x750] sm:$0xff]  ;;  %v350_v51 = vld [vmem:[#allocation5 + $0x788] sm:$0xff] }
  0x84   :  { %3208 = vmatpush1.bf16.msra.mxu0 %v3207_v58  ;;  %v358_v52 = vld [vmem:[#allocation5 + $0x7c8] sm:$0xff]  ;;  %v352_v53 = vld [vmem:[#allocation5 + $0x798] sm:$0xff]  ;;  %v3227_v55 = vpack.c.bf16 %v341_v47, %v333_v46  ;;  %v3483_v56 = vpack.c.bf16 %v343_v50, %v335_v48  ;;  %v349_v58 = vld [vmem:[#allocation5 + $0x780] sm:$0xff] }
  0x85   :  { %3464 = vmatpush1.bf16.msra.mxu1 %v3463_v59  ;;  %3210 = vmatprep.subr.bf16.mxu0 %v3209_v60  ;;  %v360_v54 = vld [vmem:[#allocation5 + $0x7d8] sm:$0xff]  ;;  %v3229_v57 = vpack.c.bf16 %v358_v52, %v350_v51  ;;  %v357_v59 = vld [vmem:[#allocation5 + $0x7c0] sm:$0xff]  ;;  %v351_v60 = vld [vmem:[#allocation5 + $0x790] sm:$0xff] }
  0x86   :  { %3466 = vmatprep.subr.bf16.mxu1 %v3465_v0  ;;  %v3485_v61 = vpack.c.bf16 %v360_v54, %v352_v53  ;;  %v359_v62 = vld [vmem:[#allocation5 + $0x7d0] sm:$0xff]  ;;  %v366_v63 = vld [vmem:[#allocation5 + $0x808] sm:$0xff]  ;;  %v368_v1 = vld [vmem:[#allocation5 + $0x818] sm:$0xff]  ;;  %v3231_v3 = vpack.c.bf16 %v357_v59, %v349_v58 }
  0x87   :  { %v374_v0 = vld [vmem:[#allocation5 + $0x848] sm:$0xff]  ;;  %v376_v2 = vld [vmem:[#allocation5 + $0x858] sm:$0xff]  ;;  %v3487_v4 = vpack.c.bf16 %v359_v62, %v351_v60  ;;  %v373_v7 = vld [vmem:[#allocation5 + $0x840] sm:$0xff] }
  0x88   :  { %3212 = vmatpush1.bf16.msra.mxu0 %v3211_v6  ;;  %v3233_v5 = vpack.c.bf16 %v374_v0, %v366_v63  ;;  %v365_v6 = vld [vmem:[#allocation5 + $0x800] sm:$0xff]  ;;  %v375_v10 = vld [vmem:[#allocation5 + $0x850] sm:$0xff]  ;;  %v382_v11 = vld [vmem:[#allocation5 + $0x888] sm:$0xff] }
  0x89   :  { %3468 = vmatpush1.bf16.msra.mxu1 %v3467_v8  ;;  %3214 = vmatprep.subr.bf16.mxu0 %v3213_v9  ;;  %v367_v8 = vld [vmem:[#allocation5 + $0x810] sm:$0xff]  ;;  %v3489_v9 = vpack.c.bf16 %v376_v2, %v368_v1  ;;  %v390_v12 = vld [vmem:[#allocation5 + $0x8c8] sm:$0xff]  ;;  %v392_v14 = vld [vmem:[#allocation5 + $0x8d8] sm:$0xff]  ;;  %v3235_v16 = vpack.c.bf16 %v373_v7, %v365_v6 }
  0x8a   :  { %3470 = vmatprep.subr.bf16.mxu1 %v3469_v13  ;;  %v384_v13 = vld [vmem:[#allocation5 + $0x898] sm:$0xff]  ;;  %v85_v15 = vld [vmem:[#allocation2] sm:$0xff]  ;;  %v3491_v17 = vpack.c.bf16 %v375_v10, %v367_v8  ;;  %v3237_v18 = vpack.c.bf16 %v390_v12, %v382_v11  ;;  %v391_v23 = vld [vmem:[#allocation5 + $0x8d0] sm:$0xff] }
  0x8b   :  { %v3493_v22 = vpack.c.bf16 %v392_v14, %v384_v13  ;;  %v398_v24 = vld [vmem:[#allocation5 + $0x908] sm:$0xff]  ;;  %v400_v26 = vld [vmem:[#allocation5 + $0x918] sm:$0xff]  ;;  %v407_v35 = vld [vmem:[#allocation5 + $0x950] sm:$0xff] }
  0x8c   :  { %3216 = vmatpush1.bf16.msra.mxu0 %v3215_v19  ;;  %v381_v19 = vld [vmem:[#allocation5 + $0x880] sm:$0xff]  ;;  %v408_v27 = vld [vmem:[#allocation5 + $0x958] sm:$0xff]  ;;  %v414_v36 = vld [vmem:[#allocation5 + $0x988] sm:$0xff] }
  0x8d   :  { %3472 = vmatpush1.bf16.msra.mxu1 %v3471_v20  ;;  %3218 = vmatprep.subr.bf16.mxu0 %v3217_v21  ;;  %v389_v20 = vld [vmem:[#allocation5 + $0x8c0] sm:$0xff]  ;;  %v383_v21 = vld [vmem:[#allocation5 + $0x890] sm:$0xff]  ;;  %v3497_v34 = vpack.c.bf16 %v408_v27, %v400_v26  ;;  %v416_v38 = vld [vmem:[#allocation5 + $0x998] sm:$0xff] }
  0x8e   :  { %3474 = vmatprep.subr.bf16.mxu1 %v3473_v25  ;;  %v406_v25 = vld [vmem:[#allocation5 + $0x948] sm:$0xff]  ;;  %v3239_v28 = vpack.c.bf16 %v389_v20, %v381_v19  ;;  %v3495_v29 = vpack.c.bf16 %v391_v23, %v383_v21  ;;  %v424_v39 = vld [vmem:[#allocation5 + $0x9d8] sm:$0xff]  ;;  %v423_v47 = vld [vmem:[#allocation5 + $0x9d0] sm:$0xff] }
  0x8f   :  { %v3241_v30 = vpack.c.bf16 %v406_v25, %v398_v24  ;;  %v3501_v46 = vpack.c.bf16 %v424_v39, %v416_v38  ;;  %v430_v48 = vld [vmem:[#allocation5 + $0xa08] sm:$0xff]  ;;  %v432_v50 = vld [vmem:[#allocation5 + $0xa18] sm:$0xff]  ;;  %v439_v59 = vld [vmem:[#allocation5 + $0xa50] sm:$0xff] }
  0x90   :  { %3220 = vmatpush1.bf16.msra.mxu0 %v3219_v31  ;;  %v397_v31 = vld [vmem:[#allocation5 + $0x900] sm:$0xff]  ;;  %v440_v51 = vld [vmem:[#allocation5 + $0xa58] sm:$0xff]  ;;  %v446_v60 = vld [vmem:[#allocation5 + $0xa88] sm:$0xff] }
  0x91   :  { %3476 = vmatpush1.bf16.msra.mxu1 %v3475_v32  ;;  %3222 = vmatprep.subr.bf16.mxu0 %v3221_v33  ;;  %v405_v32 = vld [vmem:[#allocation5 + $0x940] sm:$0xff]  ;;  %v399_v33 = vld [vmem:[#allocation5 + $0x910] sm:$0xff]  ;;  %v3505_v58 = vpack.c.bf16 %v440_v51, %v432_v50  ;;  %v448_v62 = vld [vmem:[#allocation5 + $0xa98] sm:$0xff] }
  0x92   :  { %3478 = vmatprep.subr.bf16.mxu1 %v3477_v37  ;;  %v422_v37 = vld [vmem:[#allocation5 + $0x9c8] sm:$0xff]  ;;  %v3243_v40 = vpack.c.bf16 %v405_v32, %v397_v31  ;;  %v3499_v41 = vpack.c.bf16 %v407_v35, %v399_v33  ;;  %v456_v63 = vld [vmem:[#allocation5 + $0xad8] sm:$0xff]  ;;  %v445_v1 = vld [vmem:[#allocation5 + $0xa80] sm:$0xff] }
  0x93   :  { %v3245_v42 = vpack.c.bf16 %v422_v37, %v414_v36  ;;  %v94_v2 = vld [vmem:[#allocation2 + $0x48] sm:$0xff]  ;;  %v447_v6 = vld [vmem:[#allocation5 + $0xa90] sm:$0xff]  ;;  %v3509_v8 = vpack.c.bf16 %v456_v63, %v448_v62  ;;  %v93_v11 = vld [vmem:[#allocation2 + $0x40] sm:$0xff] }
  0x94   :  { %3224 = vmatpush1.bf16.msra.mxu0 %v3223_v43  ;;  %v413_v43 = vld [vmem:[#allocation5 + $0x980] sm:$0xff]  ;;  %v455_v7 = vld [vmem:[#allocation5 + $0xad0] sm:$0xff]  ;;  %v470_v10 = vld [vmem:[#allocation5 + $0xb48] sm:$0xff] }
  0x95   :  { %3480 = vmatpush1.bf16.msra.mxu1 %v3479_v44  ;;  %3226 = vmatprep.subr.bf16.mxu0 %v3225_v45  ;;  %v421_v44 = vld [vmem:[#allocation5 + $0x9c0] sm:$0xff]  ;;  %v415_v45 = vld [vmem:[#allocation5 + $0x990] sm:$0xff]  ;;  %v464_v12 = vld [vmem:[#allocation5 + $0xb18] sm:$0xff] }
  0x96   :  { %3482 = vmatprep.subr.bf16.mxu1 %v3481_v49  ;;  %v438_v49 = vld [vmem:[#allocation5 + $0xa48] sm:$0xff]  ;;  %v3247_v52 = vpack.c.bf16 %v421_v44, %v413_v43  ;;  %v3503_v53 = vpack.c.bf16 %v423_v47, %v415_v45  ;;  %v472_v13 = vld [vmem:[#allocation5 + $0xb58] sm:$0xff]  ;;  %v469_v19 = vld [vmem:[#allocation5 + $0xb40] sm:$0xff] }
  0x97   :  { %v3249_v54 = vpack.c.bf16 %v438_v49, %v430_v48  ;;  %v463_v20 = vld [vmem:[#allocation5 + $0xb10] sm:$0xff]  ;;  %v101_v21 = vld [vmem:[#allocation2 + $0x80] sm:$0xff]  ;;  %v478_v24 = vld [vmem:[#allocation5 + $0xb88] sm:$0xff] }
  0x98   :  { %3228 = vmatpush1.bf16.msra.mxu0 %v3227_v55  ;;  %v429_v55 = vld [vmem:[#allocation5 + $0xa00] sm:$0xff]  ;;  %v471_v23 = vld [vmem:[#allocation5 + $0xb50] sm:$0xff]  ;;  %v486_v25 = vld [vmem:[#allocation5 + $0xbc8] sm:$0xff] }
  0x99   :  { %3484 = vmatpush1.bf16.msra.mxu1 %v3483_v56  ;;  %3230 = vmatprep.subr.bf16.mxu0 %v3229_v57  ;;  %v437_v56 = vld [vmem:[#allocation5 + $0xa40] sm:$0xff]  ;;  %v431_v57 = vld [vmem:[#allocation5 + $0xa10] sm:$0xff]  ;;  %v480_v26 = vld [vmem:[#allocation5 + $0xb98] sm:$0xff]  ;;  %v3261_v31 = vpack.c.bf16 %v486_v25, %v478_v24 }
  0x9a   :  { %3486 = vmatprep.subr.bf16.mxu1 %v3485_v61  ;;  %v454_v61 = vld [vmem:[#allocation5 + $0xac8] sm:$0xff]  ;;  %v3251_v0 = vpack.c.bf16 %v437_v56, %v429_v55  ;;  %v488_v27 = vld [vmem:[#allocation5 + $0xbd8] sm:$0xff]  ;;  %v477_v32 = vld [vmem:[#allocation5 + $0xb80] sm:$0xff] }
  0x9b   :  { %v485_v33 = vld [vmem:[#allocation5 + $0xbc0] sm:$0xff]  ;;  %v3517_v35 = vpack.c.bf16 %v488_v27, %v480_v26  ;;  %v487_v36 = vld [vmem:[#allocation5 + $0xbd0] sm:$0xff]  ;;  %v494_v37 = vld [vmem:[#allocation5 + $0xc08] sm:$0xff] }
  0x9c   :  { %3232 = vmatpush1.bf16.msra.mxu0 %v3231_v3  ;;  %v3507_v3 = vpack.c.bf16 %v439_v59, %v431_v57  ;;  %v502_v38 = vld [vmem:[#allocation5 + $0xc48] sm:$0xff]  ;;  %v496_v39 = vld [vmem:[#allocation5 + $0xc18] sm:$0xff]  ;;  %v493_v44 = vld [vmem:[#allocation5 + $0xc00] sm:$0xff] }
  0x9d   :  { %3488 = vmatpush1.bf16.msra.mxu1 %v3487_v4  ;;  %3234 = vmatprep.subr.bf16.mxu0 %v3233_v5  ;;  %v3253_v4 = vpack.c.bf16 %v454_v61, %v446_v60  ;;  %v453_v5 = vld [vmem:[#allocation5 + $0xac0] sm:$0xff]  ;;  %v3265_v43 = vpack.c.bf16 %v502_v38, %v494_v37  ;;  %v503_v48 = vld [vmem:[#allocation5 + $0xc50] sm:$0xff]  ;;  %v510_v49 = vld [vmem:[#allocation5 + $0xc88] sm:$0xff] }
  0x9e   :  { %3490 = vmatprep.subr.bf16.mxu1 %v3489_v9  ;;  %v462_v9 = vld [vmem:[#allocation5 + $0xb08] sm:$0xff]  ;;  %v3255_v14 = vpack.c.bf16 %v453_v5, %v445_v1  ;;  %v501_v45 = vld [vmem:[#allocation5 + $0xc40] sm:$0xff]  ;;  %v512_v51 = vld [vmem:[#allocation5 + $0xc98] sm:$0xff] }
  0x9f   :  { %1240 = vmatmul.mubr.f32.vlgmr.msra.gmra.mrb[0].mxu0 %v85_v15  ;;  %v518_v50 = vld [vmem:[#allocation5 + $0xcc8] sm:$0xff]  ;;  %v509_v56 = vld [vmem:[#allocation5 + $0xc80] sm:$0xff]  ;;  %v519_v60 = vld [vmem:[#allocation5 + $0xcd0] sm:$0xff] }
  0xa0   :  { %3236 = vmatpush1.bf16.msra.mxu0 %v3235_v16  ;;  %1572 = vmatmul.mubr.f32.vlgmr.msra.gmra.mrb[0].mxu1 %v85_v15  ;;  %v461_v15 = vld [vmem:[#allocation5 + $0xb00] sm:$0xff]  ;;  %v102_v16 = vld [vmem:[#allocation2 + $0x88] sm:$0xff]  ;;  %v3269_v55 = vpack.c.bf16 %v518_v50, %v510_v49  ;;  %v528_v63 = vld [vmem:[#allocation5 + $0xd18] sm:$0xff] }
  0xa1   :  { %3492 = vmatpush1.bf16.msra.mxu1 %v3491_v17  ;;  %3238 = vmatprep.subr.bf16.mxu0 %v3237_v18  ;;  %v3511_v17 = vpack.c.bf16 %v455_v7, %v447_v6  ;;  %v3257_v18 = vpack.c.bf16 %v470_v10, %v462_v9  ;;  %v517_v57 = vld [vmem:[#allocation5 + $0xcc0] sm:$0xff]  ;;  %v526_v61 = vld [vmem:[#allocation5 + $0xd08] sm:$0xff]  ;;  %v527_v6 = vld [vmem:[#allocation5 + $0xd10] sm:$0xff] }
  0xa2   :  { %3494 = vmatprep.subr.bf16.mxu1 %v3493_v22  ;;  %1245 = vmatprep.mubr.f32.mxu0 %v94_v2  ;;  %v3513_v22 = vpack.c.bf16 %v472_v13, %v464_v12  ;;  %v534_v62 = vld [vmem:[#allocation5 + $0xd48] sm:$0xff]  ;;  %v3271_v1 = vpack.c.bf16 %v517_v57, %v509_v56  ;;  %v533_v5 = vld [vmem:[#allocation5 + $0xd40] sm:$0xff]  ;;  %v552_v12 = vld [vmem:[#allocation5 + $0xdd8] sm:$0xff] }
  0xa3   :  { %1577 = vmatprep.mubr.f32.mxu1 %v94_v2  ;;  %1246 = vmatmul.mubr.f32.gmra.mrb[2].mxu0 %v93_v11  ;;  %v542_v9 = vld [vmem:[#allocation5 + $0xd88] sm:$0xff]  ;;  %v568_v24 = vld [vmem:[#allocation5 + $0xe58] sm:$0xff]  ;;  %v599_v56 = vld [vmem:[#allocation5 + $0xf50] sm:$0xff] }
  0xa4   :  { %3240 = vmatpush1.bf16.msra.mxu0 %v3239_v28  ;;  %1578 = vmatmul.mubr.f32.gmra.mrb[2].mxu1 %v93_v11  ;;  %v88_v28 = vld [vmem:[#allocation2 + $0x18] sm:$0xff]  ;;  %v550_v10 = vld [vmem:[#allocation5 + $0xdc8] sm:$0xff] }
  0xa5   :  { %3496 = vmatpush1.bf16.msra.mxu1 %v3495_v29  ;;  %3242 = vmatprep.subr.bf16.mxu0 %v3241_v30  ;;  %v3259_v29 = vpack.c.bf16 %v469_v19, %v461_v15  ;;  %v3515_v30 = vpack.c.bf16 %v471_v23, %v463_v20  ;;  %v544_v11 = vld [vmem:[#allocation5 + $0xd98] sm:$0xff]  ;;  %v3277_v15 = vpack.c.bf16 %v550_v10, %v542_v9  ;;  %v551_v20 = vld [vmem:[#allocation5 + $0xdd0] sm:$0xff]  ;;  %v606_v57 = vld [vmem:[#allocation5 + $0xf88] sm:$0xff] }
  0xa6   :  { %3498 = vmatprep.subr.bf16.mxu1 %v3497_v34  ;;  %1251 = vmatprep.mubr.f32.mxu0 %v102_v16  ;;  %v479_v34 = vld [vmem:[#allocation5 + $0xb90] sm:$0xff]  ;;  %v3533_v19 = vpack.c.bf16 %v552_v12, %v544_v11  ;;  %v560_v23 = vld [vmem:[#allocation5 + $0xe18] sm:$0xff]  ;;  %v621_v12 = vld [vmem:[#allocation5 + $0x1000] sm:$0xff] }
  0xa7   :  { %1583 = vmatprep.mubr.f32.mxu1 %v102_v16  ;;  %1252 = vmatmul.mubr.f32.gmra.mrb[4].mxu0 %v101_v21  ;;  %v541_v16 = vld [vmem:[#allocation5 + $0xd80] sm:$0xff] }
  0xa8   :  { %3244 = vmatpush1.bf16.msra.mxu0 %v3243_v40  ;;  %1584 = vmatmul.mubr.f32.gmra.mrb[4].mxu1 %v101_v21  ;;  %v504_v40 = vld [vmem:[#allocation5 + $0xc58] sm:$0xff]  ;;  %v558_v21 = vld [vmem:[#allocation5 + $0xe08] sm:$0xff] }
  0xa9   :  { %3500 = vmatpush1.bf16.msra.mxu1 %v3499_v41  ;;  %3246 = vmatprep.subr.bf16.mxu0 %v3245_v42  ;;  %v3263_v41 = vpack.c.bf16 %v485_v33, %v477_v32  ;;  %v3519_v42 = vpack.c.bf16 %v487_v36, %v479_v34  ;;  %v3521_v47 = vpack.c.bf16 %v504_v40, %v496_v39  ;;  %v567_v32 = vld [vmem:[#allocation5 + $0xe50] sm:$0xff]  ;;  %v574_v33 = vld [vmem:[#allocation5 + $0xe88] sm:$0xff]  ;;  %v584_v36 = vld [vmem:[#allocation5 + $0xed8] sm:$0xff] }
  0xaa   :  { %3502 = vmatprep.subr.bf16.mxu1 %v3501_v46  ;;  %1322 = vmatprep.mubr.f32.mxu0 %v88_v28  ;;  %v495_v46 = vld [vmem:[#allocation5 + $0xc10] sm:$0xff]  ;;  %v582_v34 = vld [vmem:[#allocation5 + $0xec8] sm:$0xff]  ;;  %v573_v40 = vld [vmem:[#allocation5 + $0xe80] sm:$0xff] }
  0xab   :  { %1654 = vmatprep.mubr.f32.mxu1 %v88_v28  ;;  %v557_v28 = vld [vmem:[#allocation5 + $0xe00] sm:$0xff]  ;;  %v3285_v39 = vpack.c.bf16 %v582_v34, %v574_v33  ;;  %v664_v33 = vld [vmem:[#allocation5 + $0x1158] sm:$0xff] }
  0xac   :  { %3248 = vmatpush1.bf16.msra.mxu0 %v3247_v52  ;;  %v520_v52 = vld [vmem:[#allocation5 + $0xcd8] sm:$0xff] }
  0xad   :  { %3504 = vmatpush1.bf16.msra.mxu1 %v3503_v53  ;;  %3250 = vmatprep.subr.bf16.mxu0 %v3249_v54  ;;  %v3267_v53 = vpack.c.bf16 %v501_v45, %v493_v44  ;;  %v3523_v54 = vpack.c.bf16 %v503_v48, %v495_v46  ;;  %v3525_v59 = vpack.c.bf16 %v520_v52, %v512_v51  ;;  %v583_v44 = vld [vmem:[#allocation5 + $0xed0] sm:$0xff]  ;;  %v590_v45 = vld [vmem:[#allocation5 + $0xf08] sm:$0xff]  ;;  %v600_v48 = vld [vmem:[#allocation5 + $0xf58] sm:$0xff] }
  0xae   :  { %3506 = vmatprep.subr.bf16.mxu1 %v3505_v58  ;;  %v511_v58 = vld [vmem:[#allocation5 + $0xc90] sm:$0xff]  ;;  %v598_v46 = vld [vmem:[#allocation5 + $0xf48] sm:$0xff]  ;;  %v589_v52 = vld [vmem:[#allocation5 + $0xf00] sm:$0xff] }
  0xaf   :  { %v3527_v2 = vpack.c.bf16 %v519_v60, %v511_v58  ;;  %v3289_v51 = vpack.c.bf16 %v598_v46, %v590_v45  ;;  %v614_v58 = vld [vmem:[#allocation5 + $0xfc8] sm:$0xff]  ;;  %v616_v60 = vld [vmem:[#allocation5 + $0xfd8] sm:$0xff] }
  0xb0   :  { %3252 = vmatpush1.bf16.msra.mxu0 %v3251_v0  ;;  %v536_v0 = vld [vmem:[#allocation5 + $0xd58] sm:$0xff]  ;;  %v678_v45 = vld [vmem:[#allocation5 + $0x11c8] sm:$0xff] }
  0xb1   :  { %3508 = vmatpush1.bf16.msra.mxu1 %v3507_v3  ;;  %3254 = vmatprep.subr.bf16.mxu0 %v3253_v4  ;;  %v3273_v3 = vpack.c.bf16 %v534_v62, %v526_v61  ;;  %v525_v4 = vld [vmem:[#allocation5 + $0xd00] sm:$0xff]  ;;  %v3529_v7 = vpack.c.bf16 %v536_v0, %v528_v63  ;;  %v3293_v63 = vpack.c.bf16 %v614_v58, %v606_v57  ;;  %v96_v34 = vld [vmem:[#allocation2 + $0x58] sm:$0xff]  ;;  %v679_v57 = vld [vmem:[#allocation5 + $0x11d0] sm:$0xff] }
  0xb2   :  { %3510 = vmatprep.subr.bf16.mxu1 %v3509_v8  ;;  %v535_v8 = vld [vmem:[#allocation5 + $0xd50] sm:$0xff]  ;;  %v3275_v13 = vpack.c.bf16 %v533_v5, %v525_v4  ;;  %v605_v0 = vld [vmem:[#allocation5 + $0xf80] sm:$0xff]  ;;  %v622_v5 = vld [vmem:[#allocation5 + $0x1008] sm:$0xff] }
  0xb3   :  { %v615_v4 = vld [vmem:[#allocation5 + $0xfd0] sm:$0xff]  ;;  %v672_v46 = vld [vmem:[#allocation5 + $0x1198] sm:$0xff]  ;;  %v686_v58 = vld [vmem:[#allocation5 + $0x1208] sm:$0xff] }
  0xb4   :  { %3256 = vmatpush1.bf16.msra.mxu0 %v3255_v14  ;;  %v3531_v14 = vpack.c.bf16 %v535_v8, %v527_v6  ;;  %v630_v6 = vld [vmem:[#allocation5 + $0x1048] sm:$0xff]  ;;  %v632_v8 = vld [vmem:[#allocation5 + $0x1058] sm:$0xff] }
  0xb5   :  { %3512 = vmatpush1.bf16.msra.mxu1 %v3511_v17  ;;  %3258 = vmatprep.subr.bf16.mxu0 %v3257_v18  ;;  %v549_v17 = vld [vmem:[#allocation5 + $0xdc0] sm:$0xff]  ;;  %v543_v18 = vld [vmem:[#allocation5 + $0xd90] sm:$0xff]  ;;  %v3297_v11 = vpack.c.bf16 %v630_v6, %v622_v5 }
  0xb6   :  { %3514 = vmatprep.subr.bf16.mxu1 %v3513_v22  ;;  %v566_v22 = vld [vmem:[#allocation5 + $0xe48] sm:$0xff]  ;;  %v3279_v25 = vpack.c.bf16 %v549_v17, %v541_v16  ;;  %v3535_v26 = vpack.c.bf16 %v551_v20, %v543_v18  ;;  %v631_v16 = vld [vmem:[#allocation5 + $0x1050] sm:$0xff]  ;;  %v648_v20 = vld [vmem:[#allocation5 + $0x10d8] sm:$0xff] }
  0xb7   :  { %v3281_v27 = vpack.c.bf16 %v566_v22, %v558_v21  ;;  %v638_v17 = vld [vmem:[#allocation5 + $0x1088] sm:$0xff]  ;;  %v87_v21 = vld [vmem:[#allocation2 + $0x10] sm:$0xff] }
  0xb8   :  { %3260 = vmatpush1.bf16.msra.mxu0 %v3259_v29  ;;  %v565_v29 = vld [vmem:[#allocation5 + $0xe40] sm:$0xff]  ;;  %v646_v18 = vld [vmem:[#allocation5 + $0x10c8] sm:$0xff]  ;;  %v695_v6 = vld [vmem:[#allocation5 + $0x1250] sm:$0xff] }
  0xb9   :  { %3516 = vmatpush1.bf16.msra.mxu1 %v3515_v30  ;;  %3262 = vmatprep.subr.bf16.mxu0 %v3261_v31  ;;  %v559_v30 = vld [vmem:[#allocation5 + $0xe10] sm:$0xff]  ;;  %v3537_v31 = vpack.c.bf16 %v568_v24, %v560_v23  ;;  %v3283_v37 = vpack.c.bf16 %v565_v29, %v557_v28  ;;  %v3301_v24 = vpack.c.bf16 %v646_v18, %v638_v17 }
  0xba   :  { %3518 = vmatprep.subr.bf16.mxu1 %v3517_v35  ;;  %v576_v35 = vld [vmem:[#allocation5 + $0xe98] sm:$0xff]  ;;  %v3539_v38 = vpack.c.bf16 %v567_v32, %v559_v30  ;;  %v647_v29 = vld [vmem:[#allocation5 + $0x10d0] sm:$0xff]  ;;  %v654_v30 = vld [vmem:[#allocation5 + $0x1108] sm:$0xff] }
  0xbb   :  { %v656_v32 = vld [vmem:[#allocation5 + $0x1118] sm:$0xff]  ;;  %v711_v18 = vld [vmem:[#allocation5 + $0x12d0] sm:$0xff] }
  0xbc   :  { %3264 = vmatpush1.bf16.msra.mxu0 %v3263_v41  ;;  %v581_v41 = vld [vmem:[#allocation5 + $0xec0] sm:$0xff] }
  0xbd   :  { %3520 = vmatpush1.bf16.msra.mxu1 %v3519_v42  ;;  %3266 = vmatprep.subr.bf16.mxu0 %v3265_v43  ;;  %v575_v42 = vld [vmem:[#allocation5 + $0xe90] sm:$0xff]  ;;  %v3541_v43 = vpack.c.bf16 %v584_v36, %v576_v35  ;;  %v3287_v49 = vpack.c.bf16 %v581_v41, %v573_v40  ;;  %v661_v40 = vld [vmem:[#allocation5 + $0x1140] sm:$0xff] }
  0xbe   :  { %3522 = vmatprep.subr.bf16.mxu1 %v3521_v47  ;;  %v592_v47 = vld [vmem:[#allocation5 + $0xf18] sm:$0xff]  ;;  %v3543_v50 = vpack.c.bf16 %v583_v44, %v575_v42  ;;  %v95_v36 = vld [vmem:[#allocation2 + $0x50] sm:$0xff]  ;;  %v3561_v42 = vpack.c.bf16 %v664_v33, %v656_v32  ;;  %v670_v44 = vld [vmem:[#allocation5 + $0x1188] sm:$0xff] }
  0xbf   :  { %v655_v41 = vld [vmem:[#allocation5 + $0x1110] sm:$0xff]  ;;  %v742_v32 = vld [vmem:[#allocation5 + $0x13c8] sm:$0xff]  ;;  %v736_v33 = vld [vmem:[#allocation5 + $0x1398] sm:$0xff] }
  0xc0   :  { %3268 = vmatpush1.bf16.msra.mxu0 %v3267_v53  ;;  %v597_v53 = vld [vmem:[#allocation5 + $0xf40] sm:$0xff] }
  0xc1   :  { %3524 = vmatpush1.bf16.msra.mxu1 %v3523_v54  ;;  %3270 = vmatprep.subr.bf16.mxu0 %v3269_v55  ;;  %v591_v54 = vld [vmem:[#allocation5 + $0xf10] sm:$0xff]  ;;  %v3545_v55 = vpack.c.bf16 %v600_v48, %v592_v47  ;;  %v3291_v61 = vpack.c.bf16 %v597_v53, %v589_v52  ;;  %v680_v47 = vld [vmem:[#allocation5 + $0x11d8] sm:$0xff]  ;;  %v3309_v52 = vpack.c.bf16 %v678_v45, %v670_v44  ;;  %v669_v53 = vld [vmem:[#allocation5 + $0x1180] sm:$0xff] }
  0xc2   :  { %3526 = vmatprep.subr.bf16.mxu1 %v3525_v59  ;;  %v608_v59 = vld [vmem:[#allocation5 + $0xf98] sm:$0xff]  ;;  %v3547_v62 = vpack.c.bf16 %v599_v56, %v591_v54  ;;  %v677_v54 = vld [vmem:[#allocation5 + $0x11c0] sm:$0xff]  ;;  %v3565_v56 = vpack.c.bf16 %v680_v47, %v672_v46  ;;  %v758_v44 = vld [vmem:[#allocation5 + $0x1448] sm:$0xff] }
  0xc3   :  { %v104_v48 = vld [vmem:[#allocation2 + $0x98] sm:$0xff] }
  0xc4   :  { %3272 = vmatpush1.bf16.msra.mxu0 %v3271_v1  ;;  %v613_v1 = vld [vmem:[#allocation5 + $0xfc0] sm:$0xff]  ;;  %v752_v45 = vld [vmem:[#allocation5 + $0x1418] sm:$0xff] }
  0xc5   :  { %3528 = vmatpush1.bf16.msra.mxu1 %v3527_v2  ;;  %3274 = vmatprep.subr.bf16.mxu0 %v3273_v3  ;;  %v607_v2 = vld [vmem:[#allocation5 + $0xf90] sm:$0xff]  ;;  %v3549_v3 = vpack.c.bf16 %v616_v60, %v608_v59  ;;  %v3295_v9 = vpack.c.bf16 %v613_v1, %v605_v0  ;;  %v694_v59 = vld [vmem:[#allocation5 + $0x1248] sm:$0xff]  ;;  %v688_v60 = vld [vmem:[#allocation5 + $0x1218] sm:$0xff] }
  0xc6   :  { %3530 = vmatprep.subr.bf16.mxu1 %v3529_v7  ;;  %v624_v7 = vld [vmem:[#allocation5 + $0x1018] sm:$0xff]  ;;  %v3551_v10 = vpack.c.bf16 %v615_v4, %v607_v2  ;;  %v3313_v1 = vpack.c.bf16 %v694_v59, %v686_v58  ;;  %v685_v2 = vld [vmem:[#allocation5 + $0x1200] sm:$0xff]  ;;  %v687_v4 = vld [vmem:[#allocation5 + $0x1210] sm:$0xff] }
  0xc7   :  { %v760_v46 = vld [vmem:[#allocation5 + $0x1458] sm:$0xff] }
  0xc8   :  { %3276 = vmatpush1.bf16.msra.mxu0 %v3275_v13  ;;  %v629_v13 = vld [vmem:[#allocation5 + $0x1040] sm:$0xff]  ;;  %v776_v58 = vld [vmem:[#allocation5 + $0x14d8] sm:$0xff] }
  0xc9   :  { %3532 = vmatpush1.bf16.msra.mxu1 %v3531_v14  ;;  %3278 = vmatprep.subr.bf16.mxu0 %v3277_v15  ;;  %v623_v14 = vld [vmem:[#allocation5 + $0x1010] sm:$0xff]  ;;  %v3553_v15 = vpack.c.bf16 %v632_v8, %v624_v7  ;;  %v3299_v22 = vpack.c.bf16 %v629_v13, %v621_v12  ;;  %v702_v7 = vld [vmem:[#allocation5 + $0x1288] sm:$0xff]  ;;  %v3571_v12 = vpack.c.bf16 %v695_v6, %v687_v4  ;;  %v792_v6 = vld [vmem:[#allocation5 + $0x1558] sm:$0xff] }
  0xca   :  { %3534 = vmatprep.subr.bf16.mxu1 %v3533_v19  ;;  %v640_v19 = vld [vmem:[#allocation5 + $0x1098] sm:$0xff]  ;;  %v3555_v23 = vpack.c.bf16 %v631_v16, %v623_v14  ;;  %v710_v8 = vld [vmem:[#allocation5 + $0x12c8] sm:$0xff]  ;;  %v701_v14 = vld [vmem:[#allocation5 + $0x1280] sm:$0xff] }
  0xcb   :  { %v3557_v28 = vpack.c.bf16 %v648_v20, %v640_v19  ;;  %v3317_v13 = vpack.c.bf16 %v710_v8, %v702_v7  ;;  %v703_v16 = vld [vmem:[#allocation5 + $0x1290] sm:$0xff]  ;;  %v718_v19 = vld [vmem:[#allocation5 + $0x1308] sm:$0xff] }
  0xcc   :  { %3280 = vmatpush1.bf16.msra.mxu0 %v3279_v25  ;;  %v637_v25 = vld [vmem:[#allocation5 + $0x1080] sm:$0xff]  ;;  %v726_v20 = vld [vmem:[#allocation5 + $0x1348] sm:$0xff] }
  0xcd   :  { %3536 = vmatpush1.bf16.msra.mxu1 %v3535_v26  ;;  %3282 = vmatprep.subr.bf16.mxu0 %v3281_v27  ;;  %v645_v26 = vld [vmem:[#allocation5 + $0x10c0] sm:$0xff]  ;;  %v639_v27 = vld [vmem:[#allocation5 + $0x1090] sm:$0xff]  ;;  %v790_v4 = vld [vmem:[#allocation5 + $0x1548] sm:$0xff] }
  0xce   :  { %3538 = vmatprep.subr.bf16.mxu1 %v3537_v31  ;;  %v662_v31 = vld [vmem:[#allocation5 + $0x1148] sm:$0xff]  ;;  %v3303_v35 = vpack.c.bf16 %v645_v26, %v637_v25  ;;  %v3321_v25 = vpack.c.bf16 %v726_v20, %v718_v19  ;;  %v717_v26 = vld [vmem:[#allocation5 + $0x1300] sm:$0xff] }
  0xd0   :  { %3284 = vmatpush1.bf16.msra.mxu0 %v3283_v37  ;;  %v3559_v37 = vpack.c.bf16 %v647_v29, %v639_v27  ;;  %v725_v27 = vld [vmem:[#allocation5 + $0x1340] sm:$0xff] }
  0xd1   :  { %3540 = vmatpush1.bf16.msra.mxu1 %v3539_v38  ;;  %3286 = vmatprep.subr.bf16.mxu0 %v3285_v39  ;;  %v3305_v38 = vpack.c.bf16 %v662_v31, %v654_v30  ;;  %v653_v39 = vld [vmem:[#allocation5 + $0x1100] sm:$0xff]  ;;  %v727_v30 = vld [vmem:[#allocation5 + $0x1350] sm:$0xff]  ;;  %v734_v31 = vld [vmem:[#allocation5 + $0x1388] sm:$0xff] }
  0xd2   :  { %3542 = vmatprep.subr.bf16.mxu1 %v3541_v43  ;;  %v663_v43 = vld [vmem:[#allocation5 + $0x1150] sm:$0xff] }
  0xd4   :  { %3288 = vmatpush1.bf16.msra.mxu0 %v3287_v49  ;;  %v3307_v49 = vpack.c.bf16 %v661_v40, %v653_v39  ;;  %v741_v39 = vld [vmem:[#allocation5 + $0x13c0] sm:$0xff]  ;;  %v735_v40 = vld [vmem:[#allocation5 + $0x1390] sm:$0xff] }
  0xd5   :  { %3544 = vmatpush1.bf16.msra.mxu1 %v3543_v50  ;;  %3290 = vmatprep.subr.bf16.mxu0 %v3289_v51  ;;  %v103_v50 = vld [vmem:[#allocation2 + $0x90] sm:$0xff]  ;;  %v3563_v51 = vpack.c.bf16 %v663_v43, %v655_v41  ;;  %v750_v43 = vld [vmem:[#allocation5 + $0x1408] sm:$0xff] }
  0xd6   :  { %3546 = vmatprep.subr.bf16.mxu1 %v3545_v55  ;;  %v671_v55 = vld [vmem:[#allocation5 + $0x1190] sm:$0xff] }
  0xd7   :  { %v3567_v0 = vpack.c.bf16 %v679_v57, %v671_v55  ;;  %v766_v55 = vld [vmem:[#allocation5 + $0x1488] sm:$0xff]  ;;  %v768_v57 = vld [vmem:[#allocation5 + $0x1498] sm:$0xff] }
  0xd8   :  { %3292 = vmatpush1.bf16.msra.mxu0 %v3291_v61  ;;  %v696_v61 = vld [vmem:[#allocation5 + $0x1258] sm:$0xff] }
  0xd9   :  { %3548 = vmatpush1.bf16.msra.mxu1 %v3547_v62  ;;  %3294 = vmatprep.subr.bf16.mxu0 %v3293_v63  ;;  %v90_v62 = vld [vmem:[#allocation2 + $0x28] sm:$0xff]  ;;  %v3311_v63 = vpack.c.bf16 %v677_v54, %v669_v53  ;;  %v3569_v5 = vpack.c.bf16 %v696_v61, %v688_v60  ;;  %v3585_v53 = vpack.c.bf16 %v760_v46, %v752_v45  ;;  %v759_v54 = vld [vmem:[#allocation5 + $0x1450] sm:$0xff]  ;;  %v829_v46 = vld [vmem:[#allocation5 + $0x1680] sm:$0xff] }
  0xda   :  { %3550 = vmatprep.subr.bf16.mxu1 %v3549_v3  ;;  %v693_v3 = vld [vmem:[#allocation5 + $0x1240] sm:$0xff] }
  0xdc   :  { %3296 = vmatpush1.bf16.msra.mxu0 %v3295_v9  ;;  %v704_v9 = vld [vmem:[#allocation5 + $0x1298] sm:$0xff] }
  0xdd   :  { %3552 = vmatpush1.bf16.msra.mxu1 %v3551_v10  ;;  %3298 = vmatprep.subr.bf16.mxu0 %v3297_v11  ;;  %v712_v10 = vld [vmem:[#allocation5 + $0x12d8] sm:$0xff]  ;;  %v3315_v11 = vpack.c.bf16 %v693_v3, %v685_v2  ;;  %v775_v2 = vld [vmem:[#allocation5 + $0x14d0] sm:$0xff]  ;;  %v782_v3 = vld [vmem:[#allocation5 + $0x1508] sm:$0xff] }
  0xde   :  { %3554 = vmatprep.subr.bf16.mxu1 %v3553_v15  ;;  %v709_v15 = vld [vmem:[#allocation5 + $0x12c0] sm:$0xff]  ;;  %v3573_v17 = vpack.c.bf16 %v712_v10, %v704_v9  ;;  %v3337_v9 = vpack.c.bf16 %v790_v4, %v782_v3 }
  0xdf   :  { %1323 = vmatmul.mubr.f32.vlgmr.msra.gmra.mrb[0].mxu0 %v87_v21  ;;  %v781_v10 = vld [vmem:[#allocation5 + $0x1500] sm:$0xff] }
  0xe0   :  { %3300 = vmatpush1.bf16.msra.mxu0 %v3299_v22  ;;  %1655 = vmatmul.mubr.f32.vlgmr.msra.gmra.mrb[0].mxu1 %v87_v21  ;;  %v720_v21 = vld [vmem:[#allocation5 + $0x1318] sm:$0xff] }
  0xe1   :  { %3556 = vmatpush1.bf16.msra.mxu1 %v3555_v23  ;;  %3302 = vmatprep.subr.bf16.mxu0 %v3301_v24  ;;  %v728_v22 = vld [vmem:[#allocation5 + $0x1358] sm:$0xff]  ;;  %v3319_v23 = vpack.c.bf16 %v709_v15, %v701_v14  ;;  %v3575_v24 = vpack.c.bf16 %v711_v18, %v703_v16  ;;  %v791_v14 = vld [vmem:[#allocation5 + $0x1550] sm:$0xff]  ;;  %v798_v15 = vld [vmem:[#allocation5 + $0x1588] sm:$0xff] }
  0xe2   :  { %3558 = vmatprep.subr.bf16.mxu1 %v3557_v28  ;;  %1328 = vmatprep.mubr.f32.mxu0 %v96_v34  ;;  %v719_v28 = vld [vmem:[#allocation5 + $0x1310] sm:$0xff]  ;;  %v3577_v29 = vpack.c.bf16 %v728_v22, %v720_v21  ;;  %v806_v16 = vld [vmem:[#allocation5 + $0x15c8] sm:$0xff]  ;;  %v808_v18 = vld [vmem:[#allocation5 + $0x15d8] sm:$0xff] }
  0xe3   :  { %1660 = vmatprep.mubr.f32.mxu1 %v96_v34  ;;  %1329 = vmatmul.mubr.f32.gmra.mrb[2].mxu0 %v95_v36  ;;  %v744_v34 = vld [vmem:[#allocation5 + $0x13d8] sm:$0xff]  ;;  %v3341_v21 = vpack.c.bf16 %v806_v16, %v798_v15  ;;  %v797_v22 = vld [vmem:[#allocation5 + $0x1580] sm:$0xff] }
  0xe4   :  { %3304 = vmatpush1.bf16.msra.mxu0 %v3303_v35  ;;  %1661 = vmatmul.mubr.f32.gmra.mrb[2].mxu1 %v95_v36  ;;  %v3323_v35 = vpack.c.bf16 %v725_v27, %v717_v26  ;;  %v3579_v36 = vpack.c.bf16 %v727_v30, %v719_v28  ;;  %v3581_v41 = vpack.c.bf16 %v744_v34, %v736_v33  ;;  %v807_v26 = vld [vmem:[#allocation5 + $0x15d0] sm:$0xff]  ;;  %v814_v27 = vld [vmem:[#allocation5 + $0x1608] sm:$0xff]  ;;  %v824_v30 = vld [vmem:[#allocation5 + $0x1658] sm:$0xff] }
  0xe5   :  { %3560 = vmatpush1.bf16.msra.mxu1 %v3559_v37  ;;  %3306 = vmatprep.subr.bf16.mxu0 %v3305_v38  ;;  %v3325_v37 = vpack.c.bf16 %v742_v32, %v734_v31  ;;  %v733_v38 = vld [vmem:[#allocation5 + $0x1380] sm:$0xff]  ;;  %v822_v28 = vld [vmem:[#allocation5 + $0x1648] sm:$0xff] }
  0xe6   :  { %3562 = vmatprep.subr.bf16.mxu1 %v3561_v42  ;;  %1334 = vmatprep.mubr.f32.mxu0 %v104_v48  ;;  %v743_v42 = vld [vmem:[#allocation5 + $0x13d0] sm:$0xff]  ;;  %v3327_v47 = vpack.c.bf16 %v741_v39, %v733_v38  ;;  %v3345_v33 = vpack.c.bf16 %v822_v28, %v814_v27  ;;  %v813_v34 = vld [vmem:[#allocation5 + $0x1600] sm:$0xff]  ;;  %v830_v39 = vld [vmem:[#allocation5 + $0x1688] sm:$0xff] }
  0xe7   :  { %1666 = vmatprep.mubr.f32.mxu1 %v104_v48  ;;  %1335 = vmatmul.mubr.f32.gmra.mrb[4].mxu0 %v103_v50  ;;  %v3583_v48 = vpack.c.bf16 %v743_v42, %v735_v40  ;;  %v823_v38 = vld [vmem:[#allocation5 + $0x1650] sm:$0xff]  ;;  %v838_v40 = vld [vmem:[#allocation5 + $0x16c8] sm:$0xff]  ;;  %v840_v42 = vld [vmem:[#allocation5 + $0x16d8] sm:$0xff] }
  0xe8   :  { %3308 = vmatpush1.bf16.msra.mxu0 %v3307_v49  ;;  %1667 = vmatmul.mubr.f32.gmra.mrb[4].mxu1 %v103_v50  ;;  %v3329_v49 = vpack.c.bf16 %v758_v44, %v750_v43  ;;  %v749_v50 = vld [vmem:[#allocation5 + $0x1400] sm:$0xff]  ;;  %v3349_v45 = vpack.c.bf16 %v838_v40, %v830_v39  ;;  %v920_v39 = vld [vmem:[#allocation5 + $0x1958] sm:$0xff]  ;;  %v98_v40 = vld [vmem:[#allocation2 + $0x68] sm:$0xff] }
  0xe9   :  { %3564 = vmatpush1.bf16.msra.mxu1 %v3563_v51  ;;  %3310 = vmatprep.subr.bf16.mxu0 %v3309_v52  ;;  %v757_v51 = vld [vmem:[#allocation5 + $0x1440] sm:$0xff]  ;;  %v751_v52 = vld [vmem:[#allocation5 + $0x1410] sm:$0xff] }
  0xea   :  { %3566 = vmatprep.subr.bf16.mxu1 %v3565_v56  ;;  %1405 = vmatprep.mubr.f32.mxu0 %v90_v62  ;;  %v774_v56 = vld [vmem:[#allocation5 + $0x14c8] sm:$0xff]  ;;  %v3331_v59 = vpack.c.bf16 %v757_v51, %v749_v50  ;;  %v3587_v60 = vpack.c.bf16 %v759_v54, %v751_v52  ;;  %v839_v50 = vld [vmem:[#allocation5 + $0x16d0] sm:$0xff]  ;;  %v856_v54 = vld [vmem:[#allocation5 + $0x1758] sm:$0xff] }
  0xeb   :  { %1737 = vmatprep.mubr.f32.mxu1 %v90_v62  ;;  %v3333_v61 = vpack.c.bf16 %v774_v56, %v766_v55  ;;  %v765_v62 = vld [vmem:[#allocation5 + $0x1480] sm:$0xff]  ;;  %v846_v51 = vld [vmem:[#allocation5 + $0x1708] sm:$0xff] }
  0xec   :  { %3312 = vmatpush1.bf16.msra.mxu0 %v3311_v63  ;;  %v773_v63 = vld [vmem:[#allocation5 + $0x14c0] sm:$0xff]  ;;  %v854_v52 = vld [vmem:[#allocation5 + $0x1748] sm:$0xff] }
  0xed   :  { %3568 = vmatpush1.bf16.msra.mxu1 %v3567_v0  ;;  %3314 = vmatprep.subr.bf16.mxu0 %v3313_v1  ;;  %v767_v0 = vld [vmem:[#allocation5 + $0x1490] sm:$0xff]  ;;  %v3589_v1 = vpack.c.bf16 %v776_v58, %v768_v57  ;;  %v3335_v7 = vpack.c.bf16 %v773_v63, %v765_v62  ;;  %v3353_v57 = vpack.c.bf16 %v854_v52, %v846_v51  ;;  %v845_v58 = vld [vmem:[#allocation5 + $0x1700] sm:$0xff]  ;;  %v862_v63 = vld [vmem:[#allocation5 + $0x1788] sm:$0xff] }
  0xee   :  { %3570 = vmatprep.subr.bf16.mxu1 %v3569_v5  ;;  %v784_v5 = vld [vmem:[#allocation5 + $0x1518] sm:$0xff]  ;;  %v3591_v8 = vpack.c.bf16 %v775_v2, %v767_v0  ;;  %v855_v62 = vld [vmem:[#allocation5 + $0x1750] sm:$0xff]  ;;  %v870_v0 = vld [vmem:[#allocation5 + $0x17c8] sm:$0xff] }
  0xef   :  { %v872_v2 = vld [vmem:[#allocation5 + $0x17d8] sm:$0xff]  ;;  %v89_v27 = vld [vmem:[#allocation2 + $0x20] sm:$0xff]  ;;  %v934_v51 = vld [vmem:[#allocation5 + $0x19c8] sm:$0xff] }
  0xf0   :  { %3316 = vmatpush1.bf16.msra.mxu0 %v3315_v11  ;;  %v789_v11 = vld [vmem:[#allocation5 + $0x1540] sm:$0xff]  ;;  %v928_v52 = vld [vmem:[#allocation5 + $0x1998] sm:$0xff] }
  0xf1   :  { %3572 = vmatpush1.bf16.msra.mxu1 %v3571_v12  ;;  %3318 = vmatprep.subr.bf16.mxu0 %v3317_v13  ;;  %v783_v12 = vld [vmem:[#allocation5 + $0x1510] sm:$0xff]  ;;  %v3593_v13 = vpack.c.bf16 %v792_v6, %v784_v5  ;;  %v3339_v19 = vpack.c.bf16 %v789_v11, %v781_v10  ;;  %v3357_v5 = vpack.c.bf16 %v870_v0, %v862_v63  ;;  %v861_v6 = vld [vmem:[#allocation5 + $0x1780] sm:$0xff]  ;;  %v878_v11 = vld [vmem:[#allocation5 + $0x1808] sm:$0xff] }
  0xf2   :  { %3574 = vmatprep.subr.bf16.mxu1 %v3573_v17  ;;  %v800_v17 = vld [vmem:[#allocation5 + $0x1598] sm:$0xff]  ;;  %v3595_v20 = vpack.c.bf16 %v791_v14, %v783_v12  ;;  %v871_v10 = vld [vmem:[#allocation5 + $0x17d0] sm:$0xff]  ;;  %v886_v12 = vld [vmem:[#allocation5 + $0x1848] sm:$0xff] }
  0xf3   :  { %v888_v14 = vld [vmem:[#allocation5 + $0x1858] sm:$0xff]  ;;  %v935_v63 = vld [vmem:[#allocation5 + $0x19d0] sm:$0xff]  ;;  %v942_v0 = vld [vmem:[#allocation5 + $0x1a08] sm:$0xff] }
  0xf4   :  { %3320 = vmatpush1.bf16.msra.mxu0 %v3319_v23  ;;  %v805_v23 = vld [vmem:[#allocation5 + $0x15c0] sm:$0xff] }
  0xf5   :  { %3576 = vmatpush1.bf16.msra.mxu1 %v3575_v24  ;;  %3322 = vmatprep.subr.bf16.mxu0 %v3321_v25  ;;  %v799_v24 = vld [vmem:[#allocation5 + $0x1590] sm:$0xff]  ;;  %v3597_v25 = vpack.c.bf16 %v808_v18, %v800_v17  ;;  %v3343_v31 = vpack.c.bf16 %v805_v23, %v797_v22  ;;  %v3361_v17 = vpack.c.bf16 %v886_v12, %v878_v11  ;;  %v877_v18 = vld [vmem:[#allocation5 + $0x1800] sm:$0xff]  ;;  %v894_v23 = vld [vmem:[#allocation5 + $0x1888] sm:$0xff] }
  0xf6   :  { %3578 = vmatprep.subr.bf16.mxu1 %v3577_v29  ;;  %v816_v29 = vld [vmem:[#allocation5 + $0x1618] sm:$0xff]  ;;  %v3599_v32 = vpack.c.bf16 %v807_v26, %v799_v24  ;;  %v887_v22 = vld [vmem:[#allocation5 + $0x1850] sm:$0xff]  ;;  %v902_v24 = vld [vmem:[#allocation5 + $0x18c8] sm:$0xff] }
  0xf7   :  { %v904_v26 = vld [vmem:[#allocation5 + $0x18d8] sm:$0xff]  ;;  %v951_v12 = vld [vmem:[#allocation5 + $0x1a50] sm:$0xff] }
  0xf8   :  { %3324 = vmatpush1.bf16.msra.mxu0 %v3323_v35  ;;  %v821_v35 = vld [vmem:[#allocation5 + $0x1640] sm:$0xff] }
  0xf9   :  { %3580 = vmatpush1.bf16.msra.mxu1 %v3579_v36  ;;  %3326 = vmatprep.subr.bf16.mxu0 %v3325_v37  ;;  %v815_v36 = vld [vmem:[#allocation5 + $0x1610] sm:$0xff]  ;;  %v3601_v37 = vpack.c.bf16 %v824_v30, %v816_v29  ;;  %v3347_v43 = vpack.c.bf16 %v821_v35, %v813_v34  ;;  %v3365_v30 = vpack.c.bf16 %v902_v24, %v894_v23 }
  0xfa   :  { %3582 = vmatprep.subr.bf16.mxu1 %v3581_v41  ;;  %v832_v41 = vld [vmem:[#allocation5 + $0x1698] sm:$0xff]  ;;  %v3603_v44 = vpack.c.bf16 %v823_v38, %v815_v36  ;;  %v903_v35 = vld [vmem:[#allocation5 + $0x18d0] sm:$0xff]  ;;  %v910_v36 = vld [vmem:[#allocation5 + $0x1908] sm:$0xff] }
  0xfb   :  { %v912_v38 = vld [vmem:[#allocation5 + $0x1918] sm:$0xff]  ;;  %v967_v24 = vld [vmem:[#allocation5 + $0x1ad0] sm:$0xff] }
  0xfc   :  { %3328 = vmatpush1.bf16.msra.mxu0 %v3327_v47  ;;  %v837_v47 = vld [vmem:[#allocation5 + $0x16c0] sm:$0xff] }
  0xfd   :  { %3584 = vmatpush1.bf16.msra.mxu1 %v3583_v48  ;;  %3330 = vmatprep.subr.bf16.mxu0 %v3329_v49  ;;  %v831_v48 = vld [vmem:[#allocation5 + $0x1690] sm:$0xff]  ;;  %v3605_v49 = vpack.c.bf16 %v840_v42, %v832_v41  ;;  %v3351_v55 = vpack.c.bf16 %v837_v47, %v829_v46  ;;  %v97_v42 = vld [vmem:[#allocation2 + $0x60] sm:$0xff] }
  0xfe   :  { %3586 = vmatprep.subr.bf16.mxu1 %v3585_v53  ;;  %v848_v53 = vld [vmem:[#allocation5 + $0x1718] sm:$0xff]  ;;  %v3607_v56 = vpack.c.bf16 %v839_v50, %v831_v48  ;;  %v917_v46 = vld [vmem:[#allocation5 + $0x1940] sm:$0xff]  ;;  %v911_v47 = vld [vmem:[#allocation5 + $0x1910] sm:$0xff]  ;;  %v3625_v48 = vpack.c.bf16 %v920_v39, %v912_v38 }
  0xff   :  { %v926_v50 = vld [vmem:[#allocation5 + $0x1988] sm:$0xff]  ;;  %v992_v39 = vld [vmem:[#allocation5 + $0x1b98] sm:$0xff] }
 0x100   :  { %3332 = vmatpush1.bf16.msra.mxu0 %v3331_v59  ;;  %v853_v59 = vld [vmem:[#allocation5 + $0x1740] sm:$0xff]  ;;  %v998_v38 = vld [vmem:[#allocation5 + $0x1bc8] sm:$0xff] }
 0x101   :  { %3588 = vmatpush1.bf16.msra.mxu1 %v3587_v60  ;;  %3334 = vmatprep.subr.bf16.mxu0 %v3333_v61  ;;  %v847_v60 = vld [vmem:[#allocation5 + $0x1710] sm:$0xff]  ;;  %v3609_v61 = vpack.c.bf16 %v856_v54, %v848_v53  ;;  %v3355_v3 = vpack.c.bf16 %v853_v59, %v845_v58  ;;  %v936_v53 = vld [vmem:[#allocation5 + $0x19d8] sm:$0xff]  ;;  %v106_v54 = vld [vmem:[#allocation2 + $0xa8] sm:$0xff]  ;;  %v3373_v58 = vpack.c.bf16 %v934_v51, %v926_v50 }
 0x102   :  { %3590 = vmatprep.subr.bf16.mxu1 %v3589_v1  ;;  %v864_v1 = vld [vmem:[#allocation5 + $0x1798] sm:$0xff]  ;;  %v3611_v4 = vpack.c.bf16 %v855_v62, %v847_v60  ;;  %v925_v59 = vld [vmem:[#allocation5 + $0x1980] sm:$0xff]  ;;  %v3629_v62 = vpack.c.bf16 %v936_v53, %v928_v52  ;;  %v1014_v50 = vld [vmem:[#allocation5 + $0x1c48] sm:$0xff] }
 0x103   :  { %v933_v60 = vld [vmem:[#allocation5 + $0x19c0] sm:$0xff]  ;;  %v1008_v51 = vld [vmem:[#allocation5 + $0x1c18] sm:$0xff] }
 0x104   :  { %3336 = vmatpush1.bf16.msra.mxu0 %v3335_v7  ;;  %v869_v7 = vld [vmem:[#allocation5 + $0x17c0] sm:$0xff]  ;;  %v1016_v52 = vld [vmem:[#allocation5 + $0x1c58] sm:$0xff] }
 0x105   :  { %3592 = vmatpush1.bf16.msra.mxu1 %v3591_v8  ;;  %3338 = vmatprep.subr.bf16.mxu0 %v3337_v9  ;;  %v863_v8 = vld [vmem:[#allocation5 + $0x1790] sm:$0xff]  ;;  %v3613_v9 = vpack.c.bf16 %v872_v2, %v864_v1  ;;  %v3359_v15 = vpack.c.bf16 %v869_v7, %v861_v6  ;;  %v950_v1 = vld [vmem:[#allocation5 + $0x1a48] sm:$0xff]  ;;  %v944_v2 = vld [vmem:[#allocation5 + $0x1a18] sm:$0xff] }
 0x106   :  { %3594 = vmatprep.subr.bf16.mxu1 %v3593_v13  ;;  %v880_v13 = vld [vmem:[#allocation5 + $0x1818] sm:$0xff]  ;;  %v3615_v16 = vpack.c.bf16 %v871_v10, %v863_v8  ;;  %v3377_v7 = vpack.c.bf16 %v950_v1, %v942_v0  ;;  %v941_v8 = vld [vmem:[#allocation5 + $0x1a00] sm:$0xff]  ;;  %v943_v10 = vld [vmem:[#allocation5 + $0x1a10] sm:$0xff] }
 0x107   :  { %v1032_v0 = vld [vmem:[#allocation5 + $0x1cd8] sm:$0xff] }
 0x108   :  { %3340 = vmatpush1.bf16.msra.mxu0 %v3339_v19  ;;  %v885_v19 = vld [vmem:[#allocation5 + $0x1840] sm:$0xff] }
 0x109   :  { %3596 = vmatpush1.bf16.msra.mxu1 %v3595_v20  ;;  %3342 = vmatprep.subr.bf16.mxu0 %v3341_v21  ;;  %v879_v20 = vld [vmem:[#allocation5 + $0x1810] sm:$0xff]  ;;  %v3617_v21 = vpack.c.bf16 %v888_v14, %v880_v13  ;;  %v3363_v28 = vpack.c.bf16 %v885_v19, %v877_v18  ;;  %v958_v13 = vld [vmem:[#allocation5 + $0x1a88] sm:$0xff]  ;;  %v3635_v18 = vpack.c.bf16 %v951_v12, %v943_v10  ;;  %v1048_v12 = vld [vmem:[#allocation5 + $0x1d58] sm:$0xff] }
 0x10a   :  { %3598 = vmatprep.subr.bf16.mxu1 %v3597_v25  ;;  %v896_v25 = vld [vmem:[#allocation5 + $0x1898] sm:$0xff]  ;;  %v3619_v29 = vpack.c.bf16 %v887_v22, %v879_v20  ;;  %v966_v14 = vld [vmem:[#allocation5 + $0x1ac8] sm:$0xff]  ;;  %v957_v20 = vld [vmem:[#allocation5 + $0x1a80] sm:$0xff] }
 0x10b   :  { %v3621_v34 = vpack.c.bf16 %v904_v26, %v896_v25  ;;  %v3381_v19 = vpack.c.bf16 %v966_v14, %v958_v13  ;;  %v959_v22 = vld [vmem:[#allocation5 + $0x1a90] sm:$0xff]  ;;  %v974_v25 = vld [vmem:[#allocation5 + $0x1b08] sm:$0xff] }
 0x10c   :  { %3344 = vmatpush1.bf16.msra.mxu0 %v3343_v31  ;;  %v893_v31 = vld [vmem:[#allocation5 + $0x1880] sm:$0xff]  ;;  %v982_v26 = vld [vmem:[#allocation5 + $0x1b48] sm:$0xff] }
 0x10d   :  { %3600 = vmatpush1.bf16.msra.mxu1 %v3599_v32  ;;  %3346 = vmatprep.subr.bf16.mxu0 %v3345_v33  ;;  %v901_v32 = vld [vmem:[#allocation5 + $0x18c0] sm:$0xff]  ;;  %v895_v33 = vld [vmem:[#allocation5 + $0x1890] sm:$0xff]  ;;  %v1046_v10 = vld [vmem:[#allocation5 + $0x1d48] sm:$0xff] }
 0x10e   :  { %3602 = vmatprep.subr.bf16.mxu1 %v3601_v37  ;;  %v918_v37 = vld [vmem:[#allocation5 + $0x1948] sm:$0xff]  ;;  %v3367_v41 = vpack.c.bf16 %v901_v32, %v893_v31  ;;  %v3385_v31 = vpack.c.bf16 %v982_v26, %v974_v25  ;;  %v973_v32 = vld [vmem:[#allocation5 + $0x1b00] sm:$0xff] }
 0x110   :  { %3348 = vmatpush1.bf16.msra.mxu0 %v3347_v43  ;;  %v3623_v43 = vpack.c.bf16 %v903_v35, %v895_v33  ;;  %v981_v33 = vld [vmem:[#allocation5 + $0x1b40] sm:$0xff] }
 0x111   :  { %3604 = vmatpush1.bf16.msra.mxu1 %v3603_v44  ;;  %3350 = vmatprep.subr.bf16.mxu0 %v3349_v45  ;;  %v3369_v44 = vpack.c.bf16 %v918_v37, %v910_v36  ;;  %v909_v45 = vld [vmem:[#allocation5 + $0x1900] sm:$0xff]  ;;  %v983_v36 = vld [vmem:[#allocation5 + $0x1b50] sm:$0xff]  ;;  %v990_v37 = vld [vmem:[#allocation5 + $0x1b88] sm:$0xff] }
 0x112   :  { %3606 = vmatprep.subr.bf16.mxu1 %v3605_v49  ;;  %v919_v49 = vld [vmem:[#allocation5 + $0x1950] sm:$0xff] }
 0x114   :  { %3352 = vmatpush1.bf16.msra.mxu0 %v3351_v55  ;;  %v3371_v55 = vpack.c.bf16 %v917_v46, %v909_v45  ;;  %v997_v45 = vld [vmem:[#allocation5 + $0x1bc0] sm:$0xff]  ;;  %v991_v46 = vld [vmem:[#allocation5 + $0x1b90] sm:$0xff] }
 0x115   :  { %3608 = vmatpush1.bf16.msra.mxu1 %v3607_v56  ;;  %3354 = vmatprep.subr.bf16.mxu0 %v3353_v57  ;;  %v105_v56 = vld [vmem:[#allocation2 + $0xa0] sm:$0xff]  ;;  %v3627_v57 = vpack.c.bf16 %v919_v49, %v911_v47  ;;  %v1006_v49 = vld [vmem:[#allocation5 + $0x1c08] sm:$0xff] }
 0x116   :  { %3610 = vmatprep.subr.bf16.mxu1 %v3609_v61  ;;  %v927_v61 = vld [vmem:[#allocation5 + $0x1990] sm:$0xff] }
 0x117   :  { %v3631_v6 = vpack.c.bf16 %v935_v63, %v927_v61  ;;  %v1022_v61 = vld [vmem:[#allocation5 + $0x1c88] sm:$0xff]  ;;  %v1024_v63 = vld [vmem:[#allocation5 + $0x1c98] sm:$0xff] }
 0x118   :  { %3356 = vmatpush1.bf16.msra.mxu0 %v3355_v3  ;;  %v952_v3 = vld [vmem:[#allocation5 + $0x1a58] sm:$0xff] }
 0x119   :  { %3612 = vmatpush1.bf16.msra.mxu1 %v3611_v4  ;;  %3358 = vmatprep.subr.bf16.mxu0 %v3357_v5  ;;  %v92_v4 = vld [vmem:[#allocation2 + $0x38] sm:$0xff]  ;;  %v3375_v5 = vpack.c.bf16 %v933_v60, %v925_v59  ;;  %v3633_v11 = vpack.c.bf16 %v952_v3, %v944_v2  ;;  %v3649_v59 = vpack.c.bf16 %v1016_v52, %v1008_v51  ;;  %v1015_v60 = vld [vmem:[#allocation5 + $0x1c50] sm:$0xff]  ;;  %v1085_v52 = vld [vmem:[#allocation5 + $0x1e80] sm:$0xff] }
 0x11a   :  { %3614 = vmatprep.subr.bf16.mxu1 %v3613_v9  ;;  %v949_v9 = vld [vmem:[#allocation5 + $0x1a40] sm:$0xff] }
 0x11c   :  { %3360 = vmatpush1.bf16.msra.mxu0 %v3359_v15  ;;  %v960_v15 = vld [vmem:[#allocation5 + $0x1a98] sm:$0xff] }
 0x11d   :  { %3616 = vmatpush1.bf16.msra.mxu1 %v3615_v16  ;;  %3362 = vmatprep.subr.bf16.mxu0 %v3361_v17  ;;  %v968_v16 = vld [vmem:[#allocation5 + $0x1ad8] sm:$0xff]  ;;  %v3379_v17 = vpack.c.bf16 %v949_v9, %v941_v8  ;;  %v1031_v8 = vld [vmem:[#allocation5 + $0x1cd0] sm:$0xff]  ;;  %v1038_v9 = vld [vmem:[#allocation5 + $0x1d08] sm:$0xff] }
 0x11e   :  { %3618 = vmatprep.subr.bf16.mxu1 %v3617_v21  ;;  %v965_v21 = vld [vmem:[#allocation5 + $0x1ac0] sm:$0xff]  ;;  %v3637_v23 = vpack.c.bf16 %v968_v16, %v960_v15  ;;  %v3401_v15 = vpack.c.bf16 %v1046_v10, %v1038_v9 }
 0x11f   :  { %1406 = vmatmul.mubr.f32.vlgmr.msra.gmra.mrb[0].mxu0 %v89_v27  ;;  %v1037_v16 = vld [vmem:[#allocation5 + $0x1d00] sm:$0xff] }
 0x120   :  { %3364 = vmatpush1.bf16.msra.mxu0 %v3363_v28  ;;  %1738 = vmatmul.mubr.f32.vlgmr.msra.gmra.mrb[0].mxu1 %v89_v27  ;;  %v976_v27 = vld [vmem:[#allocation5 + $0x1b18] sm:$0xff] }
 0x121   :  { %3620 = vmatpush1.bf16.msra.mxu1 %v3619_v29  ;;  %3366 = vmatprep.subr.bf16.mxu0 %v3365_v30  ;;  %v984_v28 = vld [vmem:[#allocation5 + $0x1b58] sm:$0xff]  ;;  %v3383_v29 = vpack.c.bf16 %v965_v21, %v957_v20  ;;  %v3639_v30 = vpack.c.bf16 %v967_v24, %v959_v22  ;;  %v1047_v20 = vld [vmem:[#allocation5 + $0x1d50] sm:$0xff]  ;;  %v1054_v21 = vld [vmem:[#allocation5 + $0x1d88] sm:$0xff] }
 0x122   :  { %3622 = vmatprep.subr.bf16.mxu1 %v3621_v34  ;;  %1411 = vmatprep.mubr.f32.mxu0 %v98_v40  ;;  %v975_v34 = vld [vmem:[#allocation5 + $0x1b10] sm:$0xff]  ;;  %v3641_v35 = vpack.c.bf16 %v984_v28, %v976_v27  ;;  %v1062_v22 = vld [vmem:[#allocation5 + $0x1dc8] sm:$0xff]  ;;  %v1064_v24 = vld [vmem:[#allocation5 + $0x1dd8] sm:$0xff] }
 0x123   :  { %1743 = vmatprep.mubr.f32.mxu1 %v98_v40  ;;  %1412 = vmatmul.mubr.f32.gmra.mrb[2].mxu0 %v97_v42  ;;  %v1000_v40 = vld [vmem:[#allocation5 + $0x1bd8] sm:$0xff]  ;;  %v3405_v27 = vpack.c.bf16 %v1062_v22, %v1054_v21  ;;  %v1053_v28 = vld [vmem:[#allocation5 + $0x1d80] sm:$0xff] }
 0x124   :  { %3368 = vmatpush1.bf16.msra.mxu0 %v3367_v41  ;;  %1744 = vmatmul.mubr.f32.gmra.mrb[2].mxu1 %v97_v42  ;;  %v3387_v41 = vpack.c.bf16 %v981_v33, %v973_v32  ;;  %v3643_v42 = vpack.c.bf16 %v983_v36, %v975_v34  ;;  %v3645_v47 = vpack.c.bf16 %v1000_v40, %v992_v39  ;;  %v1063_v32 = vld [vmem:[#allocation5 + $0x1dd0] sm:$0xff]  ;;  %v1070_v33 = vld [vmem:[#allocation5 + $0x1e08] sm:$0xff]  ;;  %v1080_v36 = vld [vmem:[#allocation5 + $0x1e58] sm:$0xff] }
 0x125   :  { %3624 = vmatpush1.bf16.msra.mxu1 %v3623_v43  ;;  %3370 = vmatprep.subr.bf16.mxu0 %v3369_v44  ;;  %v3389_v43 = vpack.c.bf16 %v998_v38, %v990_v37  ;;  %v989_v44 = vld [vmem:[#allocation5 + $0x1b80] sm:$0xff]  ;;  %v1078_v34 = vld [vmem:[#allocation5 + $0x1e48] sm:$0xff] }
 0x126   :  { %3626 = vmatprep.subr.bf16.mxu1 %v3625_v48  ;;  %1417 = vmatprep.mubr.f32.mxu0 %v106_v54  ;;  %v999_v48 = vld [vmem:[#allocation5 + $0x1bd0] sm:$0xff]  ;;  %v3391_v53 = vpack.c.bf16 %v997_v45, %v989_v44  ;;  %v3409_v39 = vpack.c.bf16 %v1078_v34, %v1070_v33  ;;  %v1069_v40 = vld [vmem:[#allocation5 + $0x1e00] sm:$0xff]  ;;  %v1086_v45 = vld [vmem:[#allocation5 + $0x1e88] sm:$0xff] }
 0x127   :  { %1749 = vmatprep.mubr.f32.mxu1 %v106_v54  ;;  %1418 = vmatmul.mubr.f32.gmra.mrb[4].mxu0 %v105_v56  ;;  %v3647_v54 = vpack.c.bf16 %v999_v48, %v991_v46  ;;  %v1079_v44 = vld [vmem:[#allocation5 + $0x1e50] sm:$0xff]  ;;  %v1094_v46 = vld [vmem:[#allocation5 + $0x1ec8] sm:$0xff]  ;;  %v1096_v48 = vld [vmem:[#allocation5 + $0x1ed8] sm:$0xff] }
 0x128   :  { %3372 = vmatpush1.bf16.msra.mxu0 %v3371_v55  ;;  %1750 = vmatmul.mubr.f32.gmra.mrb[4].mxu1 %v105_v56  ;;  %v3393_v55 = vpack.c.bf16 %v1014_v50, %v1006_v49  ;;  %v1005_v56 = vld [vmem:[#allocation5 + $0x1c00] sm:$0xff]  ;;  %v3413_v51 = vpack.c.bf16 %v1094_v46, %v1086_v45  ;;  %v132_v33 = vld [vmem:[#allocation5 + $0xb8] sm:$0xff]  ;;  %v154_v45 = vld [vmem:[#allocation5 + $0x168] sm:$0xff] }
 0x129   :  { %3628 = vmatpush1.bf16.msra.mxu1 %v3627_v57  ;;  %3374 = vmatprep.subr.bf16.mxu0 %v3373_v58  ;;  %v1013_v57 = vld [vmem:[#allocation5 + $0x1c40] sm:$0xff]  ;;  %v1007_v58 = vld [vmem:[#allocation5 + $0x1c10] sm:$0xff]  ;;  %v140_v34 = vld [vmem:[#allocation5 + $0xf8] sm:$0xff] }
 0x12a   :  { %3630 = vmatprep.subr.bf16.mxu1 %v3629_v62  ;;  %1488 = vmatprep.mubr.f32.mxu0 %v92_v4  ;;  %v1030_v62 = vld [vmem:[#allocation5 + $0x1cc8] sm:$0xff]  ;;  %v3395_v1 = vpack.c.bf16 %v1013_v57, %v1005_v56  ;;  %v3651_v2 = vpack.c.bf16 %v1015_v60, %v1007_v58  ;;  %v1095_v56 = vld [vmem:[#allocation5 + $0x1ed0] sm:$0xff]  ;;  %v1112_v60 = vld [vmem:[#allocation5 + $0x1f58] sm:$0xff] }
 0x12b   :  { %1820 = vmatprep.mubr.f32.mxu1 %v92_v4  ;;  %v3397_v3 = vpack.c.bf16 %v1030_v62, %v1022_v61  ;;  %v1021_v4 = vld [vmem:[#allocation5 + $0x1c80] sm:$0xff]  ;;  %v1102_v57 = vld [vmem:[#allocation5 + $0x1f08] sm:$0xff] }
 0x12c   :  { %3376 = vmatpush1.bf16.msra.mxu0 %v3375_v5  ;;  %v1029_v5 = vld [vmem:[#allocation5 + $0x1cc0] sm:$0xff]  ;;  %v1110_v58 = vld [vmem:[#allocation5 + $0x1f48] sm:$0xff] }
 0x12d   :  { %3632 = vmatpush1.bf16.msra.mxu1 %v3631_v6  ;;  %3378 = vmatprep.subr.bf16.mxu0 %v3377_v7  ;;  %v1023_v6 = vld [vmem:[#allocation5 + $0x1c90] sm:$0xff]  ;;  %v3653_v7 = vpack.c.bf16 %v1032_v0, %v1024_v63  ;;  %v3399_v13 = vpack.c.bf16 %v1029_v5, %v1021_v4  ;;  %v3417_v63 = vpack.c.bf16 %v1110_v58, %v1102_v57  ;;  %v1101_v0 = vld [vmem:[#allocation5 + $0x1f00] sm:$0xff]  ;;  %v1118_v5 = vld [vmem:[#allocation5 + $0x1f88] sm:$0xff] }
 0x12e   :  { %3634 = vmatprep.subr.bf16.mxu1 %v3633_v11  ;;  %v1040_v11 = vld [vmem:[#allocation5 + $0x1d18] sm:$0xff]  ;;  %v3655_v14 = vpack.c.bf16 %v1031_v8, %v1023_v6  ;;  %v1111_v4 = vld [vmem:[#allocation5 + $0x1f50] sm:$0xff]  ;;  %v1126_v6 = vld [vmem:[#allocation5 + $0x1fc8] sm:$0xff] }
 0x12f   :  { %v1128_v8 = vld [vmem:[#allocation5 + $0x1fd8] sm:$0xff]  ;;  %v170_v57 = vld [vmem:[#allocation5 + $0x1e8] sm:$0xff] }
 0x130   :  { %3380 = vmatpush1.bf16.msra.mxu0 %v3379_v17  ;;  %v1045_v17 = vld [vmem:[#allocation5 + $0x1d40] sm:$0xff] }
 0x131   :  { %3636 = vmatpush1.bf16.msra.mxu1 %v3635_v18  ;;  %3382 = vmatprep.subr.bf16.mxu0 %v3381_v19  ;;  %v1039_v18 = vld [vmem:[#allocation5 + $0x1d10] sm:$0xff]  ;;  %v3657_v19 = vpack.c.bf16 %v1048_v12, %v1040_v11  ;;  %v3403_v25 = vpack.c.bf16 %v1045_v17, %v1037_v16  ;;  %v3421_v11 = vpack.c.bf16 %v1126_v6, %v1118_v5  ;;  %v1117_v12 = vld [vmem:[#allocation5 + $0x1f80] sm:$0xff]  ;;  %v114_v17 = vld [vmem:[#allocation5 + $0x28] sm:$0xff] }
 0x132   :  { %3638 = vmatprep.subr.bf16.mxu1 %v3637_v23  ;;  %v1056_v23 = vld [vmem:[#allocation5 + $0x1d98] sm:$0xff]  ;;  %v3659_v26 = vpack.c.bf16 %v1047_v20, %v1039_v18  ;;  %v1127_v16 = vld [vmem:[#allocation5 + $0x1fd0] sm:$0xff]  ;;  %v122_v18 = vld [vmem:[#allocation5 + $0x68] sm:$0xff] }
 0x133   :  { %v124_v20 = vld [vmem:[#allocation5 + $0x78] sm:$0xff]  ;;  %v171_v5 = vld [vmem:[#allocation5 + $0x1f0] sm:$0xff]  ;;  %v178_v6 = vld [vmem:[#allocation5 + $0x228] sm:$0xff] }
 0x134   :  { %3384 = vmatpush1.bf16.msra.mxu0 %v3383_v29  ;;  %v1061_v29 = vld [vmem:[#allocation5 + $0x1dc0] sm:$0xff] }
 0x135   :  { %3640 = vmatpush1.bf16.msra.mxu1 %v3639_v30  ;;  %3386 = vmatprep.subr.bf16.mxu0 %v3385_v31  ;;  %v1055_v30 = vld [vmem:[#allocation5 + $0x1d90] sm:$0xff]  ;;  %v3661_v31 = vpack.c.bf16 %v1064_v24, %v1056_v23  ;;  %v3407_v37 = vpack.c.bf16 %v1061_v29, %v1053_v28  ;;  %v3681_v23 = vpack.c.bf16 %v122_v18, %v114_v17  ;;  %v113_v24 = vld [vmem:[#allocation5 + $0x20] sm:$0xff]  ;;  %v130_v29 = vld [vmem:[#allocation5 + $0xa8] sm:$0xff] }
 0x136   :  { %3642 = vmatprep.subr.bf16.mxu1 %v3641_v35  ;;  %v1072_v35 = vld [vmem:[#allocation5 + $0x1e18] sm:$0xff]  ;;  %v3663_v38 = vpack.c.bf16 %v1063_v32, %v1055_v30  ;;  %v123_v28 = vld [vmem:[#allocation5 + $0x70] sm:$0xff]  ;;  %v138_v30 = vld [vmem:[#allocation5 + $0xe8] sm:$0xff] }
 0x137   :  { %v187_v17 = vld [vmem:[#allocation5 + $0x270] sm:$0xff]  ;;  %v194_v18 = vld [vmem:[#allocation5 + $0x2a8] sm:$0xff] }
 0x138   :  { %3388 = vmatpush1.bf16.msra.mxu0 %v3387_v41  ;;  %v1077_v41 = vld [vmem:[#allocation5 + $0x1e40] sm:$0xff] }
 0x139   :  { %3644 = vmatpush1.bf16.msra.mxu1 %v3643_v42  ;;  %3390 = vmatprep.subr.bf16.mxu0 %v3389_v43  ;;  %v1071_v42 = vld [vmem:[#allocation5 + $0x1e10] sm:$0xff]  ;;  %v3665_v43 = vpack.c.bf16 %v1080_v36, %v1072_v35  ;;  %v3411_v49 = vpack.c.bf16 %v1077_v41, %v1069_v40  ;;  %v129_v36 = vld [vmem:[#allocation5 + $0xa0] sm:$0xff] }
 0x13a   :  { %3646 = vmatprep.subr.bf16.mxu1 %v3645_v47  ;;  %v1088_v47 = vld [vmem:[#allocation5 + $0x1e98] sm:$0xff]  ;;  %v3667_v50 = vpack.c.bf16 %v1079_v44, %v1071_v42  ;;  %v131_v40 = vld [vmem:[#allocation5 + $0xb0] sm:$0xff]  ;;  %v146_v44 = vld [vmem:[#allocation5 + $0x128] sm:$0xff] }
 0x13b   :  { %v139_v41 = vld [vmem:[#allocation5 + $0xf0] sm:$0xff] }
 0x13c   :  { %3392 = vmatpush1.bf16.msra.mxu0 %v3391_v53  ;;  %v1093_v53 = vld [vmem:[#allocation5 + $0x1ec0] sm:$0xff]  ;;  %v99_v42 = vld [vmem:[#allocation2 + $0x70] sm:$0xff] }
 0x13d   :  { %3648 = vmatpush1.bf16.msra.mxu1 %v3647_v54  ;;  %3394 = vmatprep.subr.bf16.mxu0 %v3393_v55  ;;  %v1087_v54 = vld [vmem:[#allocation5 + $0x1e90] sm:$0xff]  ;;  %v3669_v55 = vpack.c.bf16 %v1096_v48, %v1088_v47  ;;  %v3415_v61 = vpack.c.bf16 %v1093_v53, %v1085_v52  ;;  %v108_v47 = vld [vmem:[#allocation2 + $0xb8] sm:$0xff]  ;;  %v153_v52 = vld [vmem:[#allocation5 + $0x160] sm:$0xff] }
 0x13e   :  { %3650 = vmatprep.subr.bf16.mxu1 %v3649_v59  ;;  %v1104_v59 = vld [vmem:[#allocation5 + $0x1f18] sm:$0xff]  ;;  %v3671_v62 = vpack.c.bf16 %v1095_v56, %v1087_v54  ;;  %v147_v53 = vld [vmem:[#allocation5 + $0x130] sm:$0xff]  ;;  %v3689_v54 = vpack.c.bf16 %v154_v45, %v146_v44  ;;  %v162_v56 = vld [vmem:[#allocation5 + $0x1a8] sm:$0xff] }
 0x13f   :  { %v148_v48 = vld [vmem:[#allocation5 + $0x138] sm:$0xff]  ;;  %v234_v44 = vld [vmem:[#allocation5 + $0x3e8] sm:$0xff] }
 0x140   :  { %3396 = vmatpush1.bf16.msra.mxu0 %v3395_v1  ;;  %v1109_v1 = vld [vmem:[#allocation5 + $0x1f40] sm:$0xff]  ;;  %v228_v45 = vld [vmem:[#allocation5 + $0x3b8] sm:$0xff] }
 0x141   :  { %3652 = vmatpush1.bf16.msra.mxu1 %v3651_v2  ;;  %3398 = vmatprep.subr.bf16.mxu0 %v3397_v3  ;;  %v1103_v2 = vld [vmem:[#allocation5 + $0x1f10] sm:$0xff]  ;;  %v3673_v3 = vpack.c.bf16 %v1112_v60, %v1104_v59  ;;  %v3419_v9 = vpack.c.bf16 %v1109_v1, %v1101_v0  ;;  %v164_v59 = vld [vmem:[#allocation5 + $0x1b8] sm:$0xff]  ;;  %v3693_v0 = vpack.c.bf16 %v170_v57, %v162_v56  ;;  %v161_v1 = vld [vmem:[#allocation5 + $0x1a0] sm:$0xff] }
 0x142   :  { %3654 = vmatprep.subr.bf16.mxu1 %v3653_v7  ;;  %v1120_v7 = vld [vmem:[#allocation5 + $0x1f98] sm:$0xff]  ;;  %v3675_v10 = vpack.c.bf16 %v1111_v4, %v1103_v2  ;;  %v169_v2 = vld [vmem:[#allocation5 + $0x1e0] sm:$0xff]  ;;  %v250_v56 = vld [vmem:[#allocation5 + $0x468] sm:$0xff] }
 0x143   :  { %v172_v60 = vld [vmem:[#allocation5 + $0x1f8] sm:$0xff] }
 0x144   :  { %3400 = vmatpush1.bf16.msra.mxu0 %v3399_v13  ;;  %v1125_v13 = vld [vmem:[#allocation5 + $0x1fc0] sm:$0xff]  ;;  %v3949_v4 = vpack.c.bf16 %v172_v60, %v164_v59  ;;  %v244_v57 = vld [vmem:[#allocation5 + $0x438] sm:$0xff] }
 0x145   :  { %3656 = vmatpush1.bf16.msra.mxu1 %v3655_v14  ;;  %3402 = vmatprep.subr.bf16.mxu0 %v3401_v15  ;;  %v1119_v14 = vld [vmem:[#allocation5 + $0x1f90] sm:$0xff]  ;;  %v3677_v15 = vpack.c.bf16 %v1128_v8, %v1120_v7  ;;  %v3423_v21 = vpack.c.bf16 %v1125_v13, %v1117_v12  ;;  %v186_v7 = vld [vmem:[#allocation5 + $0x268] sm:$0xff]  ;;  %v180_v8 = vld [vmem:[#allocation5 + $0x238] sm:$0xff] }
 0x146   :  { %3658 = vmatprep.subr.bf16.mxu1 %v3657_v19  ;;  %v116_v19 = vld [vmem:[#allocation5 + $0x38] sm:$0xff]  ;;  %v3679_v22 = vpack.c.bf16 %v1127_v16, %v1119_v14  ;;  %v3697_v12 = vpack.c.bf16 %v186_v7, %v178_v6  ;;  %v177_v13 = vld [vmem:[#allocation5 + $0x220] sm:$0xff] }
 0x147   :  { %v185_v14 = vld [vmem:[#allocation5 + $0x260] sm:$0xff]  ;;  %v268_v6 = vld [vmem:[#allocation5 + $0x4f8] sm:$0xff] }
 0x148   :  { %3404 = vmatpush1.bf16.msra.mxu0 %v3403_v25  ;;  %v121_v25 = vld [vmem:[#allocation5 + $0x60] sm:$0xff] }
 0x149   :  { %3660 = vmatpush1.bf16.msra.mxu1 %v3659_v26  ;;  %3406 = vmatprep.subr.bf16.mxu0 %v3405_v27  ;;  %v3937_v26 = vpack.c.bf16 %v124_v20, %v116_v19  ;;  %v115_v27 = vld [vmem:[#allocation5 + $0x30] sm:$0xff]  ;;  %v3683_v32 = vpack.c.bf16 %v121_v25, %v113_v24  ;;  %v202_v19 = vld [vmem:[#allocation5 + $0x2e8] sm:$0xff] }
 0x14a   :  { %3662 = vmatprep.subr.bf16.mxu1 %v3661_v31  ;;  %v91_v31 = vld [vmem:[#allocation2 + $0x30] sm:$0xff]  ;;  %v3939_v35 = vpack.c.bf16 %v123_v28, %v115_v27  ;;  %v4475_v20 = vld [vmem:[#allocation2 + $0x8] sm:$0xff]  ;;  %v3701_v25 = vpack.c.bf16 %v202_v19, %v194_v18  ;;  %v201_v27 = vld [vmem:[#allocation5 + $0x2e0] sm:$0xff] }
 0x14b   :  { %v195_v28 = vld [vmem:[#allocation5 + $0x2b0] sm:$0xff]  ;;  %v284_v18 = vld [vmem:[#allocation5 + $0x578] sm:$0xff] }
 0x14c   :  { %3408 = vmatpush1.bf16.msra.mxu0 %v3407_v37  ;;  %v137_v37 = vld [vmem:[#allocation5 + $0xe0] sm:$0xff] }
 0x14d   :  { %3664 = vmatpush1.bf16.msra.mxu1 %v3663_v38  ;;  %3410 = vmatprep.subr.bf16.mxu0 %v3409_v39  ;;  %v100_v38 = vld [vmem:[#allocation2 + $0x78] sm:$0xff]  ;;  %v3685_v39 = vpack.c.bf16 %v138_v30, %v130_v29  ;;  %v3687_v46 = vpack.c.bf16 %v137_v37, %v129_v36  ;;  %v203_v30 = vld [vmem:[#allocation5 + $0x2f0] sm:$0xff] }
 0x14e   :  { %3666 = vmatprep.subr.bf16.mxu1 %v3665_v43  ;;  %v3941_v43 = vpack.c.bf16 %v140_v34, %v132_v33  ;;  %v212_v33 = vld [vmem:[#allocation5 + $0x338] sm:$0xff]  ;;  %v3959_v36 = vpack.c.bf16 %v203_v30, %v195_v28  ;;  %v298_v28 = vld [vmem:[#allocation5 + $0x5e8] sm:$0xff] }
 0x14f   :  { %v220_v34 = vld [vmem:[#allocation5 + $0x378] sm:$0xff] }
 0x150   :  { %3412 = vmatpush1.bf16.msra.mxu0 %v3411_v49  ;;  %v156_v49 = vld [vmem:[#allocation5 + $0x178] sm:$0xff] }
 0x151   :  { %3668 = vmatpush1.bf16.msra.mxu1 %v3667_v50  ;;  %3414 = vmatprep.subr.bf16.mxu0 %v3413_v51  ;;  %v3943_v50 = vpack.c.bf16 %v139_v41, %v131_v40  ;;  %v145_v51 = vld [vmem:[#allocation5 + $0x120] sm:$0xff]  ;;  %v3945_v58 = vpack.c.bf16 %v156_v49, %v148_v48  ;;  %v211_v40 = vld [vmem:[#allocation5 + $0x330] sm:$0xff]  ;;  %v3961_v41 = vpack.c.bf16 %v220_v34, %v212_v33  ;;  %v300_v30 = vld [vmem:[#allocation5 + $0x5f8] sm:$0xff] }
 0x152   :  { %3670 = vmatprep.subr.bf16.mxu1 %v3669_v55  ;;  %v155_v55 = vld [vmem:[#allocation5 + $0x170] sm:$0xff]  ;;  %v289_v34 = vld [vmem:[#allocation5 + $0x5a0] sm:$0xff] }
 0x154   :  { %3416 = vmatpush1.bf16.msra.mxu0 %v3415_v61  ;;  %v107_v61 = vld [vmem:[#allocation2 + $0xb0] sm:$0xff] }
 0x155   :  { %3672 = vmatpush1.bf16.msra.mxu1 %v3671_v62  ;;  %3418 = vmatprep.subr.bf16.mxu0 %v3417_v63  ;;  %v3691_v62 = vpack.c.bf16 %v153_v52, %v145_v51  ;;  %v3947_v63 = vpack.c.bf16 %v155_v55, %v147_v53  ;;  %v233_v51 = vld [vmem:[#allocation5 + $0x3e0] sm:$0xff]  ;;  %v227_v52 = vld [vmem:[#allocation5 + $0x3b0] sm:$0xff]  ;;  %v242_v55 = vld [vmem:[#allocation5 + $0x428] sm:$0xff] }
 0x156   :  { %3674 = vmatprep.subr.bf16.mxu1 %v3673_v3  ;;  %v163_v3 = vld [vmem:[#allocation5 + $0x1b0] sm:$0xff] }
 0x158   :  { %3420 = vmatpush1.bf16.msra.mxu0 %v3419_v9  ;;  %v188_v9 = vld [vmem:[#allocation5 + $0x278] sm:$0xff] }
 0x159   :  { %3676 = vmatpush1.bf16.msra.mxu1 %v3675_v10  ;;  %3422 = vmatprep.subr.bf16.mxu0 %v3421_v11  ;;  %v3695_v10 = vpack.c.bf16 %v169_v2, %v161_v1  ;;  %v3951_v11 = vpack.c.bf16 %v171_v5, %v163_v3  ;;  %v3953_v16 = vpack.c.bf16 %v188_v9, %v180_v8  ;;  %v251_v2 = vld [vmem:[#allocation5 + $0x470] sm:$0xff]  ;;  %v258_v3 = vld [vmem:[#allocation5 + $0x4a8] sm:$0xff]  ;;  %v260_v5 = vld [vmem:[#allocation5 + $0x4b8] sm:$0xff] }
 0x15a   :  { %3678 = vmatprep.subr.bf16.mxu1 %v3677_v15  ;;  %v179_v15 = vld [vmem:[#allocation5 + $0x230] sm:$0xff] }
 0x15b   :  { %v3955_v24 = vpack.c.bf16 %v187_v17, %v179_v15  ;;  %v274_v15 = vld [vmem:[#allocation5 + $0x528] sm:$0xff]  ;;  %v276_v17 = vld [vmem:[#allocation5 + $0x538] sm:$0xff] }
 0x15c   :  { %3424 = vmatpush1.bf16.msra.mxu0 %v3423_v21  ;;  %v196_v21 = vld [vmem:[#allocation5 + $0x2b8] sm:$0xff] }
 0x15d   :  { %3680 = vmatpush1.bf16.msra.mxu1 %v3679_v22  ;;  %3682 = vmatprep.subr.bf16.mxu0 %v3681_v23  ;;  %v204_v22 = vld [vmem:[#allocation5 + $0x2f8] sm:$0xff]  ;;  %v3699_v23 = vpack.c.bf16 %v185_v14, %v177_v13  ;;  %v3973_v13 = vpack.c.bf16 %v268_v6, %v260_v5  ;;  %v267_v14 = vld [vmem:[#allocation5 + $0x4f0] sm:$0xff]  ;;  %v337_v6 = vld [vmem:[#allocation5 + $0x720] sm:$0xff] }
 0x15e   :  { %3938 = vmatprep.subr.bf16.mxu1 %v3937_v26  ;;  %v193_v26 = vld [vmem:[#allocation5 + $0x2a0] sm:$0xff]  ;;  %v3957_v29 = vpack.c.bf16 %v204_v22, %v196_v21 }
 0x15f   :  { %1489 = vmatmul.mubr.f32.vlgmr.msra.gmra.mrb[0].mxu0 %v91_v31  ;;  %v273_v22 = vld [vmem:[#allocation5 + $0x520] sm:$0xff] }
 0x160   :  { %1821 = vmatmul.mubr.f32.vlgmr.msra.gmra.mrb[0].mxu1 %v91_v31  ;;  %3684 = vmatpush1.bf16.msra.mxu0 %v3683_v32  ;;  %v210_v31 = vld [vmem:[#allocation5 + $0x328] sm:$0xff] }
 0x161   :  { %3940 = vmatpush1.bf16.msra.mxu1 %v3939_v35  ;;  %1494 = vmatprep.mubr.f32.mxu0 %v100_v38  ;;  %v218_v32 = vld [vmem:[#allocation5 + $0x368] sm:$0xff]  ;;  %v3703_v35 = vpack.c.bf16 %v201_v27, %v193_v26  ;;  %v283_v26 = vld [vmem:[#allocation5 + $0x570] sm:$0xff] }
 0x162   :  { %1826 = vmatprep.mubr.f32.mxu1 %v100_v38  ;;  %3686 = vmatprep.subr.bf16.mxu0 %v3685_v39  ;;  %v3705_v37 = vpack.c.bf16 %v218_v32, %v210_v31  ;;  %v209_v38 = vld [vmem:[#allocation5 + $0x320] sm:$0xff]  ;;  %v290_v27 = vld [vmem:[#allocation5 + $0x5a8] sm:$0xff] }
 0x163   :  { %1495 = vmatmul.mubr.f32.gmra.mrb[2].mxu0 %v99_v42  ;;  %3942 = vmatprep.subr.bf16.mxu1 %v3941_v43  ;;  %v217_v39 = vld [vmem:[#allocation5 + $0x360] sm:$0xff]  ;;  %v226_v43 = vld [vmem:[#allocation5 + $0x3a8] sm:$0xff]  ;;  %v3725_v33 = vpack.c.bf16 %v298_v28, %v290_v27 }
 0x164   :  { %1827 = vmatmul.mubr.f32.gmra.mrb[2].mxu1 %v99_v42  ;;  %3688 = vmatpush1.bf16.msra.mxu0 %v3687_v46  ;;  %v219_v42 = vld [vmem:[#allocation5 + $0x370] sm:$0xff]  ;;  %v236_v46 = vld [vmem:[#allocation5 + $0x3f8] sm:$0xff]  ;;  %v3709_v49 = vpack.c.bf16 %v234_v44, %v226_v43 }
 0x165   :  { %3944 = vmatpush1.bf16.msra.mxu1 %v3943_v50  ;;  %1500 = vmatprep.mubr.f32.mxu0 %v108_v47  ;;  %v3963_v48 = vpack.c.bf16 %v219_v42, %v211_v40  ;;  %v225_v50 = vld [vmem:[#allocation5 + $0x3a0] sm:$0xff]  ;;  %v3965_v53 = vpack.c.bf16 %v236_v46, %v228_v45  ;;  %v314_v40 = vld [vmem:[#allocation5 + $0x668] sm:$0xff]  ;;  %v316_v42 = vld [vmem:[#allocation5 + $0x678] sm:$0xff] }
 0x166   :  { %1832 = vmatprep.mubr.f32.mxu1 %v108_v47  ;;  %3690 = vmatprep.subr.bf16.mxu0 %v3689_v54  ;;  %v3707_v47 = vpack.c.bf16 %v217_v39, %v209_v38  ;;  %v235_v54 = vld [vmem:[#allocation5 + $0x3f0] sm:$0xff]  ;;  %v3711_v59 = vpack.c.bf16 %v233_v51, %v225_v50  ;;  %v306_v39 = vld [vmem:[#allocation5 + $0x628] sm:$0xff]  ;;  %v305_v46 = vld [vmem:[#allocation5 + $0x620] sm:$0xff] }
 0x167   :  { %1501 = vmatmul.mubr.f32.gmra.mrb[4].mxu0 %v107_v61  ;;  %3946 = vmatprep.subr.bf16.mxu1 %v3945_v58  ;;  %v252_v58 = vld [vmem:[#allocation5 + $0x478] sm:$0xff]  ;;  %v3967_v60 = vpack.c.bf16 %v235_v54, %v227_v52  ;;  %v299_v38 = vld [vmem:[#allocation5 + $0x5f0] sm:$0xff]  ;;  %v3729_v45 = vpack.c.bf16 %v314_v40, %v306_v39  ;;  %v322_v51 = vld [vmem:[#allocation5 + $0x6a8] sm:$0xff] }
 0x168   :  { %1833 = vmatmul.mubr.f32.gmra.mrb[4].mxu1 %v107_v61  ;;  %3692 = vmatpush1.bf16.msra.mxu0 %v3691_v62  ;;  %v3713_v61 = vpack.c.bf16 %v250_v56, %v242_v55  ;;  %v241_v62 = vld [vmem:[#allocation5 + $0x420] sm:$0xff]  ;;  %v3969_v1 = vpack.c.bf16 %v252_v58, %v244_v57  ;;  %v315_v50 = vld [vmem:[#allocation5 + $0x670] sm:$0xff]  ;;  %v330_v52 = vld [vmem:[#allocation5 + $0x6e8] sm:$0xff] }
 0x169   :  { %3948 = vmatpush1.bf16.msra.mxu1 %v3947_v63  ;;  %3694 = vmatprep.subr.bf16.mxu0 %v3693_v0  ;;  %v249_v63 = vld [vmem:[#allocation5 + $0x460] sm:$0xff]  ;;  %v243_v0 = vld [vmem:[#allocation5 + $0x430] sm:$0xff]  ;;  %v332_v54 = vld [vmem:[#allocation5 + $0x6f8] sm:$0xff]  ;;  %v3733_v57 = vpack.c.bf16 %v330_v52, %v322_v51 }
 0x16a   :  { %3950 = vmatprep.subr.bf16.mxu1 %v3949_v4  ;;  %1903 = vmatprep.mubr.f32.mxu0 %v4475_v20  ;;  %v266_v4 = vld [vmem:[#allocation5 + $0x4e8] sm:$0xff]  ;;  %v3715_v7 = vpack.c.bf16 %v249_v63, %v241_v62  ;;  %v3971_v8 = vpack.c.bf16 %v251_v2, %v243_v0  ;;  %v321_v58 = vld [vmem:[#allocation5 + $0x6a0] sm:$0xff]  ;;  %v331_v62 = vld [vmem:[#allocation5 + $0x6f0] sm:$0xff] }
 0x16b   :  { %2235 = vmatprep.mubr.f32.mxu1 %v4475_v20  ;;  %v3717_v9 = vpack.c.bf16 %v266_v4, %v258_v3  ;;  %v338_v63 = vld [vmem:[#allocation5 + $0x728] sm:$0xff]  ;;  %v348_v2 = vld [vmem:[#allocation5 + $0x778] sm:$0xff] }
 0x16c   :  { %3696 = vmatpush1.bf16.msra.mxu0 %v3695_v10  ;;  %v257_v10 = vld [vmem:[#allocation5 + $0x4a0] sm:$0xff]  ;;  %v346_v0 = vld [vmem:[#allocation5 + $0x768] sm:$0xff]  ;;  %v412_v51 = vld [vmem:[#allocation5 + $0x978] sm:$0xff] }
 0x16d   :  { %3952 = vmatpush1.bf16.msra.mxu1 %v3951_v11  ;;  %3698 = vmatprep.subr.bf16.mxu0 %v3697_v12  ;;  %v265_v11 = vld [vmem:[#allocation5 + $0x4e0] sm:$0xff]  ;;  %v259_v12 = vld [vmem:[#allocation5 + $0x4b0] sm:$0xff]  ;;  %v3737_v5 = vpack.c.bf16 %v346_v0, %v338_v63  ;;  %v420_v63 = vld [vmem:[#allocation5 + $0x9b8] sm:$0xff] }
 0x16e   :  { %3954 = vmatprep.subr.bf16.mxu1 %v3953_v16  ;;  %v282_v16 = vld [vmem:[#allocation5 + $0x568] sm:$0xff]  ;;  %v3719_v19 = vpack.c.bf16 %v265_v11, %v257_v10  ;;  %v3975_v20 = vpack.c.bf16 %v267_v14, %v259_v12  ;;  %v347_v10 = vld [vmem:[#allocation5 + $0x770] sm:$0xff]  ;;  %v364_v14 = vld [vmem:[#allocation5 + $0x7f8] sm:$0xff] }
 0x16f   :  { %v3721_v21 = vpack.c.bf16 %v282_v16, %v274_v15  ;;  %v354_v11 = vld [vmem:[#allocation5 + $0x7a8] sm:$0xff]  ;;  %v428_v0 = vld [vmem:[#allocation5 + $0x9f8] sm:$0xff] }
 0x170   :  { %3700 = vmatpush1.bf16.msra.mxu0 %v3699_v23  ;;  %v281_v23 = vld [vmem:[#allocation5 + $0x560] sm:$0xff]  ;;  %v362_v12 = vld [vmem:[#allocation5 + $0x7e8] sm:$0xff] }
 0x171   :  { %3956 = vmatpush1.bf16.msra.mxu1 %v3955_v24  ;;  %3702 = vmatprep.subr.bf16.mxu0 %v3701_v25  ;;  %v275_v24 = vld [vmem:[#allocation5 + $0x530] sm:$0xff]  ;;  %v3977_v25 = vpack.c.bf16 %v284_v18, %v276_v17  ;;  %v3723_v31 = vpack.c.bf16 %v281_v23, %v273_v22  ;;  %v3741_v17 = vpack.c.bf16 %v362_v12, %v354_v11  ;;  %v353_v18 = vld [vmem:[#allocation5 + $0x7a0] sm:$0xff]  ;;  %v370_v23 = vld [vmem:[#allocation5 + $0x828] sm:$0xff] }
 0x172   :  { %3958 = vmatprep.subr.bf16.mxu1 %v3957_v29  ;;  %v292_v29 = vld [vmem:[#allocation5 + $0x5b8] sm:$0xff]  ;;  %v3979_v32 = vpack.c.bf16 %v283_v26, %v275_v24  ;;  %v363_v22 = vld [vmem:[#allocation5 + $0x7f0] sm:$0xff]  ;;  %v378_v24 = vld [vmem:[#allocation5 + $0x868] sm:$0xff] }
 0x173   :  { %v380_v26 = vld [vmem:[#allocation5 + $0x878] sm:$0xff]  ;;  %v442_v11 = vld [vmem:[#allocation5 + $0xa68] sm:$0xff] }
 0x174   :  { %3704 = vmatpush1.bf16.msra.mxu0 %v3703_v35  ;;  %v297_v35 = vld [vmem:[#allocation5 + $0x5e0] sm:$0xff]  ;;  %v4479_v12 = vld [vmem:[#allocation2 + $0x88] sm:$0xff] }
 0x175   :  { %3960 = vmatpush1.bf16.msra.mxu1 %v3959_v36  ;;  %3706 = vmatprep.subr.bf16.mxu0 %v3705_v37  ;;  %v291_v36 = vld [vmem:[#allocation5 + $0x5b0] sm:$0xff]  ;;  %v3981_v37 = vpack.c.bf16 %v300_v30, %v292_v29  ;;  %v3727_v43 = vpack.c.bf16 %v297_v35, %v289_v34  ;;  %v3745_v29 = vpack.c.bf16 %v378_v24, %v370_v23  ;;  %v369_v30 = vld [vmem:[#allocation5 + $0x820] sm:$0xff]  ;;  %v386_v35 = vld [vmem:[#allocation5 + $0x8a8] sm:$0xff] }
 0x176   :  { %3962 = vmatprep.subr.bf16.mxu1 %v3961_v41  ;;  %v308_v41 = vld [vmem:[#allocation5 + $0x638] sm:$0xff]  ;;  %v3983_v44 = vpack.c.bf16 %v299_v38, %v291_v36  ;;  %v379_v34 = vld [vmem:[#allocation5 + $0x870] sm:$0xff]  ;;  %v394_v36 = vld [vmem:[#allocation5 + $0x8e8] sm:$0xff] }
 0x177   :  { %v396_v38 = vld [vmem:[#allocation5 + $0x8f8] sm:$0xff]  ;;  %v443_v23 = vld [vmem:[#allocation5 + $0xa70] sm:$0xff]  ;;  %v450_v24 = vld [vmem:[#allocation5 + $0xaa8] sm:$0xff] }
 0x178   :  { %3708 = vmatpush1.bf16.msra.mxu0 %v3707_v47  ;;  %v313_v47 = vld [vmem:[#allocation5 + $0x660] sm:$0xff] }
 0x179   :  { %3964 = vmatpush1.bf16.msra.mxu1 %v3963_v48  ;;  %3710 = vmatprep.subr.bf16.mxu0 %v3709_v49  ;;  %v307_v48 = vld [vmem:[#allocation5 + $0x630] sm:$0xff]  ;;  %v3985_v49 = vpack.c.bf16 %v316_v42, %v308_v41  ;;  %v3731_v55 = vpack.c.bf16 %v313_v47, %v305_v46  ;;  %v3749_v41 = vpack.c.bf16 %v394_v36, %v386_v35  ;;  %v385_v42 = vld [vmem:[#allocation5 + $0x8a0] sm:$0xff]  ;;  %v402_v47 = vld [vmem:[#allocation5 + $0x928] sm:$0xff] }
 0x17a   :  { %3966 = vmatprep.subr.bf16.mxu1 %v3965_v53  ;;  %v324_v53 = vld [vmem:[#allocation5 + $0x6b8] sm:$0xff]  ;;  %v3987_v56 = vpack.c.bf16 %v315_v50, %v307_v48  ;;  %v395_v46 = vld [vmem:[#allocation5 + $0x8f0] sm:$0xff]  ;;  %v410_v48 = vld [vmem:[#allocation5 + $0x968] sm:$0xff] }
 0x17b   :  { %v404_v50 = vld [vmem:[#allocation5 + $0x938] sm:$0xff]  ;;  %v459_v36 = vld [vmem:[#allocation5 + $0xaf0] sm:$0xff] }
 0x17c   :  { %3712 = vmatpush1.bf16.msra.mxu0 %v3711_v59  ;;  %v329_v59 = vld [vmem:[#allocation5 + $0x6e0] sm:$0xff] }
 0x17d   :  { %3968 = vmatpush1.bf16.msra.mxu1 %v3967_v60  ;;  %3714 = vmatprep.subr.bf16.mxu0 %v3713_v61  ;;  %v323_v60 = vld [vmem:[#allocation5 + $0x6b0] sm:$0xff]  ;;  %v3989_v61 = vpack.c.bf16 %v332_v54, %v324_v53  ;;  %v3735_v3 = vpack.c.bf16 %v329_v59, %v321_v58  ;;  %v3753_v54 = vpack.c.bf16 %v410_v48, %v402_v47 }
 0x17e   :  { %3970 = vmatprep.subr.bf16.mxu1 %v3969_v1  ;;  %v340_v1 = vld [vmem:[#allocation5 + $0x738] sm:$0xff]  ;;  %v3991_v4 = vpack.c.bf16 %v331_v62, %v323_v60  ;;  %v4009_v58 = vpack.c.bf16 %v412_v51, %v404_v50  ;;  %v411_v59 = vld [vmem:[#allocation5 + $0x970] sm:$0xff]  ;;  %v418_v60 = vld [vmem:[#allocation5 + $0x9a8] sm:$0xff] }
 0x17f   :  { %v4477_v62 = vld [vmem:[#allocation2 + $0x48] sm:$0xff]  ;;  %v475_v48 = vld [vmem:[#allocation5 + $0xb70] sm:$0xff]  ;;  %v484_v51 = vld [vmem:[#allocation5 + $0xbb8] sm:$0xff] }
 0x180   :  { %3716 = vmatpush1.bf16.msra.mxu0 %v3715_v7  ;;  %v345_v7 = vld [vmem:[#allocation5 + $0x760] sm:$0xff]  ;;  %v490_v50 = vld [vmem:[#allocation5 + $0xbe8] sm:$0xff] }
 0x181   :  { %3972 = vmatpush1.bf16.msra.mxu1 %v3971_v8  ;;  %3718 = vmatprep.subr.bf16.mxu0 %v3717_v9  ;;  %v339_v8 = vld [vmem:[#allocation5 + $0x730] sm:$0xff]  ;;  %v3993_v9 = vpack.c.bf16 %v348_v2, %v340_v1  ;;  %v3739_v15 = vpack.c.bf16 %v345_v7, %v337_v6  ;;  %v4478_v1 = vld [vmem:[#allocation2 + $0x40] sm:$0xff] }
 0x182   :  { %3974 = vmatprep.subr.bf16.mxu1 %v3973_v13  ;;  %v356_v13 = vld [vmem:[#allocation5 + $0x7b8] sm:$0xff]  ;;  %v3995_v16 = vpack.c.bf16 %v347_v10, %v339_v8  ;;  %v425_v6 = vld [vmem:[#allocation5 + $0x9e0] sm:$0xff]  ;;  %v419_v7 = vld [vmem:[#allocation5 + $0x9b0] sm:$0xff]  ;;  %v4013_v8 = vpack.c.bf16 %v428_v0, %v420_v63 }
 0x183   :  { %v434_v10 = vld [vmem:[#allocation5 + $0xa28] sm:$0xff]  ;;  %v500_v63 = vld [vmem:[#allocation5 + $0xc38] sm:$0xff] }
 0x184   :  { %3720 = vmatpush1.bf16.msra.mxu0 %v3719_v19  ;;  %v361_v19 = vld [vmem:[#allocation5 + $0x7e0] sm:$0xff]  ;;  %v508_v0 = vld [vmem:[#allocation5 + $0xc78] sm:$0xff] }
 0x185   :  { %3976 = vmatpush1.bf16.msra.mxu1 %v3975_v20  ;;  %3722 = vmatprep.subr.bf16.mxu0 %v3721_v21  ;;  %v355_v20 = vld [vmem:[#allocation5 + $0x7b0] sm:$0xff]  ;;  %v3997_v21 = vpack.c.bf16 %v364_v14, %v356_v13  ;;  %v3743_v27 = vpack.c.bf16 %v361_v19, %v353_v18  ;;  %v436_v13 = vld [vmem:[#allocation5 + $0xa38] sm:$0xff]  ;;  %v3761_v18 = vpack.c.bf16 %v442_v11, %v434_v10  ;;  %v433_v19 = vld [vmem:[#allocation5 + $0xa20] sm:$0xff] }
 0x186   :  { %3978 = vmatprep.subr.bf16.mxu1 %v3977_v25  ;;  %v372_v25 = vld [vmem:[#allocation5 + $0x838] sm:$0xff]  ;;  %v3999_v28 = vpack.c.bf16 %v363_v22, %v355_v20  ;;  %v441_v20 = vld [vmem:[#allocation5 + $0xa60] sm:$0xff]  ;;  %v522_v10 = vld [vmem:[#allocation5 + $0xce8] sm:$0xff] }
 0x187   :  { %v444_v14 = vld [vmem:[#allocation5 + $0xa78] sm:$0xff] }
 0x188   :  { %3724 = vmatpush1.bf16.msra.mxu0 %v3723_v31  ;;  %v377_v31 = vld [vmem:[#allocation5 + $0x860] sm:$0xff]  ;;  %v4017_v22 = vpack.c.bf16 %v444_v14, %v436_v13  ;;  %v516_v11 = vld [vmem:[#allocation5 + $0xcb8] sm:$0xff] }
 0x189   :  { %3980 = vmatpush1.bf16.msra.mxu1 %v3979_v32  ;;  %3726 = vmatprep.subr.bf16.mxu0 %v3725_v33  ;;  %v371_v32 = vld [vmem:[#allocation5 + $0x830] sm:$0xff]  ;;  %v4001_v33 = vpack.c.bf16 %v380_v26, %v372_v25  ;;  %v3747_v39 = vpack.c.bf16 %v377_v31, %v369_v30  ;;  %v458_v25 = vld [vmem:[#allocation5 + $0xae8] sm:$0xff]  ;;  %v4481_v26 = vld [vmem:[#allocation2 + $0x18] sm:$0xff] }
 0x18a   :  { %3982 = vmatprep.subr.bf16.mxu1 %v3981_v37  ;;  %v388_v37 = vld [vmem:[#allocation5 + $0x8b8] sm:$0xff]  ;;  %v4003_v40 = vpack.c.bf16 %v379_v34, %v371_v32  ;;  %v3765_v31 = vpack.c.bf16 %v458_v25, %v450_v24  ;;  %v449_v32 = vld [vmem:[#allocation5 + $0xaa0] sm:$0xff]  ;;  %v451_v34 = vld [vmem:[#allocation5 + $0xab0] sm:$0xff] }
 0x18b   :  { %v540_v24 = vld [vmem:[#allocation5 + $0xd78] sm:$0xff] }
 0x18c   :  { %3728 = vmatpush1.bf16.msra.mxu0 %v3727_v43  ;;  %v393_v43 = vld [vmem:[#allocation5 + $0x8e0] sm:$0xff] }
 0x18d   :  { %3984 = vmatpush1.bf16.msra.mxu1 %v3983_v44  ;;  %3730 = vmatprep.subr.bf16.mxu0 %v3729_v45  ;;  %v387_v44 = vld [vmem:[#allocation5 + $0x8b0] sm:$0xff]  ;;  %v4005_v45 = vpack.c.bf16 %v396_v38, %v388_v37  ;;  %v3751_v52 = vpack.c.bf16 %v393_v43, %v385_v42  ;;  %v466_v37 = vld [vmem:[#allocation5 + $0xb28] sm:$0xff]  ;;  %v4023_v42 = vpack.c.bf16 %v459_v36, %v451_v34  ;;  %v556_v36 = vld [vmem:[#allocation5 + $0xdf8] sm:$0xff] }
 0x18e   :  { %3986 = vmatprep.subr.bf16.mxu1 %v3985_v49  ;;  %v4476_v49 = vld [vmem:[#allocation2] sm:$0xff]  ;;  %v4007_v53 = vpack.c.bf16 %v395_v46, %v387_v44  ;;  %v474_v38 = vld [vmem:[#allocation5 + $0xb68] sm:$0xff]  ;;  %v467_v46 = vld [vmem:[#allocation5 + $0xb30] sm:$0xff] }
 0x18f   :  { %v3769_v43 = vpack.c.bf16 %v474_v38, %v466_v37  ;;  %v465_v44 = vld [vmem:[#allocation5 + $0xb20] sm:$0xff]  ;;  %v554_v34 = vld [vmem:[#allocation5 + $0xde8] sm:$0xff] }
 0x190   :  { %3732 = vmatpush1.bf16.msra.mxu0 %v3731_v55  ;;  %v401_v55 = vld [vmem:[#allocation5 + $0x920] sm:$0xff] }
 0x191   :  { %3988 = vmatpush1.bf16.msra.mxu1 %v3987_v56  ;;  %3734 = vmatprep.subr.bf16.mxu0 %v3733_v57  ;;  %v409_v56 = vld [vmem:[#allocation5 + $0x960] sm:$0xff]  ;;  %v403_v57 = vld [vmem:[#allocation5 + $0x930] sm:$0xff] }
 0x192   :  { %3990 = vmatprep.subr.bf16.mxu1 %v3989_v61  ;;  %v426_v61 = vld [vmem:[#allocation5 + $0x9e8] sm:$0xff]  ;;  %v3755_v2 = vpack.c.bf16 %v409_v56, %v401_v55  ;;  %v481_v56 = vld [vmem:[#allocation5 + $0xba0] sm:$0xff] }
 0x194   :  { %3736 = vmatpush1.bf16.msra.mxu0 %v3735_v3  ;;  %v4011_v3 = vpack.c.bf16 %v411_v59, %v403_v57  ;;  %v489_v57 = vld [vmem:[#allocation5 + $0xbe0] sm:$0xff] }
 0x195   :  { %3992 = vmatpush1.bf16.msra.mxu1 %v3991_v4  ;;  %3738 = vmatprep.subr.bf16.mxu0 %v3737_v5  ;;  %v3757_v4 = vpack.c.bf16 %v426_v61, %v418_v60  ;;  %v417_v5 = vld [vmem:[#allocation5 + $0x9a0] sm:$0xff]  ;;  %v491_v60 = vld [vmem:[#allocation5 + $0xbf0] sm:$0xff]  ;;  %v498_v61 = vld [vmem:[#allocation5 + $0xc28] sm:$0xff] }
 0x196   :  { %3994 = vmatprep.subr.bf16.mxu1 %v3993_v9  ;;  %v427_v9 = vld [vmem:[#allocation5 + $0x9f0] sm:$0xff] }
 0x198   :  { %3740 = vmatpush1.bf16.msra.mxu0 %v3739_v15  ;;  %v4480_v15 = vld [vmem:[#allocation2 + $0x80] sm:$0xff] }
 0x199   :  { %3996 = vmatpush1.bf16.msra.mxu1 %v3995_v16  ;;  %3742 = vmatprep.subr.bf16.mxu0 %v3741_v17  ;;  %v3759_v16 = vpack.c.bf16 %v425_v6, %v417_v5  ;;  %v4015_v17 = vpack.c.bf16 %v427_v9, %v419_v7  ;;  %v505_v5 = vld [vmem:[#allocation5 + $0xc60] sm:$0xff]  ;;  %v499_v6 = vld [vmem:[#allocation5 + $0xc30] sm:$0xff]  ;;  %v4033_v7 = vpack.c.bf16 %v508_v0, %v500_v63  ;;  %v514_v9 = vld [vmem:[#allocation5 + $0xca8] sm:$0xff] }
 0x19a   :  { %3998 = vmatprep.subr.bf16.mxu1 %v3997_v21  ;;  %v435_v21 = vld [vmem:[#allocation5 + $0xa30] sm:$0xff]  ;;  %v577_v0 = vld [vmem:[#allocation5 + $0xea0] sm:$0xff] }
 0x19b   :  { %v4019_v30 = vpack.c.bf16 %v443_v23, %v435_v21  ;;  %v530_v21 = vld [vmem:[#allocation5 + $0xd28] sm:$0xff]  ;;  %v532_v23 = vld [vmem:[#allocation5 + $0xd38] sm:$0xff] }
 0x19c   :  { %3744 = vmatpush1.bf16.msra.mxu0 %v3743_v27  ;;  %v452_v27 = vld [vmem:[#allocation5 + $0xab8] sm:$0xff] }
 0x19d   :  { %4000 = vmatpush1.bf16.msra.mxu1 %v3999_v28  ;;  %3746 = vmatprep.subr.bf16.mxu0 %v3745_v29  ;;  %v460_v28 = vld [vmem:[#allocation5 + $0xaf8] sm:$0xff]  ;;  %v3763_v29 = vpack.c.bf16 %v441_v20, %v433_v19  ;;  %v523_v20 = vld [vmem:[#allocation5 + $0xcf0] sm:$0xff] }
 0x19e   :  { %4002 = vmatprep.subr.bf16.mxu1 %v4001_v33  ;;  %v457_v33 = vld [vmem:[#allocation5 + $0xae0] sm:$0xff]  ;;  %v4021_v35 = vpack.c.bf16 %v460_v28, %v452_v27 }
 0x19f   :  { %1904 = vmatmul.mubr.f32.vlgmr.msra.gmra.mrb[6].mxu0 %v4476_v49  ;;  %v529_v28 = vld [vmem:[#allocation5 + $0xd20] sm:$0xff] }
 0x1a0   :  { %3748 = vmatpush1.bf16.msra.mxu0 %v3747_v39  ;;  %2236 = vmatmul.mubr.f32.vlgmr.msra.gmra.mrb[6].mxu1 %v4476_v49  ;;  %v468_v39 = vld [vmem:[#allocation5 + $0xb38] sm:$0xff]  ;;  %v482_v49 = vld [vmem:[#allocation5 + $0xba8] sm:$0xff] }
 0x1a1   :  { %4004 = vmatpush1.bf16.msra.mxu1 %v4003_v40  ;;  %3750 = vmatprep.subr.bf16.mxu0 %v3749_v41  ;;  %v476_v40 = vld [vmem:[#allocation5 + $0xb78] sm:$0xff]  ;;  %v3767_v41 = vpack.c.bf16 %v457_v33, %v449_v32  ;;  %v3773_v55 = vpack.c.bf16 %v490_v50, %v482_v49  ;;  %v539_v32 = vld [vmem:[#allocation5 + $0xd70] sm:$0xff]  ;;  %v546_v33 = vld [vmem:[#allocation5 + $0xda8] sm:$0xff] }
 0x1a2   :  { %4006 = vmatprep.subr.bf16.mxu1 %v4005_v45  ;;  %1909 = vmatprep.mubr.f32.mxu0 %v4477_v62  ;;  %v473_v45 = vld [vmem:[#allocation5 + $0xb60] sm:$0xff]  ;;  %v4025_v47 = vpack.c.bf16 %v476_v40, %v468_v39  ;;  %v3789_v39 = vpack.c.bf16 %v554_v34, %v546_v33 }
 0x1a3   :  { %2241 = vmatprep.mubr.f32.mxu1 %v4477_v62  ;;  %1910 = vmatmul.mubr.f32.gmra.mrb[8].mxu0 %v4478_v1  ;;  %v506_v62 = vld [vmem:[#allocation5 + $0xc68] sm:$0xff]  ;;  %v545_v40 = vld [vmem:[#allocation5 + $0xda0] sm:$0xff] }
 0x1a4   :  { %3752 = vmatpush1.bf16.msra.mxu0 %v3751_v52  ;;  %2242 = vmatmul.mubr.f32.gmra.mrb[8].mxu1 %v4478_v1  ;;  %v492_v52 = vld [vmem:[#allocation5 + $0xbf8] sm:$0xff]  ;;  %v3775_v1 = vpack.c.bf16 %v489_v57, %v481_v56  ;;  %v571_v56 = vld [vmem:[#allocation5 + $0xe70] sm:$0xff]  ;;  %v578_v57 = vld [vmem:[#allocation5 + $0xea8] sm:$0xff] }
 0x1a5   :  { %4008 = vmatpush1.bf16.msra.mxu1 %v4007_v53  ;;  %3754 = vmatprep.subr.bf16.mxu0 %v3753_v54  ;;  %v3771_v53 = vpack.c.bf16 %v473_v45, %v465_v44  ;;  %v4027_v54 = vpack.c.bf16 %v475_v48, %v467_v46  ;;  %v4029_v59 = vpack.c.bf16 %v492_v52, %v484_v51  ;;  %v555_v44 = vld [vmem:[#allocation5 + $0xdf0] sm:$0xff]  ;;  %v562_v45 = vld [vmem:[#allocation5 + $0xe28] sm:$0xff]  ;;  %v572_v48 = vld [vmem:[#allocation5 + $0xe78] sm:$0xff] }
 0x1a6   :  { %4010 = vmatprep.subr.bf16.mxu1 %v4009_v58  ;;  %1915 = vmatprep.mubr.f32.mxu0 %v4479_v12  ;;  %v483_v58 = vld [vmem:[#allocation5 + $0xbb0] sm:$0xff]  ;;  %v570_v46 = vld [vmem:[#allocation5 + $0xe68] sm:$0xff]  ;;  %v561_v52 = vld [vmem:[#allocation5 + $0xe20] sm:$0xff] }
 0x1a7   :  { %2247 = vmatprep.mubr.f32.mxu1 %v4479_v12  ;;  %1916 = vmatmul.mubr.f32.gmra.mrb[10].mxu0 %v4480_v15  ;;  %v524_v12 = vld [vmem:[#allocation5 + $0xcf8] sm:$0xff]  ;;  %v3793_v51 = vpack.c.bf16 %v570_v46, %v562_v45 }
 0x1a8   :  { %3756 = vmatpush1.bf16.msra.mxu0 %v3755_v2  ;;  %2248 = vmatmul.mubr.f32.gmra.mrb[10].mxu1 %v4480_v15  ;;  %v4031_v2 = vpack.c.bf16 %v491_v60, %v483_v58  ;;  %v3781_v15 = vpack.c.bf16 %v522_v10, %v514_v9  ;;  %v4037_v19 = vpack.c.bf16 %v524_v12, %v516_v11  ;;  %v586_v58 = vld [vmem:[#allocation5 + $0xee8] sm:$0xff]  ;;  %v588_v60 = vld [vmem:[#allocation5 + $0xef8] sm:$0xff]  ;;  %v593_v12 = vld [vmem:[#allocation5 + $0xf20] sm:$0xff] }
 0x1a9   :  { %4012 = vmatpush1.bf16.msra.mxu1 %v4011_v3  ;;  %3758 = vmatprep.subr.bf16.mxu0 %v3757_v4  ;;  %v3777_v3 = vpack.c.bf16 %v506_v62, %v498_v61  ;;  %v497_v4 = vld [vmem:[#allocation5 + $0xc20] sm:$0xff]  ;;  %v3797_v63 = vpack.c.bf16 %v586_v58, %v578_v57  ;;  %v668_v57 = vld [vmem:[#allocation5 + $0x1178] sm:$0xff] }
 0x1aa   :  { %4014 = vmatprep.subr.bf16.mxu1 %v4013_v8  ;;  %1986 = vmatprep.mubr.f32.mxu0 %v4481_v26  ;;  %v507_v8 = vld [vmem:[#allocation5 + $0xc70] sm:$0xff]  ;;  %v3779_v13 = vpack.c.bf16 %v505_v5, %v497_v4  ;;  %v594_v5 = vld [vmem:[#allocation5 + $0xf28] sm:$0xff] }
 0x1ab   :  { %2318 = vmatprep.mubr.f32.mxu1 %v4481_v26  ;;  %v4035_v14 = vpack.c.bf16 %v507_v8, %v499_v6  ;;  %v587_v4 = vld [vmem:[#allocation5 + $0xef0] sm:$0xff]  ;;  %v602_v6 = vld [vmem:[#allocation5 + $0xf68] sm:$0xff]  ;;  %v604_v8 = vld [vmem:[#allocation5 + $0xf78] sm:$0xff] }
 0x1ac   :  { %3760 = vmatpush1.bf16.msra.mxu0 %v3759_v16  ;;  %v513_v16 = vld [vmem:[#allocation5 + $0xca0] sm:$0xff]  ;;  %v3801_v11 = vpack.c.bf16 %v602_v6, %v594_v5  ;;  %v676_v5 = vld [vmem:[#allocation5 + $0x11b8] sm:$0xff] }
 0x1ad   :  { %4016 = vmatpush1.bf16.msra.mxu1 %v4015_v17  ;;  %3762 = vmatprep.subr.bf16.mxu0 %v3761_v18  ;;  %v521_v17 = vld [vmem:[#allocation5 + $0xce0] sm:$0xff]  ;;  %v515_v18 = vld [vmem:[#allocation5 + $0xcb0] sm:$0xff]  ;;  %v684_v6 = vld [vmem:[#allocation5 + $0x11f8] sm:$0xff] }
 0x1ae   :  { %4018 = vmatprep.subr.bf16.mxu1 %v4017_v22  ;;  %v538_v22 = vld [vmem:[#allocation5 + $0xd68] sm:$0xff]  ;;  %v3783_v25 = vpack.c.bf16 %v521_v17, %v513_v16  ;;  %v4039_v26 = vpack.c.bf16 %v523_v20, %v515_v18  ;;  %v603_v16 = vld [vmem:[#allocation5 + $0xf70] sm:$0xff]  ;;  %v620_v20 = vld [vmem:[#allocation5 + $0xff8] sm:$0xff] }
 0x1af   :  { %v3785_v27 = vpack.c.bf16 %v538_v22, %v530_v21  ;;  %v610_v17 = vld [vmem:[#allocation5 + $0xfa8] sm:$0xff] }
 0x1b0   :  { %3764 = vmatpush1.bf16.msra.mxu0 %v3763_v29  ;;  %v537_v29 = vld [vmem:[#allocation5 + $0xd60] sm:$0xff]  ;;  %v618_v18 = vld [vmem:[#allocation5 + $0xfe8] sm:$0xff] }
 0x1b1   :  { %4020 = vmatpush1.bf16.msra.mxu1 %v4019_v30  ;;  %3766 = vmatprep.subr.bf16.mxu0 %v3765_v31  ;;  %v531_v30 = vld [vmem:[#allocation5 + $0xd30] sm:$0xff]  ;;  %v4041_v31 = vpack.c.bf16 %v540_v24, %v532_v23  ;;  %v3787_v37 = vpack.c.bf16 %v537_v29, %v529_v28  ;;  %v3805_v23 = vpack.c.bf16 %v618_v18, %v610_v17  ;;  %v609_v24 = vld [vmem:[#allocation5 + $0xfa0] sm:$0xff]  ;;  %v626_v29 = vld [vmem:[#allocation5 + $0x1028] sm:$0xff] }
 0x1b2   :  { %4022 = vmatprep.subr.bf16.mxu1 %v4021_v35  ;;  %v548_v35 = vld [vmem:[#allocation5 + $0xdb8] sm:$0xff]  ;;  %v4043_v38 = vpack.c.bf16 %v539_v32, %v531_v30  ;;  %v619_v28 = vld [vmem:[#allocation5 + $0xff0] sm:$0xff]  ;;  %v634_v30 = vld [vmem:[#allocation5 + $0x1068] sm:$0xff] }
 0x1b3   :  { %v636_v32 = vld [vmem:[#allocation5 + $0x1078] sm:$0xff]  ;;  %v698_v17 = vld [vmem:[#allocation5 + $0x1268] sm:$0xff] }
 0x1b4   :  { %3768 = vmatpush1.bf16.msra.mxu0 %v3767_v41  ;;  %v553_v41 = vld [vmem:[#allocation5 + $0xde0] sm:$0xff]  ;;  %v4485_v18 = vld [vmem:[#allocation2 + $0x98] sm:$0xff] }
 0x1b5   :  { %4024 = vmatpush1.bf16.msra.mxu1 %v4023_v42  ;;  %3770 = vmatprep.subr.bf16.mxu0 %v3769_v43  ;;  %v547_v42 = vld [vmem:[#allocation5 + $0xdb0] sm:$0xff]  ;;  %v4045_v43 = vpack.c.bf16 %v556_v36, %v548_v35  ;;  %v3791_v49 = vpack.c.bf16 %v553_v41, %v545_v40  ;;  %v3809_v35 = vpack.c.bf16 %v634_v30, %v626_v29  ;;  %v625_v36 = vld [vmem:[#allocation5 + $0x1020] sm:$0xff]  ;;  %v642_v41 = vld [vmem:[#allocation5 + $0x10a8] sm:$0xff] }
 0x1b6   :  { %4026 = vmatprep.subr.bf16.mxu1 %v4025_v47  ;;  %v564_v47 = vld [vmem:[#allocation5 + $0xe38] sm:$0xff]  ;;  %v4047_v50 = vpack.c.bf16 %v555_v44, %v547_v42  ;;  %v635_v40 = vld [vmem:[#allocation5 + $0x1070] sm:$0xff]  ;;  %v650_v42 = vld [vmem:[#allocation5 + $0x10e8] sm:$0xff] }
 0x1b7   :  { %v652_v44 = vld [vmem:[#allocation5 + $0x10f8] sm:$0xff]  ;;  %v699_v29 = vld [vmem:[#allocation5 + $0x1270] sm:$0xff]  ;;  %v706_v30 = vld [vmem:[#allocation5 + $0x12a8] sm:$0xff] }
 0x1b8   :  { %3772 = vmatpush1.bf16.msra.mxu0 %v3771_v53  ;;  %v569_v53 = vld [vmem:[#allocation5 + $0xe60] sm:$0xff] }
 0x1b9   :  { %4028 = vmatpush1.bf16.msra.mxu1 %v4027_v54  ;;  %3774 = vmatprep.subr.bf16.mxu0 %v3773_v55  ;;  %v563_v54 = vld [vmem:[#allocation5 + $0xe30] sm:$0xff]  ;;  %v4049_v55 = vpack.c.bf16 %v572_v48, %v564_v47  ;;  %v3795_v61 = vpack.c.bf16 %v569_v53, %v561_v52  ;;  %v3813_v47 = vpack.c.bf16 %v650_v42, %v642_v41  ;;  %v641_v48 = vld [vmem:[#allocation5 + $0x10a0] sm:$0xff]  ;;  %v658_v53 = vld [vmem:[#allocation5 + $0x1128] sm:$0xff] }
 0x1ba   :  { %4030 = vmatprep.subr.bf16.mxu1 %v4029_v59  ;;  %v580_v59 = vld [vmem:[#allocation5 + $0xeb8] sm:$0xff]  ;;  %v4051_v62 = vpack.c.bf16 %v571_v56, %v563_v54  ;;  %v651_v52 = vld [vmem:[#allocation5 + $0x10f0] sm:$0xff]  ;;  %v666_v54 = vld [vmem:[#allocation5 + $0x1168] sm:$0xff] }
 0x1bb   :  { %v660_v56 = vld [vmem:[#allocation5 + $0x1138] sm:$0xff]  ;;  %v715_v42 = vld [vmem:[#allocation5 + $0x12f0] sm:$0xff] }
 0x1bc   :  { %3776 = vmatpush1.bf16.msra.mxu0 %v3775_v1  ;;  %v585_v1 = vld [vmem:[#allocation5 + $0xee0] sm:$0xff] }
 0x1bd   :  { %4032 = vmatpush1.bf16.msra.mxu1 %v4031_v2  ;;  %3778 = vmatprep.subr.bf16.mxu0 %v3777_v3  ;;  %v579_v2 = vld [vmem:[#allocation5 + $0xeb0] sm:$0xff]  ;;  %v4053_v3 = vpack.c.bf16 %v588_v60, %v580_v59  ;;  %v3799_v9 = vpack.c.bf16 %v585_v1, %v577_v0  ;;  %v3817_v60 = vpack.c.bf16 %v666_v54, %v658_v53 }
 0x1be   :  { %4034 = vmatprep.subr.bf16.mxu1 %v4033_v7  ;;  %v596_v7 = vld [vmem:[#allocation5 + $0xf38] sm:$0xff]  ;;  %v4055_v10 = vpack.c.bf16 %v587_v4, %v579_v2  ;;  %v4073_v0 = vpack.c.bf16 %v668_v57, %v660_v56  ;;  %v667_v1 = vld [vmem:[#allocation5 + $0x1170] sm:$0xff]  ;;  %v674_v2 = vld [vmem:[#allocation5 + $0x11a8] sm:$0xff] }
 0x1bf   :  { %v4483_v4 = vld [vmem:[#allocation2 + $0x58] sm:$0xff]  ;;  %v731_v54 = vld [vmem:[#allocation5 + $0x1370] sm:$0xff]  ;;  %v746_v56 = vld [vmem:[#allocation5 + $0x13e8] sm:$0xff] }
 0x1c0   :  { %3780 = vmatpush1.bf16.msra.mxu0 %v3779_v13  ;;  %v601_v13 = vld [vmem:[#allocation5 + $0xf60] sm:$0xff]  ;;  %v740_v57 = vld [vmem:[#allocation5 + $0x13b8] sm:$0xff] }
 0x1c1   :  { %4036 = vmatpush1.bf16.msra.mxu1 %v4035_v14  ;;  %3782 = vmatprep.subr.bf16.mxu0 %v3781_v15  ;;  %v595_v14 = vld [vmem:[#allocation5 + $0xf30] sm:$0xff]  ;;  %v4057_v15 = vpack.c.bf16 %v604_v8, %v596_v7  ;;  %v3803_v21 = vpack.c.bf16 %v601_v13, %v593_v12  ;;  %v681_v12 = vld [vmem:[#allocation5 + $0x11e0] sm:$0xff] }
 0x1c2   :  { %4038 = vmatprep.subr.bf16.mxu1 %v4037_v19  ;;  %v612_v19 = vld [vmem:[#allocation5 + $0xfb8] sm:$0xff]  ;;  %v4059_v22 = vpack.c.bf16 %v603_v16, %v595_v14  ;;  %v4484_v7 = vld [vmem:[#allocation2 + $0x50] sm:$0xff]  ;;  %v4077_v14 = vpack.c.bf16 %v684_v6, %v676_v5  ;;  %v690_v16 = vld [vmem:[#allocation5 + $0x1228] sm:$0xff] }
 0x1c3   :  { %v675_v13 = vld [vmem:[#allocation5 + $0x11b0] sm:$0xff]  ;;  %v756_v5 = vld [vmem:[#allocation5 + $0x1438] sm:$0xff] }
 0x1c4   :  { %3784 = vmatpush1.bf16.msra.mxu0 %v3783_v25  ;;  %v617_v25 = vld [vmem:[#allocation5 + $0xfe0] sm:$0xff]  ;;  %v764_v6 = vld [vmem:[#allocation5 + $0x1478] sm:$0xff] }
 0x1c5   :  { %4040 = vmatpush1.bf16.msra.mxu1 %v4039_v26  ;;  %3786 = vmatprep.subr.bf16.mxu0 %v3785_v27  ;;  %v611_v26 = vld [vmem:[#allocation5 + $0xfb0] sm:$0xff]  ;;  %v4061_v27 = vpack.c.bf16 %v620_v20, %v612_v19  ;;  %v3807_v33 = vpack.c.bf16 %v617_v25, %v609_v24  ;;  %v692_v19 = vld [vmem:[#allocation5 + $0x1238] sm:$0xff]  ;;  %v3825_v24 = vpack.c.bf16 %v698_v17, %v690_v16  ;;  %v689_v25 = vld [vmem:[#allocation5 + $0x1220] sm:$0xff] }
 0x1c6   :  { %4042 = vmatprep.subr.bf16.mxu1 %v4041_v31  ;;  %v628_v31 = vld [vmem:[#allocation5 + $0x1038] sm:$0xff]  ;;  %v4063_v34 = vpack.c.bf16 %v619_v28, %v611_v26  ;;  %v697_v26 = vld [vmem:[#allocation5 + $0x1260] sm:$0xff]  ;;  %v778_v16 = vld [vmem:[#allocation5 + $0x14e8] sm:$0xff] }
 0x1c7   :  { %v700_v20 = vld [vmem:[#allocation5 + $0x1278] sm:$0xff] }
 0x1c8   :  { %3788 = vmatpush1.bf16.msra.mxu0 %v3787_v37  ;;  %v633_v37 = vld [vmem:[#allocation5 + $0x1060] sm:$0xff]  ;;  %v4081_v28 = vpack.c.bf16 %v700_v20, %v692_v19  ;;  %v772_v17 = vld [vmem:[#allocation5 + $0x14b8] sm:$0xff] }
 0x1c9   :  { %4044 = vmatpush1.bf16.msra.mxu1 %v4043_v38  ;;  %3790 = vmatprep.subr.bf16.mxu0 %v3789_v39  ;;  %v627_v38 = vld [vmem:[#allocation5 + $0x1030] sm:$0xff]  ;;  %v4065_v39 = vpack.c.bf16 %v636_v32, %v628_v31  ;;  %v3811_v45 = vpack.c.bf16 %v633_v37, %v625_v36  ;;  %v714_v31 = vld [vmem:[#allocation5 + $0x12e8] sm:$0xff] }
 0x1ca   :  { %4046 = vmatprep.subr.bf16.mxu1 %v4045_v43  ;;  %v644_v43 = vld [vmem:[#allocation5 + $0x10b8] sm:$0xff]  ;;  %v4067_v46 = vpack.c.bf16 %v635_v40, %v627_v38  ;;  %v4487_v32 = vld [vmem:[#allocation2 + $0x28] sm:$0xff]  ;;  %v3829_v37 = vpack.c.bf16 %v714_v31, %v706_v30  ;;  %v705_v38 = vld [vmem:[#allocation5 + $0x12a0] sm:$0xff] }
 0x1cb   :  { %v707_v40 = vld [vmem:[#allocation5 + $0x12b0] sm:$0xff]  ;;  %v796_v30 = vld [vmem:[#allocation5 + $0x1578] sm:$0xff] }
 0x1cc   :  { %3792 = vmatpush1.bf16.msra.mxu0 %v3791_v49  ;;  %v649_v49 = vld [vmem:[#allocation5 + $0x10e0] sm:$0xff] }
 0x1cd   :  { %4048 = vmatpush1.bf16.msra.mxu1 %v4047_v50  ;;  %3794 = vmatprep.subr.bf16.mxu0 %v3793_v51  ;;  %v643_v50 = vld [vmem:[#allocation5 + $0x10b0] sm:$0xff]  ;;  %v4069_v51 = vpack.c.bf16 %v652_v44, %v644_v43  ;;  %v3815_v58 = vpack.c.bf16 %v649_v49, %v641_v48  ;;  %v722_v43 = vld [vmem:[#allocation5 + $0x1328] sm:$0xff]  ;;  %v4087_v48 = vpack.c.bf16 %v715_v42, %v707_v40  ;;  %v812_v42 = vld [vmem:[#allocation5 + $0x15f8] sm:$0xff] }
 0x1ce   :  { %4050 = vmatprep.subr.bf16.mxu1 %v4049_v55  ;;  %v4482_v55 = vld [vmem:[#allocation2 + $0x10] sm:$0xff]  ;;  %v4071_v59 = vpack.c.bf16 %v651_v52, %v643_v50  ;;  %v730_v44 = vld [vmem:[#allocation5 + $0x1368] sm:$0xff]  ;;  %v721_v50 = vld [vmem:[#allocation5 + $0x1320] sm:$0xff] }
 0x1cf   :  { %v3833_v49 = vpack.c.bf16 %v730_v44, %v722_v43  ;;  %v723_v52 = vld [vmem:[#allocation5 + $0x1330] sm:$0xff]  ;;  %v810_v40 = vld [vmem:[#allocation5 + $0x15e8] sm:$0xff] }
 0x1d0   :  { %3796 = vmatpush1.bf16.msra.mxu0 %v3795_v61  ;;  %v657_v61 = vld [vmem:[#allocation5 + $0x1120] sm:$0xff] }
 0x1d1   :  { %4052 = vmatpush1.bf16.msra.mxu1 %v4051_v62  ;;  %3798 = vmatprep.subr.bf16.mxu0 %v3797_v63  ;;  %v665_v62 = vld [vmem:[#allocation5 + $0x1160] sm:$0xff]  ;;  %v659_v63 = vld [vmem:[#allocation5 + $0x1130] sm:$0xff] }
 0x1d2   :  { %4054 = vmatprep.subr.bf16.mxu1 %v4053_v3  ;;  %v682_v3 = vld [vmem:[#allocation5 + $0x11e8] sm:$0xff]  ;;  %v3819_v8 = vpack.c.bf16 %v665_v62, %v657_v61  ;;  %v737_v62 = vld [vmem:[#allocation5 + $0x13a0] sm:$0xff] }
 0x1d4   :  { %3800 = vmatpush1.bf16.msra.mxu0 %v3799_v9  ;;  %v4075_v9 = vpack.c.bf16 %v667_v1, %v659_v63  ;;  %v745_v63 = vld [vmem:[#allocation5 + $0x13e0] sm:$0xff] }
 0x1d5   :  { %4056 = vmatpush1.bf16.msra.mxu1 %v4055_v10  ;;  %3802 = vmatprep.subr.bf16.mxu0 %v3801_v11  ;;  %v3821_v10 = vpack.c.bf16 %v682_v3, %v674_v2  ;;  %v673_v11 = vld [vmem:[#allocation5 + $0x11a0] sm:$0xff]  ;;  %v747_v2 = vld [vmem:[#allocation5 + $0x13f0] sm:$0xff]  ;;  %v754_v3 = vld [vmem:[#allocation5 + $0x1428] sm:$0xff] }
 0x1d6   :  { %4058 = vmatprep.subr.bf16.mxu1 %v4057_v15  ;;  %v683_v15 = vld [vmem:[#allocation5 + $0x11f0] sm:$0xff] }
 0x1d8   :  { %3804 = vmatpush1.bf16.msra.mxu0 %v3803_v21  ;;  %v4486_v21 = vld [vmem:[#allocation2 + $0x90] sm:$0xff] }
 0x1d9   :  { %4060 = vmatpush1.bf16.msra.mxu1 %v4059_v22  ;;  %3806 = vmatprep.subr.bf16.mxu0 %v3805_v23  ;;  %v3823_v22 = vpack.c.bf16 %v681_v12, %v673_v11  ;;  %v4079_v23 = vpack.c.bf16 %v683_v15, %v675_v13  ;;  %v761_v11 = vld [vmem:[#allocation5 + $0x1460] sm:$0xff]  ;;  %v755_v12 = vld [vmem:[#allocation5 + $0x1430] sm:$0xff]  ;;  %v4097_v13 = vpack.c.bf16 %v764_v6, %v756_v5  ;;  %v770_v15 = vld [vmem:[#allocation5 + $0x14a8] sm:$0xff] }
 0x1da   :  { %4062 = vmatprep.subr.bf16.mxu1 %v4061_v27  ;;  %v691_v27 = vld [vmem:[#allocation5 + $0x1230] sm:$0xff]  ;;  %v833_v6 = vld [vmem:[#allocation5 + $0x16a0] sm:$0xff] }
 0x1db   :  { %v4083_v36 = vpack.c.bf16 %v699_v29, %v691_v27  ;;  %v786_v27 = vld [vmem:[#allocation5 + $0x1528] sm:$0xff]  ;;  %v788_v29 = vld [vmem:[#allocation5 + $0x1538] sm:$0xff] }
 0x1dc   :  { %3808 = vmatpush1.bf16.msra.mxu0 %v3807_v33  ;;  %v708_v33 = vld [vmem:[#allocation5 + $0x12b8] sm:$0xff] }
 0x1dd   :  { %4064 = vmatpush1.bf16.msra.mxu1 %v4063_v34  ;;  %3810 = vmatprep.subr.bf16.mxu0 %v3809_v35  ;;  %v716_v34 = vld [vmem:[#allocation5 + $0x12f8] sm:$0xff]  ;;  %v3827_v35 = vpack.c.bf16 %v697_v26, %v689_v25  ;;  %v779_v26 = vld [vmem:[#allocation5 + $0x14f0] sm:$0xff] }
 0x1de   :  { %4066 = vmatprep.subr.bf16.mxu1 %v4065_v39  ;;  %v713_v39 = vld [vmem:[#allocation5 + $0x12e0] sm:$0xff]  ;;  %v4085_v41 = vpack.c.bf16 %v716_v34, %v708_v33 }
 0x1df   :  { %1987 = vmatmul.mubr.f32.vlgmr.msra.gmra.mrb[6].mxu0 %v4482_v55  ;;  %v785_v34 = vld [vmem:[#allocation5 + $0x1520] sm:$0xff] }
 0x1e0   :  { %3812 = vmatpush1.bf16.msra.mxu0 %v3811_v45  ;;  %2319 = vmatmul.mubr.f32.vlgmr.msra.gmra.mrb[6].mxu1 %v4482_v55  ;;  %v724_v45 = vld [vmem:[#allocation5 + $0x1338] sm:$0xff]  ;;  %v738_v55 = vld [vmem:[#allocation5 + $0x13a8] sm:$0xff] }
 0x1e1   :  { %4068 = vmatpush1.bf16.msra.mxu1 %v4067_v46  ;;  %3814 = vmatprep.subr.bf16.mxu0 %v3813_v47  ;;  %v732_v46 = vld [vmem:[#allocation5 + $0x1378] sm:$0xff]  ;;  %v3831_v47 = vpack.c.bf16 %v713_v39, %v705_v38  ;;  %v3837_v61 = vpack.c.bf16 %v746_v56, %v738_v55  ;;  %v795_v38 = vld [vmem:[#allocation5 + $0x1570] sm:$0xff]  ;;  %v802_v39 = vld [vmem:[#allocation5 + $0x15a8] sm:$0xff] }
 0x1e2   :  { %4070 = vmatprep.subr.bf16.mxu1 %v4069_v51  ;;  %1992 = vmatprep.mubr.f32.mxu0 %v4483_v4  ;;  %v729_v51 = vld [vmem:[#allocation5 + $0x1360] sm:$0xff]  ;;  %v4089_v53 = vpack.c.bf16 %v732_v46, %v724_v45  ;;  %v3853_v45 = vpack.c.bf16 %v810_v40, %v802_v39 }
 0x1e3   :  { %2324 = vmatprep.mubr.f32.mxu1 %v4483_v4  ;;  %1993 = vmatmul.mubr.f32.gmra.mrb[8].mxu0 %v4484_v7  ;;  %v762_v4 = vld [vmem:[#allocation5 + $0x1468] sm:$0xff]  ;;  %v801_v46 = vld [vmem:[#allocation5 + $0x15a0] sm:$0xff] }
 0x1e4   :  { %3816 = vmatpush1.bf16.msra.mxu0 %v3815_v58  ;;  %2325 = vmatmul.mubr.f32.gmra.mrb[8].mxu1 %v4484_v7  ;;  %v748_v58 = vld [vmem:[#allocation5 + $0x13f8] sm:$0xff]  ;;  %v3839_v7 = vpack.c.bf16 %v745_v63, %v737_v62  ;;  %v827_v62 = vld [vmem:[#allocation5 + $0x1670] sm:$0xff]  ;;  %v834_v63 = vld [vmem:[#allocation5 + $0x16a8] sm:$0xff] }
 0x1e5   :  { %4072 = vmatpush1.bf16.msra.mxu1 %v4071_v59  ;;  %3818 = vmatprep.subr.bf16.mxu0 %v3817_v60  ;;  %v3835_v59 = vpack.c.bf16 %v729_v51, %v721_v50  ;;  %v4091_v60 = vpack.c.bf16 %v731_v54, %v723_v52  ;;  %v4093_v1 = vpack.c.bf16 %v748_v58, %v740_v57  ;;  %v811_v50 = vld [vmem:[#allocation5 + $0x15f0] sm:$0xff]  ;;  %v818_v51 = vld [vmem:[#allocation5 + $0x1628] sm:$0xff]  ;;  %v828_v54 = vld [vmem:[#allocation5 + $0x1678] sm:$0xff] }
 0x1e6   :  { %4074 = vmatprep.subr.bf16.mxu1 %v4073_v0  ;;  %1998 = vmatprep.mubr.f32.mxu0 %v4485_v18  ;;  %v739_v0 = vld [vmem:[#allocation5 + $0x13b0] sm:$0xff]  ;;  %v826_v52 = vld [vmem:[#allocation5 + $0x1668] sm:$0xff]  ;;  %v817_v58 = vld [vmem:[#allocation5 + $0x1620] sm:$0xff] }
 0x1e7   :  { %2330 = vmatprep.mubr.f32.mxu1 %v4485_v18  ;;  %1999 = vmatmul.mubr.f32.gmra.mrb[10].mxu0 %v4486_v21  ;;  %v780_v18 = vld [vmem:[#allocation5 + $0x14f8] sm:$0xff]  ;;  %v3857_v57 = vpack.c.bf16 %v826_v52, %v818_v51 }
 0x1e8   :  { %3820 = vmatpush1.bf16.msra.mxu0 %v3819_v8  ;;  %2331 = vmatmul.mubr.f32.gmra.mrb[10].mxu1 %v4486_v21  ;;  %v4095_v8 = vpack.c.bf16 %v747_v2, %v739_v0  ;;  %v3845_v21 = vpack.c.bf16 %v778_v16, %v770_v15  ;;  %v4101_v25 = vpack.c.bf16 %v780_v18, %v772_v17  ;;  %v842_v0 = vld [vmem:[#allocation5 + $0x16e8] sm:$0xff]  ;;  %v844_v2 = vld [vmem:[#allocation5 + $0x16f8] sm:$0xff]  ;;  %v849_v18 = vld [vmem:[#allocation5 + $0x1720] sm:$0xff] }
 0x1e9   :  { %4076 = vmatpush1.bf16.msra.mxu1 %v4075_v9  ;;  %3822 = vmatprep.subr.bf16.mxu0 %v3821_v10  ;;  %v3841_v9 = vpack.c.bf16 %v762_v4, %v754_v3  ;;  %v753_v10 = vld [vmem:[#allocation5 + $0x1420] sm:$0xff]  ;;  %v3861_v5 = vpack.c.bf16 %v842_v0, %v834_v63  ;;  %v924_v63 = vld [vmem:[#allocation5 + $0x1978] sm:$0xff] }
 0x1ea   :  { %4078 = vmatprep.subr.bf16.mxu1 %v4077_v14  ;;  %2069 = vmatprep.mubr.f32.mxu0 %v4487_v32  ;;  %v763_v14 = vld [vmem:[#allocation5 + $0x1470] sm:$0xff]  ;;  %v3843_v19 = vpack.c.bf16 %v761_v11, %v753_v10  ;;  %v850_v11 = vld [vmem:[#allocation5 + $0x1728] sm:$0xff] }
 0x1eb   :  { %2401 = vmatprep.mubr.f32.mxu1 %v4487_v32  ;;  %v4099_v20 = vpack.c.bf16 %v763_v14, %v755_v12  ;;  %v843_v10 = vld [vmem:[#allocation5 + $0x16f0] sm:$0xff]  ;;  %v858_v12 = vld [vmem:[#allocation5 + $0x1768] sm:$0xff]  ;;  %v860_v14 = vld [vmem:[#allocation5 + $0x1778] sm:$0xff] }
 0x1ec   :  { %3824 = vmatpush1.bf16.msra.mxu0 %v3823_v22  ;;  %v769_v22 = vld [vmem:[#allocation5 + $0x14a0] sm:$0xff]  ;;  %v3865_v17 = vpack.c.bf16 %v858_v12, %v850_v11  ;;  %v932_v11 = vld [vmem:[#allocation5 + $0x19b8] sm:$0xff] }
 0x1ed   :  { %4080 = vmatpush1.bf16.msra.mxu1 %v4079_v23  ;;  %3826 = vmatprep.subr.bf16.mxu0 %v3825_v24  ;;  %v777_v23 = vld [vmem:[#allocation5 + $0x14e0] sm:$0xff]  ;;  %v771_v24 = vld [vmem:[#allocation5 + $0x14b0] sm:$0xff]  ;;  %v940_v12 = vld [vmem:[#allocation5 + $0x19f8] sm:$0xff] }
 0x1ee   :  { %4082 = vmatprep.subr.bf16.mxu1 %v4081_v28  ;;  %v794_v28 = vld [vmem:[#allocation5 + $0x1568] sm:$0xff]  ;;  %v3847_v31 = vpack.c.bf16 %v777_v23, %v769_v22  ;;  %v4103_v32 = vpack.c.bf16 %v779_v26, %v771_v24  ;;  %v859_v22 = vld [vmem:[#allocation5 + $0x1770] sm:$0xff]  ;;  %v876_v26 = vld [vmem:[#allocation5 + $0x17f8] sm:$0xff] }
 0x1ef   :  { %v3849_v33 = vpack.c.bf16 %v794_v28, %v786_v27  ;;  %v866_v23 = vld [vmem:[#allocation5 + $0x17a8] sm:$0xff] }
 0x1f0   :  { %3828 = vmatpush1.bf16.msra.mxu0 %v3827_v35  ;;  %v793_v35 = vld [vmem:[#allocation5 + $0x1560] sm:$0xff]  ;;  %v874_v24 = vld [vmem:[#allocation5 + $0x17e8] sm:$0xff] }
 0x1f1   :  { %4084 = vmatpush1.bf16.msra.mxu1 %v4083_v36  ;;  %3830 = vmatprep.subr.bf16.mxu0 %v3829_v37  ;;  %v787_v36 = vld [vmem:[#allocation5 + $0x1530] sm:$0xff]  ;;  %v4105_v37 = vpack.c.bf16 %v796_v30, %v788_v29  ;;  %v3851_v43 = vpack.c.bf16 %v793_v35, %v785_v34  ;;  %v3869_v29 = vpack.c.bf16 %v874_v24, %v866_v23  ;;  %v865_v30 = vld [vmem:[#allocation5 + $0x17a0] sm:$0xff]  ;;  %v882_v35 = vld [vmem:[#allocation5 + $0x1828] sm:$0xff] }
 0x1f2   :  { %4086 = vmatprep.subr.bf16.mxu1 %v4085_v41  ;;  %v804_v41 = vld [vmem:[#allocation5 + $0x15b8] sm:$0xff]  ;;  %v4107_v44 = vpack.c.bf16 %v795_v38, %v787_v36  ;;  %v875_v34 = vld [vmem:[#allocation5 + $0x17f0] sm:$0xff]  ;;  %v890_v36 = vld [vmem:[#allocation5 + $0x1868] sm:$0xff] }
 0x1f3   :  { %v892_v38 = vld [vmem:[#allocation5 + $0x1878] sm:$0xff]  ;;  %v954_v23 = vld [vmem:[#allocation5 + $0x1a68] sm:$0xff] }
 0x1f4   :  { %3832 = vmatpush1.bf16.msra.mxu0 %v3831_v47  ;;  %v809_v47 = vld [vmem:[#allocation5 + $0x15e0] sm:$0xff]  ;;  %v4491_v24 = vld [vmem:[#allocation2 + $0xa8] sm:$0xff] }
 0x1f5   :  { %4088 = vmatpush1.bf16.msra.mxu1 %v4087_v48  ;;  %3834 = vmatprep.subr.bf16.mxu0 %v3833_v49  ;;  %v803_v48 = vld [vmem:[#allocation5 + $0x15b0] sm:$0xff]  ;;  %v4109_v49 = vpack.c.bf16 %v812_v42, %v804_v41  ;;  %v3855_v55 = vpack.c.bf16 %v809_v47, %v801_v46  ;;  %v3873_v41 = vpack.c.bf16 %v890_v36, %v882_v35  ;;  %v881_v42 = vld [vmem:[#allocation5 + $0x1820] sm:$0xff]  ;;  %v898_v47 = vld [vmem:[#allocation5 + $0x18a8] sm:$0xff] }
 0x1f6   :  { %4090 = vmatprep.subr.bf16.mxu1 %v4089_v53  ;;  %v820_v53 = vld [vmem:[#allocation5 + $0x1638] sm:$0xff]  ;;  %v4111_v56 = vpack.c.bf16 %v811_v50, %v803_v48  ;;  %v891_v46 = vld [vmem:[#allocation5 + $0x1870] sm:$0xff]  ;;  %v906_v48 = vld [vmem:[#allocation5 + $0x18e8] sm:$0xff] }
 0x1f7   :  { %v908_v50 = vld [vmem:[#allocation5 + $0x18f8] sm:$0xff]  ;;  %v955_v35 = vld [vmem:[#allocation5 + $0x1a70] sm:$0xff]  ;;  %v962_v36 = vld [vmem:[#allocation5 + $0x1aa8] sm:$0xff] }
 0x1f8   :  { %3836 = vmatpush1.bf16.msra.mxu0 %v3835_v59  ;;  %v825_v59 = vld [vmem:[#allocation5 + $0x1660] sm:$0xff] }
 0x1f9   :  { %4092 = vmatpush1.bf16.msra.mxu1 %v4091_v60  ;;  %3838 = vmatprep.subr.bf16.mxu0 %v3837_v61  ;;  %v819_v60 = vld [vmem:[#allocation5 + $0x1630] sm:$0xff]  ;;  %v4113_v61 = vpack.c.bf16 %v828_v54, %v820_v53  ;;  %v3859_v3 = vpack.c.bf16 %v825_v59, %v817_v58  ;;  %v3877_v53 = vpack.c.bf16 %v906_v48, %v898_v47  ;;  %v897_v54 = vld [vmem:[#allocation5 + $0x18a0] sm:$0xff]  ;;  %v914_v59 = vld [vmem:[#allocation5 + $0x1928] sm:$0xff] }
 0x1fa   :  { %4094 = vmatprep.subr.bf16.mxu1 %v4093_v1  ;;  %v836_v1 = vld [vmem:[#allocation5 + $0x16b8] sm:$0xff]  ;;  %v4115_v4 = vpack.c.bf16 %v827_v62, %v819_v60  ;;  %v907_v58 = vld [vmem:[#allocation5 + $0x18f0] sm:$0xff]  ;;  %v922_v60 = vld [vmem:[#allocation5 + $0x1968] sm:$0xff] }
 0x1fb   :  { %v916_v62 = vld [vmem:[#allocation5 + $0x1938] sm:$0xff]  ;;  %v971_v48 = vld [vmem:[#allocation5 + $0x1af0] sm:$0xff] }
 0x1fc   :  { %3840 = vmatpush1.bf16.msra.mxu0 %v3839_v7  ;;  %v841_v7 = vld [vmem:[#allocation5 + $0x16e0] sm:$0xff] }
 0x1fd   :  { %4096 = vmatpush1.bf16.msra.mxu1 %v4095_v8  ;;  %3842 = vmatprep.subr.bf16.mxu0 %v3841_v9  ;;  %v835_v8 = vld [vmem:[#allocation5 + $0x16b0] sm:$0xff]  ;;  %v4117_v9 = vpack.c.bf16 %v844_v2, %v836_v1  ;;  %v3863_v15 = vpack.c.bf16 %v841_v7, %v833_v6  ;;  %v3881_v2 = vpack.c.bf16 %v922_v60, %v914_v59 }
 0x1fe   :  { %4098 = vmatprep.subr.bf16.mxu1 %v4097_v13  ;;  %v852_v13 = vld [vmem:[#allocation5 + $0x1738] sm:$0xff]  ;;  %v4119_v16 = vpack.c.bf16 %v843_v10, %v835_v8  ;;  %v4137_v6 = vpack.c.bf16 %v924_v63, %v916_v62  ;;  %v923_v7 = vld [vmem:[#allocation5 + $0x1970] sm:$0xff]  ;;  %v930_v8 = vld [vmem:[#allocation5 + $0x19a8] sm:$0xff] }
 0x1ff   :  { %v4489_v10 = vld [vmem:[#allocation2 + $0x68] sm:$0xff] }
 0x200   :  { %3844 = vmatpush1.bf16.msra.mxu0 %v3843_v19  ;;  %v857_v19 = vld [vmem:[#allocation5 + $0x1760] sm:$0xff]  ;;  %v994_v62 = vld [vmem:[#allocation5 + $0x1ba8] sm:$0xff] }
 0x201   :  { %4100 = vmatpush1.bf16.msra.mxu1 %v4099_v20  ;;  %3846 = vmatprep.subr.bf16.mxu0 %v3845_v21  ;;  %v851_v20 = vld [vmem:[#allocation5 + $0x1730] sm:$0xff]  ;;  %v4121_v21 = vpack.c.bf16 %v860_v14, %v852_v13  ;;  %v3867_v27 = vpack.c.bf16 %v857_v19, %v849_v18  ;;  %v4490_v13 = vld [vmem:[#allocation2 + $0x60] sm:$0xff]  ;;  %v1002_v63 = vld [vmem:[#allocation5 + $0x1be8] sm:$0xff] }
 0x202   :  { %4102 = vmatprep.subr.bf16.mxu1 %v4101_v25  ;;  %v868_v25 = vld [vmem:[#allocation5 + $0x17b8] sm:$0xff]  ;;  %v4123_v28 = vpack.c.bf16 %v859_v22, %v851_v20  ;;  %v937_v18 = vld [vmem:[#allocation5 + $0x19e0] sm:$0xff]  ;;  %v931_v19 = vld [vmem:[#allocation5 + $0x19b0] sm:$0xff]  ;;  %v4141_v20 = vpack.c.bf16 %v940_v12, %v932_v11 }
 0x203   :  { %v946_v22 = vld [vmem:[#allocation5 + $0x1a28] sm:$0xff] }
 0x204   :  { %3848 = vmatpush1.bf16.msra.mxu0 %v3847_v31  ;;  %v873_v31 = vld [vmem:[#allocation5 + $0x17e0] sm:$0xff] }
 0x205   :  { %4104 = vmatpush1.bf16.msra.mxu1 %v4103_v32  ;;  %3850 = vmatprep.subr.bf16.mxu0 %v3849_v33  ;;  %v867_v32 = vld [vmem:[#allocation5 + $0x17b0] sm:$0xff]  ;;  %v4125_v33 = vpack.c.bf16 %v876_v26, %v868_v25  ;;  %v3871_v39 = vpack.c.bf16 %v873_v31, %v865_v30  ;;  %v948_v25 = vld [vmem:[#allocation5 + $0x1a38] sm:$0xff]  ;;  %v3889_v30 = vpack.c.bf16 %v954_v23, %v946_v22  ;;  %v945_v31 = vld [vmem:[#allocation5 + $0x1a20] sm:$0xff] }
 0x206   :  { %4106 = vmatprep.subr.bf16.mxu1 %v4105_v37  ;;  %v884_v37 = vld [vmem:[#allocation5 + $0x1838] sm:$0xff]  ;;  %v4127_v40 = vpack.c.bf16 %v875_v34, %v867_v32  ;;  %v953_v32 = vld [vmem:[#allocation5 + $0x1a60] sm:$0xff] }
 0x207   :  { %v956_v26 = vld [vmem:[#allocation5 + $0x1a78] sm:$0xff] }
 0x208   :  { %3852 = vmatpush1.bf16.msra.mxu0 %v3851_v43  ;;  %v889_v43 = vld [vmem:[#allocation5 + $0x1860] sm:$0xff]  ;;  %v4145_v34 = vpack.c.bf16 %v956_v26, %v948_v25  ;;  %v1011_v26 = vld [vmem:[#allocation5 + $0x1c30] sm:$0xff] }
 0x209   :  { %4108 = vmatpush1.bf16.msra.mxu1 %v4107_v44  ;;  %3854 = vmatprep.subr.bf16.mxu0 %v3853_v45  ;;  %v883_v44 = vld [vmem:[#allocation5 + $0x1830] sm:$0xff]  ;;  %v4129_v45 = vpack.c.bf16 %v892_v38, %v884_v37  ;;  %v3875_v51 = vpack.c.bf16 %v889_v43, %v881_v42  ;;  %v970_v37 = vld [vmem:[#allocation5 + $0x1ae8] sm:$0xff]  ;;  %v4493_v38 = vld [vmem:[#allocation2 + $0x38] sm:$0xff] }
 0x20a   :  { %4110 = vmatprep.subr.bf16.mxu1 %v4109_v49  ;;  %v900_v49 = vld [vmem:[#allocation5 + $0x18b8] sm:$0xff]  ;;  %v4131_v52 = vpack.c.bf16 %v891_v46, %v883_v44  ;;  %v3893_v43 = vpack.c.bf16 %v970_v37, %v962_v36  ;;  %v961_v44 = vld [vmem:[#allocation5 + $0x1aa0] sm:$0xff]  ;;  %v963_v46 = vld [vmem:[#allocation5 + $0x1ab0] sm:$0xff] }
 0x20b   :  { %v1017_v25 = vld [vmem:[#allocation5 + $0x1c60] sm:$0xff] }
 0x20c   :  { %3856 = vmatpush1.bf16.msra.mxu0 %v3855_v55  ;;  %v905_v55 = vld [vmem:[#allocation5 + $0x18e0] sm:$0xff] }
 0x20d   :  { %4112 = vmatpush1.bf16.msra.mxu1 %v4111_v56  ;;  %3858 = vmatprep.subr.bf16.mxu0 %v3857_v57  ;;  %v899_v56 = vld [vmem:[#allocation5 + $0x18b0] sm:$0xff]  ;;  %v4133_v57 = vpack.c.bf16 %v908_v50, %v900_v49  ;;  %v3879_v0 = vpack.c.bf16 %v905_v55, %v897_v54  ;;  %v978_v49 = vld [vmem:[#allocation5 + $0x1b28] sm:$0xff]  ;;  %v4151_v54 = vpack.c.bf16 %v971_v48, %v963_v46  ;;  %v1052_v48 = vld [vmem:[#allocation5 + $0x1d78] sm:$0xff] }
 0x20e   :  { %4114 = vmatprep.subr.bf16.mxu1 %v4113_v61  ;;  %v4488_v61 = vld [vmem:[#allocation2 + $0x20] sm:$0xff]  ;;  %v4135_v1 = vpack.c.bf16 %v907_v58, %v899_v56  ;;  %v986_v50 = vld [vmem:[#allocation5 + $0x1b68] sm:$0xff]  ;;  %v979_v58 = vld [vmem:[#allocation5 + $0x1b30] sm:$0xff] }
 0x20f   :  { %v3897_v55 = vpack.c.bf16 %v986_v50, %v978_v49  ;;  %v977_v56 = vld [vmem:[#allocation5 + $0x1b20] sm:$0xff]  ;;  %v1050_v46 = vld [vmem:[#allocation5 + $0x1d68] sm:$0xff] }
 0x210   :  { %3860 = vmatpush1.bf16.msra.mxu0 %v3859_v3  ;;  %v913_v3 = vld [vmem:[#allocation5 + $0x1920] sm:$0xff] }
 0x211   :  { %4116 = vmatpush1.bf16.msra.mxu1 %v4115_v4  ;;  %3862 = vmatprep.subr.bf16.mxu0 %v3861_v5  ;;  %v921_v4 = vld [vmem:[#allocation5 + $0x1960] sm:$0xff]  ;;  %v915_v5 = vld [vmem:[#allocation5 + $0x1930] sm:$0xff] }
 0x212   :  { %4118 = vmatprep.subr.bf16.mxu1 %v4117_v9  ;;  %v938_v9 = vld [vmem:[#allocation5 + $0x19e8] sm:$0xff]  ;;  %v3883_v14 = vpack.c.bf16 %v921_v4, %v913_v3  ;;  %v1004_v3 = vld [vmem:[#allocation5 + $0x1bf8] sm:$0xff] }
 0x214   :  { %3864 = vmatpush1.bf16.msra.mxu0 %v3863_v15  ;;  %v4139_v15 = vpack.c.bf16 %v923_v7, %v915_v5  ;;  %v3901_v7 = vpack.c.bf16 %v1002_v63, %v994_v62 }
 0x215   :  { %4120 = vmatpush1.bf16.msra.mxu1 %v4119_v16  ;;  %3866 = vmatprep.subr.bf16.mxu0 %v3865_v17  ;;  %v3885_v16 = vpack.c.bf16 %v938_v9, %v930_v8  ;;  %v929_v17 = vld [vmem:[#allocation5 + $0x19a0] sm:$0xff] }
 0x216   :  { %4122 = vmatprep.subr.bf16.mxu1 %v4121_v21  ;;  %v939_v21 = vld [vmem:[#allocation5 + $0x19f0] sm:$0xff]  ;;  %v993_v8 = vld [vmem:[#allocation5 + $0x1ba0] sm:$0xff] }
 0x217   :  { %v1001_v9 = vld [vmem:[#allocation5 + $0x1be0] sm:$0xff] }
 0x218   :  { %3868 = vmatpush1.bf16.msra.mxu0 %v3867_v27  ;;  %v4492_v27 = vld [vmem:[#allocation2 + $0xa0] sm:$0xff] }
 0x219   :  { %4124 = vmatpush1.bf16.msra.mxu1 %v4123_v28  ;;  %3870 = vmatprep.subr.bf16.mxu0 %v3869_v29  ;;  %v3887_v28 = vpack.c.bf16 %v937_v18, %v929_v17  ;;  %v4143_v29 = vpack.c.bf16 %v939_v21, %v931_v19  ;;  %v1012_v18 = vld [vmem:[#allocation5 + $0x1c38] sm:$0xff]  ;;  %v3903_v21 = vpack.c.bf16 %v1001_v9, %v993_v8  ;;  %v1067_v8 = vld [vmem:[#allocation5 + $0x1df0] sm:$0xff]  ;;  %v1074_v9 = vld [vmem:[#allocation5 + $0x1e28] sm:$0xff] }
 0x21a   :  { %4126 = vmatprep.subr.bf16.mxu1 %v4125_v33  ;;  %v947_v33 = vld [vmem:[#allocation5 + $0x1a30] sm:$0xff]  ;;  %v1020_v19 = vld [vmem:[#allocation5 + $0x1c78] sm:$0xff] }
 0x21b   :  { %v4147_v42 = vpack.c.bf16 %v955_v35, %v947_v33  ;;  %v1036_v35 = vld [vmem:[#allocation5 + $0x1cf8] sm:$0xff] }
 0x21c   :  { %3872 = vmatpush1.bf16.msra.mxu0 %v3871_v39  ;;  %v964_v39 = vld [vmem:[#allocation5 + $0x1ab8] sm:$0xff] }
 0x21d   :  { %4128 = vmatpush1.bf16.msra.mxu1 %v4127_v40  ;;  %3874 = vmatprep.subr.bf16.mxu0 %v3873_v41  ;;  %v972_v40 = vld [vmem:[#allocation5 + $0x1af8] sm:$0xff]  ;;  %v3891_v41 = vpack.c.bf16 %v953_v32, %v945_v31  ;;  %v1034_v31 = vld [vmem:[#allocation5 + $0x1ce8] sm:$0xff] }
 0x21e   :  { %4130 = vmatprep.subr.bf16.mxu1 %v4129_v45  ;;  %v969_v45 = vld [vmem:[#allocation5 + $0x1ae0] sm:$0xff]  ;;  %v4149_v47 = vpack.c.bf16 %v972_v40, %v964_v39 }
 0x21f   :  { %2070 = vmatmul.mubr.f32.vlgmr.msra.gmra.mrb[6].mxu0 %v4488_v61  ;;  %v1025_v40 = vld [vmem:[#allocation5 + $0x1ca0] sm:$0xff] }
 0x220   :  { %3876 = vmatpush1.bf16.msra.mxu0 %v3875_v51  ;;  %2402 = vmatmul.mubr.f32.vlgmr.msra.gmra.mrb[6].mxu1 %v4488_v61  ;;  %v980_v51 = vld [vmem:[#allocation5 + $0x1b38] sm:$0xff]  ;;  %v987_v61 = vld [vmem:[#allocation5 + $0x1b70] sm:$0xff] }
 0x221   :  { %4132 = vmatpush1.bf16.msra.mxu1 %v4131_v52  ;;  %3878 = vmatprep.subr.bf16.mxu0 %v3877_v53  ;;  %v988_v52 = vld [vmem:[#allocation5 + $0x1b78] sm:$0xff]  ;;  %v3895_v53 = vpack.c.bf16 %v969_v45, %v961_v44  ;;  %v1035_v44 = vld [vmem:[#allocation5 + $0x1cf0] sm:$0xff]  ;;  %v1042_v45 = vld [vmem:[#allocation5 + $0x1d28] sm:$0xff] }
 0x222   :  { %4134 = vmatprep.subr.bf16.mxu1 %v4133_v57  ;;  %2075 = vmatprep.mubr.f32.mxu0 %v4489_v10  ;;  %v985_v57 = vld [vmem:[#allocation5 + $0x1b60] sm:$0xff]  ;;  %v4153_v60 = vpack.c.bf16 %v988_v52, %v980_v51  ;;  %v3913_v51 = vpack.c.bf16 %v1050_v46, %v1042_v45  ;;  %v1108_v45 = vld [vmem:[#allocation5 + $0x1f38] sm:$0xff] }
 0x223   :  { %2407 = vmatprep.mubr.f32.mxu1 %v4489_v10  ;;  %2076 = vmatmul.mubr.f32.gmra.mrb[8].mxu0 %v4490_v13  ;;  %v3899_v5 = vpack.c.bf16 %v985_v57, %v977_v56  ;;  %v995_v10 = vld [vmem:[#allocation5 + $0x1bb0] sm:$0xff]  ;;  %v1041_v52 = vld [vmem:[#allocation5 + $0x1d20] sm:$0xff]  ;;  %v1058_v57 = vld [vmem:[#allocation5 + $0x1da8] sm:$0xff] }
 0x224   :  { %3880 = vmatpush1.bf16.msra.mxu0 %v3879_v0  ;;  %2408 = vmatmul.mubr.f32.gmra.mrb[8].mxu1 %v4490_v13  ;;  %v1003_v13 = vld [vmem:[#allocation5 + $0x1bf0] sm:$0xff]  ;;  %v1116_v46 = vld [vmem:[#allocation5 + $0x1f78] sm:$0xff] }
 0x225   :  { %4136 = vmatpush1.bf16.msra.mxu1 %v4135_v1  ;;  %3882 = vmatprep.subr.bf16.mxu0 %v3881_v2  ;;  %v996_v2 = vld [vmem:[#allocation5 + $0x1bb8] sm:$0xff]  ;;  %v4159_v22 = vpack.c.bf16 %v1003_v13, %v995_v10  ;;  %v1051_v56 = vld [vmem:[#allocation5 + $0x1d70] sm:$0xff]  ;;  %v1082_v10 = vld [vmem:[#allocation5 + $0x1e68] sm:$0xff] }
 0x226   :  { %4138 = vmatprep.subr.bf16.mxu1 %v4137_v6  ;;  %2081 = vmatprep.mubr.f32.mxu0 %v4491_v24  ;;  %v4155_v6 = vpack.c.bf16 %v987_v61, %v979_v58  ;;  %v4157_v12 = vpack.c.bf16 %v1004_v3, %v996_v2  ;;  %v1066_v58 = vld [vmem:[#allocation5 + $0x1de8] sm:$0xff]  ;;  %v1068_v61 = vld [vmem:[#allocation5 + $0x1df8] sm:$0xff]  ;;  %v1057_v3 = vld [vmem:[#allocation5 + $0x1da0] sm:$0xff] }
 0x227   :  { %2413 = vmatprep.mubr.f32.mxu1 %v4491_v24  ;;  %2082 = vmatmul.mubr.f32.gmra.mrb[10].mxu0 %v4492_v27  ;;  %v1009_v24 = vld [vmem:[#allocation5 + $0x1c20] sm:$0xff]  ;;  %v3917_v2 = vpack.c.bf16 %v1066_v58, %v1058_v57  ;;  %v1084_v13 = vld [vmem:[#allocation5 + $0x1e78] sm:$0xff]  ;;  %v1130_v57 = vld [vmem:[#allocation5 + $0x1fe8] sm:$0xff] }
 0x228   :  { %3884 = vmatpush1.bf16.msra.mxu0 %v3883_v14  ;;  %2414 = vmatmul.mubr.f32.gmra.mrb[10].mxu1 %v4492_v27  ;;  %v1010_v14 = vld [vmem:[#allocation5 + $0x1c28] sm:$0xff]  ;;  %v3907_v37 = vpack.c.bf16 %v1017_v25, %v1009_v24  ;;  %v1083_v25 = vld [vmem:[#allocation5 + $0x1e70] sm:$0xff]  ;;  %v4782_v58 = vld [vmem:[#allocation7] sm:$0xff] }
 0x229   :  { %4140 = vmatpush1.bf16.msra.mxu1 %v4139_v15  ;;  %3886 = vmatprep.subr.bf16.mxu0 %v3885_v16  ;;  %v1018_v15 = vld [vmem:[#allocation5 + $0x1c68] sm:$0xff] }
 0x22a   :  { %4142 = vmatprep.subr.bf16.mxu1 %v4141_v20  ;;  %2152 = vmatprep.mubr.f32.mxu0 %v4493_v38  ;;  %v3905_v23 = vpack.c.bf16 %v1018_v15, %v1010_v14 }
 0x22b   :  { %2484 = vmatprep.mubr.f32.mxu1 %v4493_v38 }
 0x22c   :  { %3888 = vmatpush1.bf16.msra.mxu0 %v3887_v28  ;;  %v4161_v28 = vpack.c.bf16 %v1020_v19, %v1012_v18  ;;  %v3921_v18 = vpack.c.bf16 %v1082_v10, %v1074_v9  ;;  %v1073_v19 = vld [vmem:[#allocation5 + $0x1e20] sm:$0xff]  ;;  %v1131_v10 = vld [vmem:[#allocation5 + $0x1ff0] sm:$0xff] }
 0x22d   :  { %4144 = vmatpush1.bf16.msra.mxu1 %v4143_v29  ;;  %3890 = vmatprep.subr.bf16.mxu0 %v3889_v30  ;;  %v1019_v29 = vld [vmem:[#allocation5 + $0x1c70] sm:$0xff]  ;;  %v1026_v30 = vld [vmem:[#allocation5 + $0x1ca8] sm:$0xff] }
 0x22e   :  { %4146 = vmatprep.subr.bf16.mxu1 %v4145_v34  ;;  %v1028_v34 = vld [vmem:[#allocation5 + $0x1cb8] sm:$0xff]  ;;  %v4163_v38 = vpack.c.bf16 %v1019_v29, %v1011_v26  ;;  %v3909_v39 = vpack.c.bf16 %v1034_v31, %v1026_v30  ;;  %v1090_v26 = vld [vmem:[#allocation5 + $0x1ea8] sm:$0xff] }
 0x22f   :  { %v1092_v29 = vld [vmem:[#allocation5 + $0x1eb8] sm:$0xff] }
 0x230   :  { %3892 = vmatpush1.bf16.msra.mxu0 %v3891_v41  ;;  %v1033_v41 = vld [vmem:[#allocation5 + $0x1ce0] sm:$0xff]  ;;  %v1100_v30 = vld [vmem:[#allocation5 + $0x1ef8] sm:$0xff] }
 0x231   :  { %4148 = vmatpush1.bf16.msra.mxu1 %v4147_v42  ;;  %3894 = vmatprep.subr.bf16.mxu0 %v3893_v43  ;;  %v1027_v42 = vld [vmem:[#allocation5 + $0x1cb0] sm:$0xff]  ;;  %v4165_v43 = vpack.c.bf16 %v1036_v35, %v1028_v34  ;;  %v3911_v49 = vpack.c.bf16 %v1033_v41, %v1025_v40  ;;  %v4181_v41 = vpack.c.bf16 %v1100_v30, %v1092_v29 }
 0x232   :  { %v4755_v59 = vpop.f32.mrb[0].mxu0  ;;  %4150 = vmatprep.subr.bf16.mxu1 %v4149_v47  ;;  %v1044_v47 = vld [vmem:[#allocation5 + $0x1d38] sm:$0xff]  ;;  %v4167_v50 = vpack.c.bf16 %v1035_v44, %v1027_v42  ;;  %v1099_v42 = vld [vmem:[#allocation5 + $0x1ef0] sm:$0xff]  ;;  %v1114_v44 = vld [vmem:[#allocation5 + $0x1f68] sm:$0xff] }
 0x233   :  { %v4757_v0 = vpop.f32.mrb[0].mxu1  ;;  %v4759_v1 = vpop.f32.mrb[1].mxu0  ;;  %v2560_v29 = vld [vmem:[#allocation8 + $0x108] sm:$0xff] }
 0x234   :  { %v4761_v4 = vpop.f32.mrb[1].mxu1  ;;  %3896 = vmatpush1.bf16.msra.mxu0 %v3895_v53  ;;  %v1049_v53 = vld [vmem:[#allocation5 + $0x1d60] sm:$0xff] }
 0x235   :  { %4152 = vmatpush1.bf16.msra.mxu1 %v4151_v54  ;;  %3898 = vmatprep.subr.bf16.mxu0 %v3897_v55  ;;  %v1043_v54 = vld [vmem:[#allocation5 + $0x1d30] sm:$0xff]  ;;  %v4169_v55 = vpack.c.bf16 %v1052_v48, %v1044_v47  ;;  %v3915_v62 = vpack.c.bf16 %v1049_v53, %v1041_v52 }
 0x236   :  { %v4763_v11 = vpop.f32.mrb[2].mxu0  ;;  %4154 = vmatprep.subr.bf16.mxu1 %v4153_v60  ;;  %v1060_v60 = vld [vmem:[#allocation5 + $0x1db8] sm:$0xff]  ;;  %v4171_v63 = vpack.c.bf16 %v1051_v56, %v1043_v54  ;;  %v1107_v52 = vld [vmem:[#allocation5 + $0x1f30] sm:$0xff]  ;;  %v4185_v54 = vpack.c.bf16 %v1116_v46, %v1108_v45  ;;  %v1122_v56 = vld [vmem:[#allocation5 + $0x1fa8] sm:$0xff] }
 0x237   :  { %v4765_v16 = vpop.f32.mrb[2].mxu1  ;;  %v4767_v17 = vpop.f32.mrb[3].mxu0  ;;  %v4494_v45 = vld [vmem:[#allocation2 + $0x30] sm:$0xff]  ;;  %v2547_v46 = vld [vmem:[#allocation8 + $0xa0] sm:$0xff] }
 0x238   :  { %v4769_v20 = vpop.f32.mrb[3].mxu1  ;;  %3900 = vmatpush1.bf16.msra.mxu0 %v3899_v5  ;;  %v1065_v5 = vld [vmem:[#allocation5 + $0x1de0] sm:$0xff] }
 0x239   :  { %4156 = vmatpush1.bf16.msra.mxu1 %v4155_v6  ;;  %3902 = vmatprep.subr.bf16.mxu0 %v3901_v7  ;;  %v1059_v6 = vld [vmem:[#allocation5 + $0x1db0] sm:$0xff]  ;;  %v4173_v7 = vpack.c.bf16 %v1068_v61, %v1060_v60  ;;  %v3919_v14 = vpack.c.bf16 %v1065_v5, %v1057_v3  ;;  %v1124_v61 = vld [vmem:[#allocation5 + $0x1fb8] sm:$0xff]  ;;  %v3933_v3 = vpack.c.bf16 %v1130_v57, %v1122_v56  ;;  %v1121_v5 = vld [vmem:[#allocation5 + $0x1fa0] sm:$0xff] }
 0x23a   :  { %v4771_v27 = vpop.f32.mrb[4].mxu0  ;;  %4158 = vmatprep.subr.bf16.mxu1 %v4157_v12  ;;  %v1076_v12 = vld [vmem:[#allocation5 + $0x1e38] sm:$0xff]  ;;  %v4175_v15 = vpack.c.bf16 %v1067_v8, %v1059_v6  ;;  %v1129_v6 = vld [vmem:[#allocation5 + $0x1fe0] sm:$0xff]  ;;  %v2563_v56 = vld [vmem:[#allocation8 + $0x120] sm:$0xff] }
 0x23b   :  { %v4773_v32 = vpop.f32.mrb[4].mxu1  ;;  %v4775_v33 = vpop.f32.mrb[5].mxu0  ;;  %v4177_v24 = vpack.c.bf16 %v1084_v13, %v1076_v12  ;;  %v2543_v12 = vld [vmem:[#allocation8 + $0x80] sm:$0xff]  ;;  %v2544_v13 = vld [vmem:[#allocation8 + $0x88] sm:$0xff] }
 0x23c   :  { %v4777_v36 = vpop.f32.mrb[5].mxu1  ;;  %3904 = vmatpush1.bf16.msra.mxu0 %v3903_v21  ;;  %v1081_v21 = vld [vmem:[#allocation5 + $0x1e60] sm:$0xff]  ;;  %v2564_v57 = vld [vmem:[#allocation8 + $0x128] sm:$0xff] }
 0x23d   :  { %4160 = vmatpush1.bf16.msra.mxu1 %v4159_v22  ;;  %3906 = vmatprep.subr.bf16.mxu0 %v3905_v23  ;;  %v1075_v22 = vld [vmem:[#allocation5 + $0x1e30] sm:$0xff]  ;;  %v1135_v23 = vlaneseq  ;;  %v3923_v31 = vpack.c.bf16 %v1081_v21, %v1073_v19  ;;  %v3935_v19 = vpack.c.bf16 %v1129_v6, %v1121_v5  ;;  %v2582_v5 = vld [vmem:[#allocation8 + $0x1b8] sm:$0xff]  ;;  %v4497_v6 = vld [vmem:[#allocation2 + $0xb8] sm:$0xff] }
 0x23e   :  { %4162 = vmatprep.subr.bf16.mxu1 %v4161_v28  ;;  %v1098_v28 = vld [vmem:[#allocation5 + $0x1ee8] sm:$0xff]  ;;  %v4179_v34 = vpack.c.bf16 %v1083_v25, %v1075_v22  ;;  %v4193_v22 = vpack.c.bf16 %v2544_v13, %v2543_v12  ;;  %v2565_v12 = vld [vmem:[#allocation8 + $0x130] sm:$0xff] }
 0x23f   :  { %v3925_v35 = vpack.c.bf16 %v1098_v28, %v1090_v26  ;;  %v4779_v40 = vshrl.u32 %v1135_v23, 7  ;;  %v2527_v23 = vld [vmem:[#allocation8] sm:$0xff] }
 0x240   :  { %3908 = vmatpush1.bf16.msra.mxu0 %v3907_v37  ;;  %v1089_v37 = vld [vmem:[#allocation5 + $0x1ea0] sm:$0xff]  ;;  %v2559_v28 = vld [vmem:[#allocation8 + $0x100] sm:$0xff] }
 0x241   :  { %4164 = vmatpush1.bf16.msra.mxu1 %v4163_v38  ;;  %3910 = vmatprep.subr.bf16.mxu0 %v3909_v39  ;;  %v1097_v38 = vld [vmem:[#allocation5 + $0x1ee0] sm:$0xff]  ;;  %v1091_v39 = vld [vmem:[#allocation5 + $0x1eb0] sm:$0xff]  ;;  %v1141_v53 = vsub.s32 1, %v4779_v40  ;;  %v1149_v60 = vsub.s32 3, %v4779_v40 }
 0x242   :  { %4166 = vmatprep.subr.bf16.mxu1 %v4165_v43  ;;  %v1106_v43 = vld [vmem:[#allocation5 + $0x1f28] sm:$0xff]  ;;  %v3927_v47 = vpack.c.bf16 %v1097_v38, %v1089_v37  ;;  %v4183_v48 = vpack.c.bf16 %v1099_v42, %v1091_v39  ;;  %v2577_v37 = vld [vmem:[#allocation8 + $0x190] sm:$0xff]  ;;  %v2578_v38 = vld [vmem:[#allocation8 + $0x198] sm:$0xff]  ;;  %v4227_v39 = vpack.c.bf16 %v2560_v29, %v2559_v28  ;;  %v1145_v28 = vsub.s32 2, %v4779_v40 }
 0x243   :  { %v4786_v8 = vrot.slane %v4782_v58, %v1141_v53  ;;  %v2530_v42 = vld [vmem:[#allocation8 + $0x18] sm:$0xff]  ;;  %v2531_v53 = vld [vmem:[#allocation8 + $0x20] sm:$0xff] }
 0x244   :  { %3912 = vmatpush1.bf16.msra.mxu0 %v3911_v49  ;;  %v3929_v49 = vpack.c.bf16 %v1114_v44, %v1106_v43  ;;  %v2561_v43 = vld [vmem:[#allocation8 + $0x110] sm:$0xff]  ;;  %v2562_v44 = vld [vmem:[#allocation8 + $0x118] sm:$0xff] }
 0x245   :  { %4168 = vmatpush1.bf16.msra.mxu1 %v4167_v50  ;;  %3914 = vmatprep.subr.bf16.mxu0 %v3913_v51  ;;  %v1105_v50 = vld [vmem:[#allocation5 + $0x1f20] sm:$0xff]  ;;  %v4322_v25 = vadd.f32 %v4759_v1, %v4786_v8 }
 0x246   :  { %4170 = vmatprep.subr.bf16.mxu1 %v4169_v55  ;;  %v1113_v51 = vld [vmem:[#allocation5 + $0x1f60] sm:$0xff]  ;;  %v1115_v55 = vld [vmem:[#allocation5 + $0x1f70] sm:$0xff] }
 0x247   :  { %4427 = vtanh.f32 %v4322_v25  ;;  %v2584_v25 = vld [vmem:[#allocation8 + $0x1c8] sm:$0xff] }
 0x248   :  { %3916 = vmatpush1.bf16.msra.mxu0 %v3915_v62  ;;  %v1132_v62 = vld [vmem:[#allocation5 + $0x1ff8] sm:$0xff] }
 0x249   :  { %4172 = vmatpush1.bf16.msra.mxu1 %v4171_v63  ;;  %3918 = vmatprep.subr.bf16.mxu0 %v3917_v2  ;;  %v3931_v63 = vpack.c.bf16 %v1113_v51, %v1105_v50  ;;  %v4187_v2 = vpack.c.bf16 %v1115_v55, %v1107_v52  ;;  %v4189_v9 = vpack.c.bf16 %v1132_v62, %v1124_v61  ;;  %v2580_v50 = vld [vmem:[#allocation8 + $0x1a8] sm:$0xff]  ;;  %v4495_v51 = vld [vmem:[#allocation2 + $0x78] sm:$0xff] }
 0x24a   :  { %4174 = vmatprep.subr.bf16.mxu1 %v4173_v7  ;;  %v1123_v7 = vld [vmem:[#allocation5 + $0x1fb0] sm:$0xff]  ;;  %v4231_v52 = vpack.c.bf16 %v2562_v44, %v2561_v43  ;;  %v2549_v62 = vld [vmem:[#allocation8 + $0xb0] sm:$0xff] }
 0x24b   :  { %v4191_v21 = vpack.c.bf16 %v1131_v10, %v1123_v7  ;;  %v4235_v7 = vpack.c.bf16 %v2564_v57, %v2563_v56  ;;  %v2534_v10 = vld [vmem:[#allocation8 + $0x38] sm:$0xff]  ;;  %v2585_v44 = vld [vmem:[#allocation8 + $0x1d0] sm:$0xff]  ;;  %v2587_v57 = vld [vmem:[#allocation8 + $0x1e0] sm:$0xff] }
 0x24c   :  { %3920 = vmatpush1.bf16.msra.mxu0 %v3919_v14  ;;  %v4789_v14 = vrot.slane %v4782_v58, %v1149_v60  ;;  %v4496_v60 = vld [vmem:[#allocation2 + $0x70] sm:$0xff] }
 0x24d   :  { %4176 = vmatpush1.bf16.msra.mxu1 %v4175_v15  ;;  %3922 = vmatprep.subr.bf16.mxu0 %v3921_v18  ;;  %v2575_v15 = vld [vmem:[#allocation8 + $0x180] sm:$0xff]  ;;  %v2576_v18 = vld [vmem:[#allocation8 + $0x188] sm:$0xff] }
 0x24e   :  { %4178 = vmatprep.subr.bf16.mxu1 %v4177_v24  ;;  %v2528_v24 = vld [vmem:[#allocation8 + $0x8] sm:$0xff]  ;;  %v4225_v26 = vpack.c.bf16 %v2576_v18, %v2575_v15  ;;  %v4328_v30 = vadd.f32 %v4761_v4, %v4789_v14  ;;  %v4229_v4 = vpack.c.bf16 %v2578_v38, %v2577_v37  ;;  %v2566_v15 = vld [vmem:[#allocation8 + $0x138] sm:$0xff]  ;;  %v2551_v18 = vld [vmem:[#allocation8 + $0xc0] sm:$0xff] }
 0x24f   :  { %v2536_v37 = vld [vmem:[#allocation8 + $0x48] sm:$0xff]  ;;  %v2567_v38 = vld [vmem:[#allocation8 + $0x140] sm:$0xff] }
 0x250   :  { %3924 = vmatpush1.bf16.msra.mxu0 %v3923_v31  ;;  %v2545_v31 = vld [vmem:[#allocation8 + $0x90] sm:$0xff]  ;;  %4429 = vtanh.f32 %v4328_v30 }
 0x251   :  { %4180 = vmatpush1.bf16.msra.mxu1 %v4179_v34  ;;  %3926 = vmatprep.subr.bf16.mxu0 %v3925_v35  ;;  %v2546_v34 = vld [vmem:[#allocation8 + $0x98] sm:$0xff]  ;;  %v4195_v35 = vpack.c.bf16 %v2528_v24, %v2527_v23  ;;  %v2583_v24 = vld [vmem:[#allocation8 + $0x1c0] sm:$0xff] }
 0x252   :  { %4182 = vmatprep.subr.bf16.mxu1 %v4181_v41  ;;  %v2529_v41 = vld [vmem:[#allocation8 + $0x10] sm:$0xff]  ;;  %v4197_v1 = vpack.c.bf16 %v2546_v34, %v2545_v31  ;;  %v4239_v31 = vpack.c.bf16 %v2566_v15, %v2565_v12  ;;  %v2590_v15 = vld [vmem:[#allocation8 + $0x1f8] sm:$0xff] }
 0x253   :  { %v2557_v12 = vld [vmem:[#allocation8 + $0xf0] sm:$0xff] }
 0x254   :  { %3928 = vmatpush1.bf16.msra.mxu0 %v3927_v47  ;;  %v2548_v47 = vld [vmem:[#allocation8 + $0xa8] sm:$0xff] }
 0x255   :  { %4184 = vmatpush1.bf16.msra.mxu1 %v4183_v48  ;;  %3930 = vmatprep.subr.bf16.mxu0 %v3929_v49  ;;  %v4199_v48 = vpack.c.bf16 %v2530_v42, %v2529_v41  ;;  %v2579_v49 = vld [vmem:[#allocation8 + $0x1a0] sm:$0xff]  ;;  %v4201_v55 = vpack.c.bf16 %v2548_v47, %v2547_v46  ;;  %v2568_v41 = vld [vmem:[#allocation8 + $0x148] sm:$0xff]  ;;  %v2553_v42 = vld [vmem:[#allocation8 + $0xd0] sm:$0xff] }
 0x256   :  { %4186 = vmatprep.subr.bf16.mxu1 %v4185_v54  ;;  %v2532_v54 = vld [vmem:[#allocation8 + $0x28] sm:$0xff]  ;;  %v4233_v61 = vpack.c.bf16 %v2580_v50, %v2579_v49  ;;  %v4243_v47 = vpack.c.bf16 %v2568_v41, %v2567_v38  ;;  %v2537_v49 = vld [vmem:[#allocation8 + $0x50] sm:$0xff]  ;;  %v2538_v50 = vld [vmem:[#allocation8 + $0x58] sm:$0xff] }
 0x257   :  { %v2592_v38 = vld [vmem:[#allocation8 + $0x208] sm:$0xff] }
 0x258   :  { %3932 = vmatpush1.bf16.msra.mxu0 %v3931_v63  ;;  %v2550_v63 = vld [vmem:[#allocation8 + $0xb8] sm:$0xff]  ;;  %v2624_v41 = vld [vmem:[#allocation8 + $0x308] sm:$0xff] }
 0x259   :  { %4188 = vmatpush1.bf16.msra.mxu1 %v4187_v2  ;;  %3934 = vmatprep.subr.bf16.mxu0 %v3933_v3  ;;  %v4203_v2 = vpack.c.bf16 %v2532_v54, %v2531_v53  ;;  %v2581_v3 = vld [vmem:[#allocation8 + $0x1b0] sm:$0xff]  ;;  %v4205_v13 = vpack.c.bf16 %v2550_v63, %v2549_v62  ;;  %v2570_v53 = vld [vmem:[#allocation8 + $0x158] sm:$0xff]  ;;  %v2555_v54 = vld [vmem:[#allocation8 + $0xe0] sm:$0xff]  ;;  %v4215_v62 = vpack.c.bf16 %v2538_v50, %v2537_v49 }
 0x25a   :  { %4190 = vmatprep.subr.bf16.mxu1 %v4189_v9  ;;  %v2533_v9 = vld [vmem:[#allocation8 + $0x30] sm:$0xff]  ;;  %v4237_v23 = vpack.c.bf16 %v2582_v5, %v2581_v3  ;;  %v4324_v63 = vadd.f32 %v4767_v17, %v4786_v8  ;;  %v2539_v5 = vld [vmem:[#allocation8 + $0x60] sm:$0xff] }
 0x25b   :  { %v4207_v29 = vpack.c.bf16 %v2534_v10, %v2533_v9  ;;  %v2572_v10 = vld [vmem:[#allocation8 + $0x168] sm:$0xff]  ;;  %v2589_v17 = vld [vmem:[#allocation8 + $0x1f0] sm:$0xff] }
 0x25c   :  { %3936 = vmatpush1.bf16.msra.mxu0 %v3935_v19  ;;  %v2552_v19 = vld [vmem:[#allocation8 + $0xc8] sm:$0xff]  ;;  %v2625_v49 = vld [vmem:[#allocation8 + $0x310] sm:$0xff] }
 0x25d   :  { %4192 = vmatpush1.bf16.msra.mxu1 %v4191_v21  ;;  %4194 = vmatprep.subr.bf16.mxu0 %v4193_v22  ;;  %v1137_v21 = vsub.s32 0, %v4779_v40  ;;  %v4498_v22 = vld [vmem:[#allocation2 + $0xb0] sm:$0xff]  ;;  %v4209_v34 = vpack.c.bf16 %v2552_v19, %v2551_v18 }
 0x25e   :  { %4226 = vmatprep.subr.bf16.mxu1 %v4225_v26  ;;  %v4428_v26 = vpop.eup %4427 }
 0x25f   :  { %2153 = vmatmul.mubr.f32.vlgmr.msra.gmra.mrb[6].mxu0 %v4494_v45  ;;  %v4430_v30 = vpop.eup %4429  ;;  %v4798_v43 = vrot.slane %v4782_v58, %v1137_v21 }
 0x260   :  { %2485 = vmatmul.mubr.f32.vlgmr.msra.gmra.mrb[6].mxu1 %v4494_v45  ;;  %4196 = vmatpush3.bf16.msra.mxu0 %v4195_v35  ;;  %v2535_v35 = vld [vmem:[#allocation8 + $0x40] sm:$0xff]  ;;  %v2586_v45 = vld [vmem:[#allocation8 + $0x1d8] sm:$0xff] }
 0x261   :  { %4228 = vmatpush3.bf16.msra.mxu1 %v4227_v39  ;;  %2158 = vmatprep.mubr.f32.mxu0 %v4495_v51  ;;  %v4241_v39 = vpack.c.bf16 %v2584_v25, %v2583_v24  ;;  %v4211_v46 = vpack.c.bf16 %v2536_v37, %v2535_v35  ;;  %v4321_v56 = vadd.f32 %v4755_v59, %v4798_v43  ;;  %v2542_v24 = vld [vmem:[#allocation8 + $0x78] sm:$0xff]  ;;  %v2573_v25 = vld [vmem:[#allocation8 + $0x170] sm:$0xff]  ;;  %v2591_v37 = vld [vmem:[#allocation8 + $0x200] sm:$0xff] }
 0x262   :  { %2490 = vmatprep.mubr.f32.mxu1 %v4495_v51  ;;  %4198 = vmatprep.subr.bf16.mxu0 %v4197_v1  ;;  %v2554_v1 = vld [vmem:[#allocation8 + $0xd8] sm:$0xff]  ;;  %v2569_v51 = vld [vmem:[#allocation8 + $0x150] sm:$0xff]  ;;  %v4330_v59 = vadd.f32 %v4769_v20, %v4789_v14  ;;  %v4326_v20 = vadd.f32 %v4775_v33, %v4786_v8  ;;  %v4325_v33 = vadd.f32 %v4771_v27, %v4798_v43 }
 0x263   :  { %2159 = vmatmul.mubr.f32.gmra.mrb[8].mxu0 %v4496_v60  ;;  %4230 = vmatprep.subr.bf16.mxu1 %v4229_v4  ;;  %v4801_v4 = vrot.slane %v4782_v58, %v1145_v28  ;;  %4431 = vtanh.f32 %v4321_v56  ;;  %v2607_v28 = vld [vmem:[#allocation8 + $0x280] sm:$0xff]  ;;  %v2641_v27 = vld [vmem:[#allocation8 + $0x390] sm:$0xff] }
 0x264   :  { %2491 = vmatmul.mubr.f32.gmra.mrb[8].mxu1 %v4496_v60  ;;  %4200 = vmatpush3.bf16.msra.mxu0 %v4199_v48  ;;  %v4213_v48 = vpack.c.bf16 %v2554_v1, %v2553_v42  ;;  %v2588_v60 = vld [vmem:[#allocation8 + $0x1e8] sm:$0xff]  ;;  %v2609_v42 = vld [vmem:[#allocation8 + $0x290] sm:$0xff]  ;;  %v2610_v1 = vld [vmem:[#allocation8 + $0x298] sm:$0xff] }
 0x265   :  { %4232 = vmatpush3.bf16.msra.mxu1 %v4231_v52  ;;  %2164 = vmatprep.mubr.f32.mxu0 %v4497_v6  ;;  %v4245_v52 = vpack.c.bf16 %v2586_v45, %v2585_v44  ;;  %v4249_v9 = vpack.c.bf16 %v2588_v60, %v2587_v57  ;;  %v4329_v18 = vadd.f32 %v4765_v16, %v4801_v4  ;;  %v2574_v16 = vld [vmem:[#allocation8 + $0x178] sm:$0xff]  ;;  %v2643_v56 = vld [vmem:[#allocation8 + $0x3a0] sm:$0xff]  ;;  %v2644_v57 = vld [vmem:[#allocation8 + $0x3a8] sm:$0xff] }
 0x266   :  { %2496 = vmatprep.mubr.f32.mxu1 %v4497_v6  ;;  %4202 = vmatprep.subr.bf16.mxu0 %v4201_v55  ;;  %v2556_v55 = vld [vmem:[#allocation8 + $0xe8] sm:$0xff] }
 0x267   :  { %2165 = vmatmul.mubr.f32.gmra.mrb[10].mxu0 %v4498_v22  ;;  %4234 = vmatprep.subr.bf16.mxu1 %v4233_v61  ;;  %v4327_v61 = vadd.f32 %v4757_v0, %v4801_v4  ;;  %v4217_v3 = vpack.c.bf16 %v2556_v55, %v2555_v54  ;;  %v2540_v6 = vld [vmem:[#allocation8 + $0x68] sm:$0xff]  ;;  %v2558_v0 = vld [vmem:[#allocation8 + $0xf8] sm:$0xff] }
 0x268   :  { %2497 = vmatmul.mubr.f32.gmra.mrb[10].mxu1 %v4498_v22  ;;  %4204 = vmatpush3.bf16.msra.mxu0 %v4203_v2  ;;  %v4247_v2 = vpack.c.bf16 %v2570_v53, %v2569_v51  ;;  %v4219_v19 = vpack.c.bf16 %v2540_v6, %v2539_v5  ;;  %v4221_v22 = vpack.c.bf16 %v2558_v0, %v2557_v12  ;;  %v2611_v53 = vld [vmem:[#allocation8 + $0x2a0] sm:$0xff]  ;;  %v2612_v54 = vld [vmem:[#allocation8 + $0x2a8] sm:$0xff]  ;;  %v2614_v12 = vld [vmem:[#allocation8 + $0x2b8] sm:$0xff] }
 0x269   :  { %2726 = vmatprep.mubr.f32.mxu0 %v4428_v26  ;;  %4236 = vmatpush3.bf16.msra.mxu1 %v4235_v7  ;;  %v2571_v7 = vld [vmem:[#allocation8 + $0x160] sm:$0xff]  ;;  %4433 = vtanh.f32 %v4327_v61  ;;  %v4253_v26 = vpack.c.bf16 %v2590_v15, %v2589_v17  ;;  %v2596_v5 = vld [vmem:[#allocation8 + $0x228] sm:$0xff]  ;;  %v2646_v17 = vld [vmem:[#allocation8 + $0x3b8] sm:$0xff] }
 0x26a   :  { %2806 = vmatprep.mubr.f32.mxu1 %v4430_v30  ;;  %4206 = vmatprep.subr.bf16.mxu0 %v4205_v13  ;;  %v4323_v13 = vadd.f32 %v4763_v11, %v4798_v43  ;;  %4435 = vtanh.f32 %v4324_v63  ;;  %v4251_v21 = vpack.c.bf16 %v2572_v10, %v2571_v7  ;;  %v4332_v11 = vadd.f32 %v4777_v36, %v4789_v14  ;;  %v2639_v30 = vld [vmem:[#allocation8 + $0x380] sm:$0xff]  ;;  %v2642_v43 = vld [vmem:[#allocation8 + $0x398] sm:$0xff]  ;;  %v2613_v10 = vld [vmem:[#allocation8 + $0x2b0] sm:$0xff] }
 0x26b   :  { %4238 = vmatprep.subr.bf16.mxu1 %v4237_v23  ;;  %v2541_v23 = vld [vmem:[#allocation8 + $0x70] sm:$0xff]  ;;  %4437 = vtanh.f32 %v4330_v59  ;;  %v4255_v36 = vpack.c.bf16 %v2574_v16, %v2573_v25  ;;  %v4293_v51 = vpack.c.bf16 %v2642_v43, %v2641_v27  ;;  %v2627_v6 = vld [vmem:[#allocation8 + $0x320] sm:$0xff]  ;;  %v4297_v59 = vpack.c.bf16 %v2644_v57, %v2643_v56  ;;  %v2650_v27 = vld [vmem:[#allocation8 + $0x3d8] sm:$0xff] }
 0x26c   :  { %4208 = vmatpush3.bf16.msra.mxu0 %v4207_v29  ;;  %v2608_v29 = vld [vmem:[#allocation8 + $0x288] sm:$0xff]  ;;  %4439 = vtanh.f32 %v4323_v13  ;;  %v4223_v8 = vpack.c.bf16 %v2542_v24, %v2541_v23  ;;  %v2645_v13 = vld [vmem:[#allocation8 + $0x3b0] sm:$0xff]  ;;  %v2635_v57 = vld [vmem:[#allocation8 + $0x360] sm:$0xff] }
 0x26d   :  { %4240 = vmatpush3.bf16.msra.mxu1 %v4239_v31  ;;  %4210 = vmatprep.subr.bf16.mxu0 %v4209_v34  ;;  %v2640_v31 = vld [vmem:[#allocation8 + $0x388] sm:$0xff]  ;;  %4441 = vtanh.f32 %v4329_v18  ;;  %v4331_v34 = vadd.f32 %v4773_v32, %v4801_v4  ;;  %v4257_v14 = vpack.c.bf16 %v2608_v29, %v2607_v28  ;;  %v4432_v44 = vpop.eup %4431  ;;  %v4259_v32 = vpack.c.bf16 %v2592_v38, %v2591_v37  ;;  %v2629_v25 = vld [vmem:[#allocation8 + $0x330] sm:$0xff]  ;;  %v2615_v28 = vld [vmem:[#allocation8 + $0x2c0] sm:$0xff] }
 0x26e   :  { %4242 = vmatprep.subr.bf16.mxu1 %v4241_v39  ;;  %4443 = vtanh.f32 %v4326_v20  ;;  %v4289_v35 = vpack.c.bf16 %v2640_v31, %v2639_v30  ;;  %v2623_v39 = vld [vmem:[#allocation8 + $0x300] sm:$0xff]  ;;  %v4269_v20 = vpack.c.bf16 %v2614_v12, %v2613_v10  ;;  %v4301_v24 = vpack.c.bf16 %v2646_v17, %v2645_v13  ;;  %v2616_v29 = vld [vmem:[#allocation8 + $0x2c8] sm:$0xff]  ;;  %v2601_v43 = vld [vmem:[#allocation8 + $0x250] sm:$0xff] }
 0x26f   :  { %4445 = vtanh.f32 %v4332_v11  ;;  %v4291_v4 = vpack.c.bf16 %v2624_v41, %v2623_v39  ;;  %v2630_v11 = vld [vmem:[#allocation8 + $0x338] sm:$0xff]  ;;  %v2647_v30 = vld [vmem:[#allocation8 + $0x3c0] sm:$0xff]  ;;  %v4273_v31 = vpack.c.bf16 %v2616_v29, %v2615_v28  ;;  %v2632_v37 = vld [vmem:[#allocation8 + $0x348] sm:$0xff]  ;;  %v1153_v13 = vsub.s32 4, %v4779_v40 }
 0x270   :  { %4212 = vmatpush3.bf16.msra.mxu0 %v4211_v46  ;;  %4447 = vtanh.f32 %v4325_v33  ;;  %v4261_v46 = vpack.c.bf16 %v2610_v1, %v2609_v42  ;;  %v4303_v16 = vpack.c.bf16 %v2630_v11, %v2629_v25  ;;  %v2648_v33 = vld [vmem:[#allocation8 + $0x3c8] sm:$0xff]  ;;  %v2617_v39 = vld [vmem:[#allocation8 + $0x2d0] sm:$0xff]  ;;  %v2618_v41 = vld [vmem:[#allocation8 + $0x2d8] sm:$0xff]  ;;  %v1157_v17 = vsub.s32 5, %v4779_v40 }
 0x271   :  { %4244 = vmatpush3.bf16.msra.mxu1 %v4243_v47  ;;  %4214 = vmatprep.subr.bf16.mxu0 %v4213_v48  ;;  %4449 = vtanh.f32 %v4331_v34  ;;  %v2593_v47 = vld [vmem:[#allocation8 + $0x210] sm:$0xff]  ;;  %v2594_v48 = vld [vmem:[#allocation8 + $0x218] sm:$0xff]  ;;  %v2600_v34 = vld [vmem:[#allocation8 + $0x248] sm:$0xff]  ;;  %v4277_v1 = vpack.c.bf16 %v2618_v41, %v2617_v39 }
 0x272   :  { %4246 = vmatprep.subr.bf16.mxu1 %v4245_v52  ;;  %v2626_v52 = vld [vmem:[#allocation8 + $0x318] sm:$0xff]  ;;  %v4263_v61 = vpack.c.bf16 %v2594_v48, %v2593_v47  ;;  %v2649_v42 = vld [vmem:[#allocation8 + $0x3d0] sm:$0xff]  ;;  %v2619_v48 = vld [vmem:[#allocation8 + $0x2e0] sm:$0xff] }
 0x273   :  { %v4434_v45 = vpop.eup %4433  ;;  %v4295_v63 = vpack.c.bf16 %v2626_v52, %v2625_v49  ;;  %v2620_v49 = vld [vmem:[#allocation8 + $0x2e8] sm:$0xff]  ;;  %v2637_v10 = vld [vmem:[#allocation8 + $0x370] sm:$0xff]  ;;  %v2638_v12 = vld [vmem:[#allocation8 + $0x378] sm:$0xff] }
 0x274   :  { %4216 = vmatpush3.bf16.msra.mxu0 %v4215_v62  ;;  %v4436_v50 = vpop.eup %4435  ;;  %v2652_v52 = vld [vmem:[#allocation8 + $0x3e8] sm:$0xff] }
 0x275   :  { %4248 = vmatpush3.bf16.msra.mxu1 %v4247_v2  ;;  %4218 = vmatprep.subr.bf16.mxu0 %v4217_v3  ;;  %v4438_v55 = vpop.eup %4437  ;;  %v4265_v2 = vpack.c.bf16 %v2612_v54, %v2611_v53  ;;  %v2595_v3 = vld [vmem:[#allocation8 + $0x220] sm:$0xff]  ;;  %v2604_v54 = vld [vmem:[#allocation8 + $0x268] sm:$0xff] }
 0x276   :  { %4250 = vmatprep.subr.bf16.mxu1 %v4249_v9  ;;  %v4440_v60 = vpop.eup %4439  ;;  %v2628_v9 = vld [vmem:[#allocation8 + $0x328] sm:$0xff]  ;;  %v4267_v15 = vpack.c.bf16 %v2596_v5, %v2595_v3  ;;  %v2603_v53 = vld [vmem:[#allocation8 + $0x260] sm:$0xff]  ;;  %v2654_v5 = vld [vmem:[#allocation8 + $0x3f8] sm:$0xff] }
 0x277   :  { %v4442_v62 = vpop.eup %4441  ;;  %v4283_v56 = vpack.c.bf16 %v2604_v54, %v2603_v53  ;;  %v3004_v54 = vld [vmem:[#allocation10] ss:$0 sm:$0xff] }
 0x278   :  { %4220 = vmatpush3.bf16.msra.mxu0 %v4219_v19  ;;  %v4444_v7 = vpop.eup %4443  ;;  %v4299_v19 = vpack.c.bf16 %v2628_v9, %v2627_v6  ;;  %v2605_v6 = vld [vmem:[#allocation8 + $0x270] sm:$0xff] }
 0x279   :  { %4252 = vmatpush3.bf16.msra.mxu1 %v4251_v21  ;;  %4222 = vmatprep.subr.bf16.mxu0 %v4221_v22  ;;  %v4446_v0 = vpop.eup %4445  ;;  %v2597_v21 = vld [vmem:[#allocation8 + $0x230] sm:$0xff]  ;;  %v2598_v22 = vld [vmem:[#allocation8 + $0x238] sm:$0xff] }
 0x27a   :  { %4254 = vmatprep.subr.bf16.mxu1 %v4253_v26  ;;  %v4448_v18 = vpop.eup %4447  ;;  %v4271_v26 = vpack.c.bf16 %v2598_v22, %v2597_v21 }
 0x27b   :  { %v4450_v23 = vpop.eup %4449 }
 0x27c   :  { %4224 = vmatpush3.bf16.msra.mxu0 %v4223_v8  ;;  %v2599_v8 = vld [vmem:[#allocation8 + $0x240] sm:$0xff] }
 0x27d   :  { %4256 = vmatpush3.bf16.msra.mxu1 %v4255_v36  ;;  %4258 = vmatprep.subr.bf16.mxu0 %v4257_v14  ;;  %v4305_v36 = vpack.c.bf16 %v2648_v33, %v2647_v30  ;;  %v4275_v14 = vpack.c.bf16 %v2600_v34, %v2599_v8 }
 0x27e   :  { %4290 = vmatprep.subr.bf16.mxu1 %v4289_v35  ;;  %v2631_v35 = vld [vmem:[#allocation8 + $0x340] sm:$0xff] }
 0x27f   :  { %2727 = vmatmul.mubr.f32.vlgmr.msra.gmra.mrb[12].mxu0 %v4432_v44  ;;  %v4307_v38 = vpack.c.bf16 %v2632_v37, %v2631_v35  ;;  %v2602_v44 = vld [vmem:[#allocation8 + $0x258] sm:$0xff] }
 0x280   :  { %2807 = vmatmul.mubr.f32.vlgmr.msra.gmra.mrb[12].mxu1 %v4434_v45  ;;  %2731 = vmatprep.mubr.f32.mxu0 %v4436_v50  ;;  %v4279_v45 = vpack.c.bf16 %v2602_v44, %v2601_v43  ;;  %v2651_v50 = vld [vmem:[#allocation8 + $0x3e0] sm:$0xff] }
 0x281   :  { %2811 = vmatprep.mubr.f32.mxu1 %v4438_v55  ;;  %4260 = vmatpush3.bf16.msra.mxu0 %v4259_v32  ;;  %v4309_v32 = vpack.c.bf16 %v2650_v27, %v2649_v42  ;;  %v4313_v55 = vpack.c.bf16 %v2652_v52, %v2651_v50 }
 0x282   :  { %4292 = vmatpush3.bf16.msra.mxu1 %v4291_v4  ;;  %4262 = vmatprep.subr.bf16.mxu0 %v4261_v46  ;;  %v2633_v4 = vld [vmem:[#allocation8 + $0x350] sm:$0xff]  ;;  %v2634_v46 = vld [vmem:[#allocation8 + $0x358] sm:$0xff] }
 0x283   :  { %2732 = vmatmul.mubr.f32.gmra.mrb[14].mxu0 %v4440_v60  ;;  %4294 = vmatprep.subr.bf16.mxu1 %v4293_v51  ;;  %v4311_v47 = vpack.c.bf16 %v2634_v46, %v2633_v4  ;;  %v4281_v51 = vpack.c.bf16 %v2620_v49, %v2619_v48  ;;  %v2636_v60 = vld [vmem:[#allocation8 + $0x368] sm:$0xff] }
 0x284   :  { %2812 = vmatmul.mubr.f32.gmra.mrb[14].mxu1 %v4442_v62  ;;  %2736 = vmatprep.mubr.f32.mxu0 %v4444_v7  ;;  %v2621_v62 = vld [vmem:[#allocation8 + $0x2f0] sm:$0xff]  ;;  %v2606_v7 = vld [vmem:[#allocation8 + $0x278] sm:$0xff] }
 0x285   :  { %2816 = vmatprep.mubr.f32.mxu1 %v4446_v0  ;;  %4264 = vmatpush3.bf16.msra.mxu0 %v4263_v61  ;;  %v4315_v61 = vpack.c.bf16 %v2636_v60, %v2635_v57  ;;  %v4287_v9 = vpack.c.bf16 %v2606_v7, %v2605_v6  ;;  %v4319_v0 = vpack.c.bf16 %v2638_v12, %v2637_v10 }
 0x286   :  { %4296 = vmatpush3.bf16.msra.mxu1 %v4295_v63  ;;  %4266 = vmatprep.subr.bf16.mxu0 %v4265_v2  ;;  %v2622_v63 = vld [vmem:[#allocation8 + $0x2f8] sm:$0xff]  ;;  %v2653_v2 = vld [vmem:[#allocation8 + $0x3f0] sm:$0xff] }
 0x287   :  { %2737 = vmatmul.mubr.f32.gmra.mrb[16].mxu0 %v4448_v18  ;;  %4298 = vmatprep.subr.bf16.mxu1 %v4297_v59  ;;  %v4285_v3 = vpack.c.bf16 %v2622_v63, %v2621_v62  ;;  %v4317_v59 = vpack.c.bf16 %v2654_v5, %v2653_v2  ;;  %v1165_v18 = vsub.s32 7, %v4779_v40 }
 0x288   :  { %2817 = vmatmul.mubr.f32.gmra.mrb[16].mxu1 %v4450_v23 }
 0x289   :  { %4268 = vmatpush3.bf16.msra.mxu0 %v4267_v15  ;;  %v1161_v15 = vsub.s32 6, %v4779_v40  ;;  %v1166_v22 = vrot.slane %v4782_v58, %v1165_v18 }
 0x28a   :  { %4300 = vmatpush3.bf16.msra.mxu1 %v4299_v19  ;;  %4270 = vmatprep.subr.bf16.mxu0 %v4269_v20  ;;  %v1154_v19 = vrot.slane %v4782_v58, %v1153_v13  ;;  %v1158_v20 = vrot.slane %v4782_v58, %v1157_v17 }
 0x28b   :  { %4302 = vmatprep.subr.bf16.mxu1 %v4301_v24  ;;  %v1162_v21 = vrot.slane %v4782_v58, %v1161_v15 }
 0x28d   :  { %4272 = vmatpush3.bf16.msra.mxu0 %v4271_v26 }
 0x28e   :  { %4304 = vmatpush3.bf16.msra.mxu1 %v4303_v16  ;;  %4274 = vmatprep.subr.bf16.mxu0 %v4273_v31 }
 0x28f   :  { %4306 = vmatprep.subr.bf16.mxu1 %v4305_v36 }
 0x291   :  { %4276 = vmatpush3.bf16.msra.mxu0 %v4275_v14 }
 0x292   :  { %4308 = vmatpush3.bf16.msra.mxu1 %v4307_v38  ;;  %4278 = vmatprep.subr.bf16.mxu0 %v4277_v1 }
 0x293   :  { %4310 = vmatprep.subr.bf16.mxu1 %v4309_v32 }
 0x295   :  { %4280 = vmatpush3.bf16.msra.mxu0 %v4279_v45 }
 0x296   :  { %4312 = vmatpush3.bf16.msra.mxu1 %v4311_v47  ;;  %4282 = vmatprep.subr.bf16.mxu0 %v4281_v51 }
 0x297   :  { %4314 = vmatprep.subr.bf16.mxu1 %v4313_v55 }
 0x299   :  { %4284 = vmatpush3.bf16.msra.mxu0 %v4283_v56 }
 0x29a   :  { %4316 = vmatpush3.bf16.msra.mxu1 %v4315_v61  ;;  %4286 = vmatprep.subr.bf16.mxu0 %v4285_v3 }
 0x29b   :  { %4318 = vmatprep.subr.bf16.mxu1 %v4317_v59 }
 0x29d   :  { %4288 = vmatpush3.bf16.msra.mxu0 %v4287_v9 }
 0x29e   :  { %4320 = vmatpush3.bf16.msra.mxu1 %v4319_v0 }
 0x332   :  { %v2154_v23 = vpop.f32.mrb[6].mxu0 }
 0x333   :  { %v4333_v24 = vadd.f32 %v2154_v23, %v1154_v19  ;;  %v2486_v25 = vpop.f32.mrb[6].mxu1  ;;  %v2156_v11 = vpop.f32.mrb[7].mxu0 }
 0x334   :  { %v4334_v26 = vadd.f32 %v2156_v11, %v1158_v20  ;;  %v2488_v16 = vpop.f32.mrb[7].mxu1  ;;  %v4339_v28 = vadd.f32 %v2486_v25, %v1162_v21 }
 0x335   :  { %v4340_v29 = vadd.f32 %v2488_v16, %v1166_v22  ;;  %4451 = vtanh.f32 %v4333_v24 }
 0x336   :  { %v2160_v30 = vpop.f32.mrb[8].mxu0  ;;  %4453 = vtanh.f32 %v4334_v26 }
 0x337   :  { %v4335_v40 = vadd.f32 %v2160_v30, %v1154_v19  ;;  %v2492_v31 = vpop.f32.mrb[8].mxu1  ;;  %v2162_v33 = vpop.f32.mrb[9].mxu0  ;;  %4455 = vtanh.f32 %v4340_v29 }
 0x338   :  { %v4336_v8 = vadd.f32 %v2162_v33, %v1158_v20  ;;  %v2494_v34 = vpop.f32.mrb[9].mxu1  ;;  %4457 = vtanh.f32 %v4339_v28  ;;  %v4341_v36 = vadd.f32 %v2492_v31, %v1162_v21 }
 0x339   :  { %v4342_v58 = vadd.f32 %v2494_v34, %v1166_v22  ;;  %4459 = vtanh.f32 %v4335_v40 }
 0x33a   :  { %v2166_v14 = vpop.f32.mrb[10].mxu0  ;;  %4461 = vtanh.f32 %v4336_v8 }
 0x33b   :  { %v4337_v35 = vadd.f32 %v2166_v14, %v1154_v19  ;;  %v2498_v37 = vpop.f32.mrb[10].mxu1  ;;  %v2168_v38 = vpop.f32.mrb[11].mxu0  ;;  %4463 = vtanh.f32 %v4342_v58 }
 0x33c   :  { %v4338_v39 = vadd.f32 %v2168_v38, %v1158_v20  ;;  %v2500_v41 = vpop.f32.mrb[11].mxu1  ;;  %4465 = vtanh.f32 %v4341_v36  ;;  %v4343_v42 = vadd.f32 %v2498_v37, %v1162_v21 }
 0x33d   :  { %v4344_v1 = vadd.f32 %v2500_v41, %v1166_v22  ;;  %4467 = vtanh.f32 %v4337_v35 }
 0x33e   :  { %4469 = vtanh.f32 %v4338_v39 }
 0x33f   :  { %v4452_v27 = vpop.eup %4451  ;;  %4471 = vtanh.f32 %v4344_v1 }
 0x340   :  { %v4454_v43 = vpop.eup %4453  ;;  %4473 = vtanh.f32 %v4343_v42 }
 0x341   :  { %v4456_v44 = vpop.eup %4455  ;;  %2886 = vmatprep.mubr.f32.mxu0 %v4454_v43 }
 0x342   :  { %v4458_v32 = vpop.eup %4457  ;;  %2966 = vmatprep.mubr.f32.mxu1 %v4456_v44  ;;  %2887 = vmatmul.mubr.f32.vlgmr.msra.gmra.mrb[18].mxu0 %v4452_v27 }
 0x343   :  { %v4460_v45 = vpop.eup %4459  ;;  %2967 = vmatmul.mubr.f32.vlgmr.msra.gmra.mrb[18].mxu1 %v4458_v32 }
 0x344   :  { %v4462_v4 = vpop.eup %4461 }
 0x345   :  { %v4464_v46 = vpop.eup %4463  ;;  %2891 = vmatprep.mubr.f32.mxu0 %v4462_v4 }
 0x346   :  { %v4466_v47 = vpop.eup %4465  ;;  %2971 = vmatprep.mubr.f32.mxu1 %v4464_v46  ;;  %2892 = vmatmul.mubr.f32.gmra.mrb[20].mxu0 %v4460_v45 }
 0x347   :  { %v4468_v48 = vpop.eup %4467  ;;  %2972 = vmatmul.mubr.f32.gmra.mrb[20].mxu1 %v4466_v47 }
 0x348   :  { %v4470_v49 = vpop.eup %4469 }
 0x349   :  { %v4472_v50 = vpop.eup %4471  ;;  %2896 = vmatprep.mubr.f32.mxu0 %v4470_v49 }
 0x34a   :  { %v4474_v51 = vpop.eup %4473  ;;  %2976 = vmatprep.mubr.f32.mxu1 %v4472_v50  ;;  %2897 = vmatmul.mubr.f32.gmra.mrb[22].mxu0 %v4468_v48 }
 0x34b   :  { %2977 = vmatmul.mubr.f32.gmra.mrb[22].mxu1 %v4474_v51 }
 0x352   :  { %v3037_v52 = vpop.f32.mrb[12].mxu0 }
 0x353   :  { %v3078_v53 = vpop.f32.mrb[12].mxu1  ;;  %v3038_v55 = vpop.f32.mrb[13].mxu0 }
 0x354   :  { %v3039_v56 = vadd.f32 %v3038_v55, %v3037_v52  ;;  %v3079_v57 = vpop.f32.mrb[13].mxu1 }
 0x355   :  { %v3080_v60 = vadd.f32 %v3079_v57, %v3078_v53 }
 0x356   :  { %v2729_v61 = vadd.f32 %v3039_v56, %v3004_v54  ;;  %v3040_v62 = vpop.f32.mrb[14].mxu0 }
 0x357   :  { %v3081_v63 = vpop.f32.mrb[14].mxu1  ;;  %v3041_v2 = vpop.f32.mrb[15].mxu0 }
 0x358   :  { %v2809_v3 = vadd.f32 %v3080_v60, %v2729_v61  ;;  %v3042_v5 = vadd.f32 %v3041_v2, %v3040_v62  ;;  %v3082_v6 = vpop.f32.mrb[15].mxu1 }
 0x359   :  { %v3083_v7 = vadd.f32 %v3082_v6, %v3081_v63 }
 0x35a   :  { %v2734_v59 = vadd.f32 %v3042_v5, %v3004_v54  ;;  %v3043_v9 = vpop.f32.mrb[16].mxu0 }
 0x35b   :  { %v3084_v10 = vpop.f32.mrb[16].mxu1  ;;  %v3044_v12 = vpop.f32.mrb[17].mxu0 }
 0x35c   :  { %v2814_v0 = vadd.f32 %v3083_v7, %v2734_v59  ;;  %v3045_v13 = vadd.f32 %v3044_v12, %v3043_v9  ;;  %v3085_v17 = vpop.f32.mrb[17].mxu1 }
 0x35d   :  { %v3086_v15 = vadd.f32 %v3085_v17, %v3084_v10 }
 0x35e   :  { %v2739_v18 = vadd.f32 %v3045_v13, %v3004_v54 }
 0x360   :  { %v2819_v19 = vadd.f32 %v3086_v15, %v2739_v18 }
 0x415   :  { %v3119_v20 = vpop.f32.mrb[18].mxu0 }
 0x416   :  { %v3160_v21 = vpop.f32.mrb[18].mxu1  ;;  %v3120_v22 = vpop.f32.mrb[19].mxu0 }
 0x417   :  { %v3121_v23 = vadd.f32 %v3120_v22, %v3119_v20  ;;  %v3161_v24 = vpop.f32.mrb[19].mxu1 }
 0x418   :  { %v3162_v25 = vadd.f32 %v3161_v24, %v3160_v21 }
 0x419   :  { %v2889_v11 = vadd.f32 %v3121_v23, %v2809_v3  ;;  %v3122_v26 = vpop.f32.mrb[20].mxu0 }
 0x41a   :  { %v3163_v16 = vpop.f32.mrb[20].mxu1  ;;  %v3123_v28 = vpop.f32.mrb[21].mxu0 }
 0x41b   :  { %v2969_v29 = vadd.f32 %v3162_v25, %v2889_v11  ;;  %v3124_v30 = vadd.f32 %v3123_v28, %v3122_v26  ;;  %v3164_v40 = vpop.f32.mrb[21].mxu1 }
 0x41c   :  { %v3165_v31 = vadd.f32 %v3164_v40, %v3163_v16 }
 0x41d   :  { %2982 = vst [vmem:[#allocation11] sm:$0xff] %v2969_v29  ;;  %v2894_v33 = vadd.f32 %v3124_v30, %v2814_v0  ;;  %v3125_v8 = vpop.f32.mrb[22].mxu0 }
 0x41e   :  { %v3166_v34 = vpop.f32.mrb[22].mxu1  ;;  %v3126_v36 = vpop.f32.mrb[23].mxu0 }
 0x41f   :  { %v2974_v58 = vadd.f32 %v3165_v31, %v2894_v33  ;;  %v3127_v14 = vadd.f32 %v3126_v36, %v3125_v8  ;;  %v3167_v35 = vpop.f32.mrb[23].mxu1 }
 0x420   :  { %v3168_v37 = vadd.f32 %v3167_v35, %v3166_v34 }
 0x421   :  { %2983 = vst [vmem:[#allocation11 + $0x8] sm:$0xff] %v2974_v58  ;;  %v2899_v38 = vadd.f32 %v3127_v14, %v2819_v19 }
 0x423   :  { %v2979_v39 = vadd.f32 %v3168_v37, %v2899_v38 }
 0x425   :  { %2984 = vst [vmem:[#allocation11 + $0x10] sm:$0xff] %v2979_v39 }
 0x426   :  { %4620 = shalt.err (!%p4617_p2)
}
 0x427   :  { %s4621_s10 = scalar_lea.hbm %s4851_s5, 384 }
 0x428   :  { %p4622_p3 = scmp.ne.s32.totalorder %s4851_s5, %s4621_s10  ;;  %p4625_p4 = scmp.lt.u32.totalorder %s4621_s10, %s4851_s5 }
 0x42a   :  { %p4627_p5 = pnand %p4625_p4, %p4622_p3 }
 0x42c   :  { %4630 = shalt.err (!%p4627_p5)
}
 0x42d   :  { %2996 = dma.vmem_to_hbm [thread:$0]  %s2991_s8, 384, %s4851_s5, [#allocation4], %s4643_s1, %s4643_s1, %s4644_s17  }
 0x42e   :  { %4637 = dma.done.wait [#allocation4], 384  }
 0x42f   :  { %4638 = vsyncadd [#allocation4], 4294966912 }
 0x430   :  { %3000 = vsyncpa [#allocation3], 1 }
 0x431   :  { %3001 = vsyncpa [#allocation6], 1 }
 0x432   :  { %3002 = vsyncpa [#allocation9], 1 }
 0x433   :  { %3003 = vsyncpa [#allocation4], 1 }

</bundles_post_ra>
